<compile_context>
chip_gen: v7x
topology: tpu7x:2x2x1
jax: 0.10.0
libtpu: 0.0.40
codegen_flags: <defaults>
</compile_context>

<pallas_src>
import jax
import jax.numpy as jnp
from jax.experimental import pallas as pl
from jax.experimental.pallas import tpu as pltpu

# ----------------------------- small synthetic config ------------------------------
VOCAB = 256
D_MODEL = 128            # llama_model.config.hidden_size
N_HEADS = 4
HEAD_DIM = D_MODEL // N_HEADS
D_FF = 256               # llama intermediate size
N_LAYERS = 2
NUM_MOL_FP = 64          # args['num_mol_fp']
PROJ_HIDDEN = 64         # args['projector_hidden_size']
NUM_QUERY_TOKENS = 4     # args['enc_num_mol_tokens']
RMS_EPS = 1e-6
IGNORE_INDEX = -100
NEG_INF = -1e9

_VMEM = pl.BlockSpec(memory_space=pltpu.MemorySpace.VMEM)
_SMEM = pl.BlockSpec(memory_space=pltpu.MemorySpace.SMEM)


# --------------------------------- kernel helpers -----------------------------------
def _rms(x, w):
    # x: (rows, D) f32, w: (1, D) f32
    inv = jax.lax.rsqrt(jnp.mean(x * x, axis=-1, keepdims=True) + RMS_EPS)
    return x * inv * w


# ------------------------- fully fused decoder-stack kernel -------------------------
def _fused_layers_kernel(h_ref, mask_ref, cos_ref, sin_ref,
                         anorm_ref, wqkv_ref, wo_ref,
                         mnorm_ref, wg_ref, wu_ref, wd_ref,
                         o_ref, h_scr, bias_scr):
    l = pl.program_id(1)
    S = h_scr.shape[0]
    half = HEAD_DIM // 2
    H = N_HEADS

    # ---- per-batch-step prologue: residual init + layer-invariant mask bias ---------
    @pl.when(l == 0)
    def _():
        h_scr[...] = h_ref[0]
        row = jax.lax.broadcasted_iota(jnp.int32, (S, S), 0)
        col = jax.lax.broadcasted_iota(jnp.int32, (S, S), 1)
        keym = mask_ref[0] > 0                                   # (1, S) key padding
        bias_scr[...] = jnp.where((row >= col) & keym, 0.0, NEG_INF)

    h = h_scr[...]                                               # (S, D) f32 residual
    cos = cos_ref[...][None]                                     # (1, S, hd)
    sin = sin_ref[...][None]                                     # signed-sin table
    bias = bias_scr[...][None]                                   # (1, S, S)

    # ---- attention sub-block ---------------------------------------------------------
    x = _rms(h, anorm_ref[0])
    xb = x.astype(jnp.bfloat16)
    xh = jnp.broadcast_to(xb[None], (3 * H,) + xb.shape)         # (3H, S, D) bf16
    # batched per-head projection -> q/k/v directly in (H, S, hd) layout
    qkv = jnp.einsum('hsd,hdk->hsk', xh, wqkv_ref[0],
                     preferred_element_type=jnp.float32)         # (3H, S, hd) f32
    q = qkv[0:H]                                                 # 1/sqrt(hd) pre-folded
    k = qkv[H:2 * H]
    v = qkv[2 * H:3 * H]

    def rope(t):
        # rotate_half as a lane roll; the sign lives in the signed-sin table.
        t_roll = jnp.concatenate([t[..., half:], t[..., :half]], axis=-1)
        return t * cos + t_roll * sin

    q = rope(q).astype(jnp.bfloat16)
    k = rope(k).astype(jnp.bfloat16)

    s = jnp.einsum('hqd,hkd->hqk', q, k,
                   preferred_element_type=jnp.float32)           # (H, S, S) f32
    s = s + bias                                                 # causal + key padding
    m = jnp.max(s, axis=-1, keepdims=True)                       # f32 softmax (v5e-safe)
    p = jnp.exp(s - m)
    denom = jnp.sum(p, axis=-1, keepdims=True)
    o = jnp.einsum('hqk,hkd->hqd', p.astype(jnp.bfloat16), v.astype(jnp.bfloat16),
                   preferred_element_type=jnp.float32)           # (H, S, hd) f32
    o = o * pl.reciprocal(denom, approx=True)                    # EUP reciprocal
    # output projection with the head concat folded in: per-head project then sum.
    proj = jnp.einsum('hqd,hde->hqe', o.astype(jnp.bfloat16), wo_ref[0],
                      preferred_element_type=jnp.float32)        # (H, S, D) f32
    h = h + jnp.sum(proj, axis=0)

    # ---- MLP sub-block (SwiGLU) -------------------------------------------------------
    x2 = _rms(h, mnorm_ref[0]).astype(jnp.bfloat16)
    g = jnp.dot(x2, wg_ref[0], preferred_element_type=jnp.float32)
    u = jnp.dot(x2, wu_ref[0], preferred_element_type=jnp.float32)
    act = (g * jax.nn.sigmoid(g)) * u                            # SiLU gate in f32
    h = h + jnp.dot(act.astype(jnp.bfloat16), wd_ref[0],
                    preferred_element_type=jnp.float32)

    h_scr[...] = h                                               # residual stays in VMEM

    @pl.when(l == pl.num_programs(1) - 1)
    def _():
        o_ref[0] = h


def llama_decoder_fused(h, mask3, cos, sin_signed, lw):
    B, S, D = h.shape
    L, H3, _, hd = lw['wqkv_heads'].shape
    H = lw['wo_heads'].shape[1]
    F = lw['w_gate'].shape[2]
    return pl.pallas_call(
        _fused_layers_kernel,
        out_shape=jax.ShapeDtypeStruct((B, S, D), jnp.float32),
        grid=(B, L),
        in_specs=[
            pl.BlockSpec((1, S, D), lambda b, l: (b, 0, 0)),          # inputs_embeds
            pl.BlockSpec((1, 1, S), lambda b, l: (b, 0, 0)),          # attention mask row
            pl.BlockSpec((S, hd), lambda b, l: (0, 0)),               # cos
            pl.BlockSpec((S, hd), lambda b, l: (0, 0)),               # signed sin
            pl.BlockSpec((1, 1, D), lambda b, l: (l, 0, 0)),          # attn_norm
            pl.BlockSpec((1, H3, D, hd), lambda b, l: (l, 0, 0, 0)),  # wqkv (heads, bf16)
            pl.BlockSpec((1, H, hd, D), lambda b, l: (l, 0, 0, 0)),   # wo (heads, bf16)
            pl.BlockSpec((1, 1, D), lambda b, l: (l, 0, 0)),          # mlp_norm
            pl.BlockSpec((1, D, F), lambda b, l: (l, 0, 0)),          # w_gate
            pl.BlockSpec((1, D, F), lambda b, l: (l, 0, 0)),          # w_up
            pl.BlockSpec((1, F, D), lambda b, l: (l, 0, 0)),          # w_down
        ],
        out_specs=pl.BlockSpec((1, S, D), lambda b, l: (b, 0, 0)),
        scratch_shapes=[pltpu.VMEM((S, D), jnp.float32),              # resident residual h
                        pltpu.VMEM((S, S), jnp.float32)],             # additive attn bias
        compiler_params=pltpu.CompilerParams(
            dimension_semantics=("parallel", "arbitrary")),           # both TCs on v7x
    )(h, mask3, cos, sin_signed,
      lw['attn_norm'], lw['wqkv_heads'], lw['wo_heads'],
      lw['mlp_norm'], lw['w_gate'], lw['w_up'], lw['w_down'])


# --------------- fused final RMSNorm + lm_head + cross-entropy kernel ---------------
def _head_ce_kernel(h_ref, lab_ref, fnorm_ref, wlm_ref, loss_ref):
    x = _rms(h_ref[...], fnorm_ref[...])                          # (N, D)
    logits = jnp.dot(x.astype(jnp.bfloat16), wlm_ref[...],
                     preferred_element_type=jnp.float32)          # (N, V) stays in VMEM
    labels = lab_ref[...]                                         # (N, 1) int32 (pre-shifted)
    m = jnp.max(logits, axis=-1, keepdims=True)
    lse = jnp.log(jnp.sum(jnp.exp(logits - m), axis=-1, keepdims=True)) + m
    col = jax.lax.broadcasted_iota(jnp.int32, logits.shape, 1)
    tgt = jnp.sum(jnp.where(col == labels, logits, 0.0), axis=-1, keepdims=True)
    valid = (labels != IGNORE_INDEX).astype(jnp.float32)
    total = jnp.sum((lse - tgt) * valid)
    count = jnp.sum(valid)
    loss_ref[0, 0] = total / jnp.maximum(count, 1.0)              # guarded mean loss
    # TODO(synk): at realistic VOCAB this kernel should grid over (token-tile, vocab-tile)
    #             with an online logsumexp instead of a whole-slab matmul.


def fused_norm_head_ce(h2d, shifted_labels_1d, fnorm, wlm):
    N = h2d.shape[0]
    loss = pl.pallas_call(
        _head_ce_kernel,
        out_shape=jax.ShapeDtypeStruct((1, 1), jnp.float32),
        in_specs=[_VMEM] * 4,
        out_specs=_SMEM,
    )(h2d, shifted_labels_1d.reshape(N, 1).astype(jnp.int32),
      fnorm.reshape(1, -1), wlm)
    return loss[0, 0]


# -------------------------------- JAX glue (model) ----------------------------------
def rope_tables(S, hd):
    inv_freq = 1.0 / (10000.0 ** (jnp.arange(0, hd, 2, dtype=jnp.float32) / hd))
    freqs = jnp.outer(jnp.arange(S, dtype=jnp.float32), inv_freq)  # (S, hd/2)
    cos = jnp.cos(jnp.concatenate([freqs, freqs], axis=-1))
    s = jnp.sin(freqs)
    sin_signed = jnp.concatenate([-s, s], axis=-1)                 # sign of rotate_half folded in
    return cos, sin_signed


def unimodel_moledit_forward(params, p_before_ids, input_enc_fps,
                             inputs_ids, attention_mask, labels):
    """training_multi_modality(): returns the causal-LM loss."""
    # EncoderProjector ("mol_enc"): tiny MLP left to plain jnp — XLA fuses it into the
    # adjacent embedding gather/concat; a pallas_call would cost more in launch overhead.
    pe = params['mol_enc']
    hmid = jax.nn.gelu(input_enc_fps @ pe['w1'] + pe['b1'], approximate=False)
    bio_chem_embeds = (hmid @ pe['w2'] + pe['b2']).reshape(
        input_enc_fps.shape[0], NUM_QUERY_TOKENS, D_MODEL)

    embed = params['embed_tokens']
    prefix_embeds = jnp.concatenate(
        [jnp.take(embed, p_before_ids, axis=0), bio_chem_embeds], axis=1)
    inputs_embeds = jnp.concatenate(
        [prefix_embeds, jnp.take(embed, inputs_ids, axis=0)], axis=1)   # [B, S_raw, D]
    B, S_raw, D = inputs_embeds.shape

    # pad S to a multiple of 8: clean (8,128) tiles for h / scores / qkv; padded
    # positions are masked out (mask=0) and carry -100 labels.
    S_pad = ((S_raw + 7) // 8) * 8
    pad = S_pad - S_raw
    if pad:
        inputs_embeds = jnp.pad(inputs_embeds, ((0, 0), (0, pad), (0, 0)))
        attention_mask = jnp.pad(attention_mask, ((0, 0), (0, pad)))
        labels = jnp.pad(labels, ((0, 0), (0, pad)), constant_values=IGNORE_INDEX)

    cos, sin_signed = rope_tables(S_pad, HEAD_DIM)
    mask3 = attention_mask.astype(jnp.int32).reshape(B, 1, S_pad)

    h = llama_decoder_fused(inputs_embeds.astype(jnp.float32), mask3,
                            cos, sin_signed, params['layers'])

    # causal-LM shift done on the int labels (cheap); logits never leave VMEM.
    shifted = jnp.concatenate(
        [labels[:, 1:], jnp.full((B, 1), IGNORE_INDEX, jnp.int32)], axis=1)
    return fused_norm_head_ce(h.reshape(B * S_pad, D), shifted.reshape(B * S_pad),
                              params['final_norm'], params['lm_head'])


# ------------------------------ deterministic params --------------------------------
def init_params(key):
    keys = jax.random.split(key, 4 + N_LAYERS)

    def normal(k, shape, scale=0.02, dtype=jnp.float32):
        return (scale * jax.random.normal(k, shape, dtype=jnp.float32)).astype(dtype)

    scale_q = 1.0 / (HEAD_DIM ** 0.5)

    def to_heads(w):  # (D, D) -> (H, D, hd)
        return w.reshape(D_MODEL, N_HEADS, HEAD_DIM).transpose(1, 0, 2)

    attn_norm, wqkv_h, wo_h, mlp_norm, wg, wu, wd = [], [], [], [], [], [], []
    for l in range(N_LAYERS):
        lk = jax.random.split(keys[4 + l], 7)
        wq = normal(lk[0], (D_MODEL, D_MODEL))
        wk = normal(lk[1], (D_MODEL, D_MODEL))
        wv = normal(lk[2], (D_MODEL, D_MODEL))
        # fold the 1/sqrt(hd) attention scale into the Q weights.
        wqkv_h.append(jnp.concatenate(
            [to_heads(wq) * scale_q, to_heads(wk), to_heads(wv)],
            axis=0).astype(jnp.bfloat16))                                # (3H, D, hd)
        wo = normal(lk[3], (D_MODEL, D_MODEL))
        wo_h.append(wo.reshape(N_HEADS, HEAD_DIM, D_MODEL).astype(jnp.bfloat16))
        attn_norm.append(jnp.ones((1, D_MODEL), jnp.float32))
        mlp_norm.append(jnp.ones((1, D_MODEL), jnp.float32))
        wg.append(normal(lk[4], (D_MODEL, D_FF), dtype=jnp.bfloat16))
        wu.append(normal(lk[5], (D_MODEL, D_FF), dtype=jnp.bfloat16))
        wd.append(normal(lk[6], (D_FF, D_MODEL), dtype=jnp.bfloat16))

    params = {
        'embed_tokens': normal(keys[0], (VOCAB, D_MODEL)),
        'lm_head': normal(keys[1], (D_MODEL, VOCAB), dtype=jnp.bfloat16),
        'final_norm': jnp.ones((D_MODEL,), jnp.float32),
        'mol_enc': {
            'w1': normal(keys[2], (NUM_MOL_FP, PROJ_HIDDEN)),
            'b1': jnp.zeros((PROJ_HIDDEN,), jnp.float32),
            'w2': normal(keys[3], (PROJ_HIDDEN, NUM_QUERY_TOKENS * D_MODEL)),
            'b2': jnp.zeros((NUM_QUERY_TOKENS * D_MODEL,), jnp.float32),
        },
        'layers': {                                       # stacked per-layer weights
            'attn_norm': jnp.stack(attn_norm),            # (L, 1, D)
            'wqkv_heads': jnp.stack(wqkv_h),              # (L, 3H, D, hd)
            'wo_heads': jnp.stack(wo_h),                  # (L, H, hd, D)
            'mlp_norm': jnp.stack(mlp_norm),              # (L, 1, D)
            'w_gate': jnp.stack(wg),                      # (L, D, F)
            'w_up': jnp.stack(wu),                        # (L, D, F)
            'w_down': jnp.stack(wd),                      # (L, F, D)
        },
    }
    return params


# ------------------------------------- main ------------------------------------------
if __name__ == "__main__":
    key = jax.random.PRNGKey(0)
    pk, ik1, ik2, ik3, fk = jax.random.split(key, 5)
    params = init_params(pk)

    B = 2
    L_BEFORE = 6                                 # tokenized "bos + instruction + <MOL>"
    p_end_lens = [5, 3]                          # "</MOL><SELFIES>" + input selfies + "</SELFIES>"
    label_lens = [4, 4]                          # "<SELFIES>" + target selfies + "</SELFIES> eos"
    batch_max_len = max(pe + la for pe, la in zip(p_end_lens, label_lens))
    prefix_len = L_BEFORE + NUM_QUERY_TOKENS

    p_before_ids = jax.random.randint(ik1, (B, L_BEFORE), 0, VOCAB, dtype=jnp.int32)
    pad_id = 0
    p_end_ids_list = [
        list(map(int, jax.random.randint(jax.random.fold_in(ik2, i),
                                         (p_end_lens[i],), 0, VOCAB)))
        for i in range(B)]
    label_ids_list = [
        list(map(int, jax.random.randint(jax.random.fold_in(ik3, i),
                                         (label_lens[i],), 0, VOCAB)))
        for i in range(B)]

    inputs_list, attn_list, labels_list = [], [], []
    for pe, la in zip(p_end_ids_list, label_ids_list):
        this_len = len(pe) + len(la)
        pad = batch_max_len - this_len
        inputs_list.append(pe + la + [pad_id] * pad)
        attn_list.append([1] * prefix_len + [1] * this_len + [0] * pad)
        labels_list.append([IGNORE_INDEX] * (prefix_len + len(pe)) + la
                           + [IGNORE_INDEX] * pad)

    inputs_ids = jnp.array(inputs_list, dtype=jnp.int32)          # [B, batch_max_len]
    attention_mask = jnp.array(attn_list, dtype=jnp.int32)        # [B, S_total]
    labels = jnp.array(labels_list, dtype=jnp.int32)              # [B, S_total]

    # multi-hot molecule fingerprint (input_enc_fps)
    fp_idx = jax.random.randint(fk, (B, 8), 0, NUM_MOL_FP)
    input_enc_fps = jnp.zeros((B, NUM_MOL_FP), jnp.float32)
    for b in range(B):
        input_enc_fps = input_enc_fps.at[b, fp_idx[b]].set(1.0)

    fwd = jax.jit(unimodel_moledit_forward)
    loss = fwd(params, p_before_ids, input_enc_fps,
               inputs_ids, attention_mask, labels)
    jax.block_until_ready(loss)
    assert bool(jnp.isfinite(loss)), "loss is not finite"
    print("KERNEL_OK")
</pallas_src>

<mosaic_0001>
module attributes {stable_mosaic.version = 11 : i64} {
  func.func @_fused_layers_kernel(%arg0: i32, %arg1: i32, %arg2: memref<1x24x128xf32, #tpu.memory_space<vmem>>, %arg3: memref<1x1x24xi32, #tpu.memory_space<vmem>>, %arg4: memref<24x32xf32, #tpu.memory_space<vmem>>, %arg5: memref<24x32xf32, #tpu.memory_space<vmem>>, %arg6: memref<1x1x128xf32, #tpu.memory_space<vmem>>, %arg7: memref<1x12x128x32xbf16, #tpu.memory_space<vmem>>, %arg8: memref<1x4x32x128xbf16, #tpu.memory_space<vmem>>, %arg9: memref<1x1x128xf32, #tpu.memory_space<vmem>>, %arg10: memref<1x128x256xbf16, #tpu.memory_space<vmem>>, %arg11: memref<1x128x256xbf16, #tpu.memory_space<vmem>>, %arg12: memref<1x256x128xbf16, #tpu.memory_space<vmem>>, %arg13: memref<1x24x128xf32, #tpu.memory_space<vmem>>, %arg14: memref<24x128xf32, #tpu.memory_space<vmem>>, %arg15: memref<24x24xf32, #tpu.memory_space<vmem>>) attributes {dimension_semantics = [#tpu.dimension_semantics<parallel>, #tpu.dimension_semantics<arbitrary>], iteration_bounds = array<i64: 2, 2>, scalar_prefetch = 0 : i64, scratch_operands = 2 : i64, tpu.core_type = #tpu.core_type<tc>, window_params = [{transform_indices = @transform_0, window_bounds = array<i64: 1, 24, 128>}, {transform_indices = @transform_1, window_bounds = array<i64: 1, 1, 24>}, {pipeline_mode = #tpu.pipeline_mode<synchronous>, transform_indices = @transform_2, window_bounds = array<i64: 24, 32>}, {pipeline_mode = #tpu.pipeline_mode<synchronous>, transform_indices = @transform_3, window_bounds = array<i64: 24, 32>}, {transform_indices = @transform_4, window_bounds = array<i64: 1, 1, 128>}, {transform_indices = @transform_5, window_bounds = array<i64: 1, 12, 128, 32>}, {transform_indices = @transform_6, window_bounds = array<i64: 1, 4, 32, 128>}, {transform_indices = @transform_7, window_bounds = array<i64: 1, 1, 128>}, {transform_indices = @transform_8, window_bounds = array<i64: 1, 128, 256>}, {transform_indices = @transform_9, window_bounds = array<i64: 1, 128, 256>}, {transform_indices = @transform_10, window_bounds = array<i64: 1, 256, 128>}, {transform_indices = @transform_11, window_bounds = array<i64: 1, 24, 128>}]} {
    %c0_i32 = arith.constant 0 : i32
    %0 = arith.cmpi eq, %arg1, %c0_i32 : i32
    %1 = arith.extui %0 : i1 to i32
    %c0_i32_0 = arith.constant 0 : i32
    %2 = arith.cmpi ne, %1, %c0_i32_0 : i32
    scf.if %2 {
      %c0_50 = arith.constant 0 : index
      %c0_51 = arith.constant 0 : index
      %c0_52 = arith.constant 0 : index
      %111 = vector.load %arg2[%c0_50, %c0_51, %c0_52] : memref<1x24x128xf32, #tpu.memory_space<vmem>>, vector<1x24x128xf32>
      %112 = vector.shape_cast %111 : vector<1x24x128xf32> to vector<24x128xf32>
      %c0_53 = arith.constant 0 : index
      %c0_54 = arith.constant 0 : index
      %113 = vector.load %arg14[%c0_53, %c0_54] : memref<24x128xf32, #tpu.memory_space<vmem>>, vector<24x128xf32>
      tpu.vector_store %arg14[%c0_53, %c0_54], %112 {strides = array<i32>} : memref<24x128xf32, #tpu.memory_space<vmem>>, vector<24x128xf32>,
      %114 = tpu.iota {dimensions = array<i32: 0>} : vector<24x24xi32>
      %115 = tpu.iota {dimensions = array<i32: 1>} : vector<24x24xi32>
      %c0_55 = arith.constant 0 : index
      %c0_56 = arith.constant 0 : index
      %c0_57 = arith.constant 0 : index
      %116 = vector.load %arg3[%c0_55, %c0_56, %c0_57] : memref<1x1x24xi32, #tpu.memory_space<vmem>>, vector<1x1x24xi32>
      %117 = vector.shape_cast %116 : vector<1x1x24xi32> to vector<1x24xi32>
      %c0_i32_58 = arith.constant 0 : i32
      %118 = vector.broadcast %c0_i32_58 : i32 to vector<1x24xi32>
      %119 = arith.cmpi sgt, %117, %118 : vector<1x24xi32>
      %120 = arith.cmpi sge, %114, %115 : vector<24x24xi32>
      %121 = vector.broadcast %119 : vector<1x24xi1> to vector<24x24xi1>
      %122 = arith.andi %120, %121 : vector<24x24xi1>
      %cst_59 = arith.constant 0.000000e+00 : f32
      %cst_60 = arith.constant -1.000000e+09 : f32
      %123 = vector.broadcast %cst_59 : f32 to vector<24x24xf32>
      %124 = vector.broadcast %cst_60 : f32 to vector<24x24xf32>
      %125 = arith.select %122, %123, %124 : vector<24x24xi1>, vector<24x24xf32>
      %c0_61 = arith.constant 0 : index
      %c0_62 = arith.constant 0 : index
      %126 = vector.load %arg15[%c0_61, %c0_62] : memref<24x24xf32, #tpu.memory_space<vmem>>, vector<24x24xf32>
      tpu.vector_store %arg15[%c0_61, %c0_62], %125 {strides = array<i32>} : memref<24x24xf32, #tpu.memory_space<vmem>>, vector<24x24xf32>,
    } else {
    }
    %c0 = arith.constant 0 : index
    %c0_1 = arith.constant 0 : index
    %3 = vector.load %arg14[%c0, %c0_1] : memref<24x128xf32, #tpu.memory_space<vmem>>, vector<24x128xf32>
    %c0_2 = arith.constant 0 : index
    %c0_3 = arith.constant 0 : index
    %4 = vector.load %arg4[%c0_2, %c0_3] : memref<24x32xf32, #tpu.memory_space<vmem>>, vector<24x32xf32>
    %5 = vector.shape_cast %4 : vector<24x32xf32> to vector<1x24x32xf32>
    %c0_4 = arith.constant 0 : index
    %c0_5 = arith.constant 0 : index
    %6 = vector.load %arg5[%c0_4, %c0_5] : memref<24x32xf32, #tpu.memory_space<vmem>>, vector<24x32xf32>
    %7 = vector.shape_cast %6 : vector<24x32xf32> to vector<1x24x32xf32>
    %c0_6 = arith.constant 0 : index
    %c0_7 = arith.constant 0 : index
    %8 = vector.load %arg15[%c0_6, %c0_7] : memref<24x24xf32, #tpu.memory_space<vmem>>, vector<24x24xf32>
    %9 = vector.shape_cast %8 : vector<24x24xf32> to vector<1x24x24xf32>
    %c0_8 = arith.constant 0 : index
    %c0_9 = arith.constant 0 : index
    %c0_10 = arith.constant 0 : index
    %10 = vector.load %arg6[%c0_8, %c0_9, %c0_10] : memref<1x1x128xf32, #tpu.memory_space<vmem>>, vector<1x1x128xf32>
    %11 = vector.shape_cast %10 : vector<1x1x128xf32> to vector<1x128xf32>
    %12 = arith.mulf %3, %3 : vector<24x128xf32>
    %cst = arith.constant dense<0.000000e+00> : vector<24xf32>
    %13 = vector.multi_reduction <add>, %12, %cst [1] : vector<24x128xf32> to vector<24xf32>
    %14 = vector.shape_cast %13 : vector<24xf32> to vector<24x1xf32>
    %cst_11 = arith.constant 1.280000e+02 : f32
    %15 = vector.broadcast %cst_11 : f32 to vector<24x1xf32>
    %16 = arith.divf %14, %15 : vector<24x1xf32>
    %cst_12 = arith.constant 9.99999997E-7 : f32
    %17 = vector.broadcast %cst_12 : f32 to vector<24x1xf32>
    %18 = arith.addf %16, %17 : vector<24x1xf32>
    %19 = math.rsqrt %18 : vector<24x1xf32>
    %20 = vector.broadcast %19 : vector<24x1xf32> to vector<24x128xf32>
    %21 = arith.mulf %3, %20 : vector<24x128xf32>
    %22 = vector.broadcast %11 : vector<1x128xf32> to vector<24x128xf32>
    %23 = arith.mulf %21, %22 : vector<24x128xf32>
    %24 = arith.truncf %23 : vector<24x128xf32> to vector<24x128xbf16>
    %25 = vector.shape_cast %24 : vector<24x128xbf16> to vector<1x24x128xbf16>
    %26 = vector.shape_cast %25 : vector<1x24x128xbf16> to vector<1x24x128xbf16>
    %27 = vector.broadcast %26 : vector<1x24x128xbf16> to vector<12x24x128xbf16>
    %c0_13 = arith.constant 0 : index
    %c0_14 = arith.constant 0 : index
    %c0_15 = arith.constant 0 : index
    %c0_16 = arith.constant 0 : index
    %28 = vector.load %arg7[%c0_13, %c0_14, %c0_15, %c0_16] : memref<1x12x128x32xbf16, #tpu.memory_space<vmem>>, vector<1x12x128x32xbf16>
    %29 = vector.shape_cast %28 : vector<1x12x128x32xbf16> to vector<12x128x32xbf16>
    "tpu.trace_start"() <{level = 10 : i32, message = "hsd,hdk->hsk"}> : () -> ()
    %cst_17 = arith.constant dense<0.000000e+00> : vector<12x24x32xf32>
    %30 = tpu.matmul %27, %29, %cst_17 {dimension_numbers = #tpu.dot_dimension_numbers<[2], [1], [1], [2], [0, 0, 0, 1, 1, 2], [0], [0]>} : vector<12x24x128xbf16>, vector<12x128x32xbf16>, vector<12x24x32xf32> -> vector<12x24x32xf32>
    "tpu.trace_stop"() : () -> ()
    %31 = vector.extract_strided_slice %30 {offsets = [0, 0, 0], sizes = [4, 24, 32], strides = [1, 1, 1]} : vector<12x24x32xf32> to vector<4x24x32xf32>
    %32 = vector.extract_strided_slice %30 {offsets = [4, 0, 0], sizes = [4, 24, 32], strides = [1, 1, 1]} : vector<12x24x32xf32> to vector<4x24x32xf32>
    %33 = vector.extract_strided_slice %30 {offsets = [8, 0, 0], sizes = [4, 24, 32], strides = [1, 1, 1]} : vector<12x24x32xf32> to vector<4x24x32xf32>
    %34 = vector.extract_strided_slice %31 {offsets = [0, 0, 16], sizes = [4, 24, 16], strides = [1, 1, 1]} : vector<4x24x32xf32> to vector<4x24x16xf32>
    %35 = vector.extract_strided_slice %31 {offsets = [0, 0, 0], sizes = [4, 24, 16], strides = [1, 1, 1]} : vector<4x24x32xf32> to vector<4x24x16xf32>
    %36 = tpu.concatenate %34, %35 in 2 : vector<4x24x16xf32>, vector<4x24x16xf32> -> vector<4x24x32xf32>
    %37 = vector.broadcast %5 : vector<1x24x32xf32> to vector<4x24x32xf32>
    %38 = arith.mulf %31, %37 : vector<4x24x32xf32>
    %39 = vector.broadcast %7 : vector<1x24x32xf32> to vector<4x24x32xf32>
    %40 = arith.mulf %36, %39 : vector<4x24x32xf32>
    %41 = arith.addf %38, %40 : vector<4x24x32xf32>
    %42 = arith.truncf %41 : vector<4x24x32xf32> to vector<4x24x32xbf16>
    %43 = vector.extract_strided_slice %32 {offsets = [0, 0, 16], sizes = [4, 24, 16], strides = [1, 1, 1]} : vector<4x24x32xf32> to vector<4x24x16xf32>
    %44 = vector.extract_strided_slice %32 {offsets = [0, 0, 0], sizes = [4, 24, 16], strides = [1, 1, 1]} : vector<4x24x32xf32> to vector<4x24x16xf32>
    %45 = tpu.concatenate %43, %44 in 2 : vector<4x24x16xf32>, vector<4x24x16xf32> -> vector<4x24x32xf32>
    %46 = vector.broadcast %5 : vector<1x24x32xf32> to vector<4x24x32xf32>
    %47 = arith.mulf %32, %46 : vector<4x24x32xf32>
    %48 = vector.broadcast %7 : vector<1x24x32xf32> to vector<4x24x32xf32>
    %49 = arith.mulf %45, %48 : vector<4x24x32xf32>
    %50 = arith.addf %47, %49 : vector<4x24x32xf32>
    %51 = arith.truncf %50 : vector<4x24x32xf32> to vector<4x24x32xbf16>
    "tpu.trace_start"() <{level = 10 : i32, message = "hqd,hkd->hqk"}> : () -> ()
    %cst_18 = arith.constant dense<0.000000e+00> : vector<4x24x24xf32>
    %52 = tpu.matmul %42, %51, %cst_18 {dimension_numbers = #tpu.dot_dimension_numbers<[2], [2], [1], [1], [0, 0, 0, 1, 1, 1], [0], [0]>} : vector<4x24x32xbf16>, vector<4x24x32xbf16>, vector<4x24x24xf32> -> vector<4x24x24xf32>
    "tpu.trace_stop"() : () -> ()
    %53 = vector.broadcast %9 : vector<1x24x24xf32> to vector<4x24x24xf32>
    %54 = arith.addf %52, %53 : vector<4x24x24xf32>
    %cst_19 = arith.constant dense<0xFF800000> : vector<4x24xf32>
    %55 = vector.multi_reduction <maximumf>, %54, %cst_19 [2] : vector<4x24x24xf32> to vector<4x24xf32>
    %56 = vector.shape_cast %55 : vector<4x24xf32> to vector<4x24x1xf32>
    %57 = vector.broadcast %56 : vector<4x24x1xf32> to vector<4x24x24xf32>
    %58 = arith.subf %54, %57 : vector<4x24x24xf32>
    %59 = math.exp %58 : vector<4x24x24xf32>
    %cst_20 = arith.constant dense<0.000000e+00> : vector<4x24xf32>
    %60 = vector.multi_reduction <add>, %59, %cst_20 [2] : vector<4x24x24xf32> to vector<4x24xf32>
    %61 = vector.shape_cast %60 : vector<4x24xf32> to vector<4x24x1xf32>
    %62 = arith.truncf %59 : vector<4x24x24xf32> to vector<4x24x24xbf16>
    %63 = arith.truncf %33 : vector<4x24x32xf32> to vector<4x24x32xbf16>
    "tpu.trace_start"() <{level = 10 : i32, message = "hqk,hkd->hqd"}> : () -> ()
    %cst_21 = arith.constant dense<0.000000e+00> : vector<4x24x32xf32>
    %64 = tpu.matmul %62, %63, %cst_21 {dimension_numbers = #tpu.dot_dimension_numbers<[2], [1], [1], [2], [0, 0, 0, 1, 1, 2], [0], [0]>} : vector<4x24x24xbf16>, vector<4x24x32xbf16>, vector<4x24x32xf32> -> vector<4x24x32xf32>
    "tpu.trace_stop"() : () -> ()
    %65 = tpu.reciprocal %61 {approx = true} : vector<4x24x1xf32> -> vector<4x24x1xf32>
    %66 = vector.broadcast %65 : vector<4x24x1xf32> to vector<4x24x32xf32>
    %67 = arith.mulf %64, %66 : vector<4x24x32xf32>
    %68 = arith.truncf %67 : vector<4x24x32xf32> to vector<4x24x32xbf16>
    %c0_22 = arith.constant 0 : index
    %c0_23 = arith.constant 0 : index
    %c0_24 = arith.constant 0 : index
    %c0_25 = arith.constant 0 : index
    %69 = vector.load %arg8[%c0_22, %c0_23, %c0_24, %c0_25] : memref<1x4x32x128xbf16, #tpu.memory_space<vmem>>, vector<1x4x32x128xbf16>
    %70 = vector.shape_cast %69 : vector<1x4x32x128xbf16> to vector<4x32x128xbf16>
    "tpu.trace_start"() <{level = 10 : i32, message = "hqd,hde->hqe"}> : () -> ()
    %cst_26 = arith.constant dense<0.000000e+00> : vector<4x24x128xf32>
    %71 = tpu.matmul %68, %70, %cst_26 {dimension_numbers = #tpu.dot_dimension_numbers<[2], [1], [1], [2], [0, 0, 0, 1, 1, 2], [0], [0]>} : vector<4x24x32xbf16>, vector<4x32x128xbf16>, vector<4x24x128xf32> -> vector<4x24x128xf32>
    "tpu.trace_stop"() : () -> ()
    %cst_27 = arith.constant dense<0.000000e+00> : vector<24x128xf32>
    %72 = vector.multi_reduction <add>, %71, %cst_27 [0] : vector<4x24x128xf32> to vector<24x128xf32>
    %73 = arith.addf %3, %72 : vector<24x128xf32>
    %c0_28 = arith.constant 0 : index
    %c0_29 = arith.constant 0 : index
    %c0_30 = arith.constant 0 : index
    %74 = vector.load %arg9[%c0_28, %c0_29, %c0_30] : memref<1x1x128xf32, #tpu.memory_space<vmem>>, vector<1x1x128xf32>
    %75 = vector.shape_cast %74 : vector<1x1x128xf32> to vector<1x128xf32>
    %76 = arith.mulf %73, %73 : vector<24x128xf32>
    %cst_31 = arith.constant dense<0.000000e+00> : vector<24xf32>
    %77 = vector.multi_reduction <add>, %76, %cst_31 [1] : vector<24x128xf32> to vector<24xf32>
    %78 = vector.shape_cast %77 : vector<24xf32> to vector<24x1xf32>
    %cst_32 = arith.constant 1.280000e+02 : f32
    %79 = vector.broadcast %cst_32 : f32 to vector<24x1xf32>
    %80 = arith.divf %78, %79 : vector<24x1xf32>
    %cst_33 = arith.constant 9.99999997E-7 : f32
    %81 = vector.broadcast %cst_33 : f32 to vector<24x1xf32>
    %82 = arith.addf %80, %81 : vector<24x1xf32>
    %83 = math.rsqrt %82 : vector<24x1xf32>
    %84 = vector.broadcast %83 : vector<24x1xf32> to vector<24x128xf32>
    %85 = arith.mulf %73, %84 : vector<24x128xf32>
    %86 = vector.broadcast %75 : vector<1x128xf32> to vector<24x128xf32>
    %87 = arith.mulf %85, %86 : vector<24x128xf32>
    %88 = arith.truncf %87 : vector<24x128xf32> to vector<24x128xbf16>
    %c0_34 = arith.constant 0 : index
    %c0_35 = arith.constant 0 : index
    %c0_36 = arith.constant 0 : index
    %89 = vector.load %arg10[%c0_34, %c0_35, %c0_36] : memref<1x128x256xbf16, #tpu.memory_space<vmem>>, vector<1x128x256xbf16>
    %90 = vector.shape_cast %89 : vector<1x128x256xbf16> to vector<128x256xbf16>
    %cst_37 = arith.constant dense<0.000000e+00> : vector<24x256xf32>
    %91 = tpu.matmul %88, %90, %cst_37 {dimension_numbers = #tpu.dot_dimension_numbers<[1], [0], [0], [1], [0, 0, 1, 1], [], []>} : vector<24x128xbf16>, vector<128x256xbf16>, vector<24x256xf32> -> vector<24x256xf32>
    %c0_38 = arith.constant 0 : index
    %c0_39 = arith.constant 0 : index
    %c0_40 = arith.constant 0 : index
    %92 = vector.load %arg11[%c0_38, %c0_39, %c0_40] : memref<1x128x256xbf16, #tpu.memory_space<vmem>>, vector<1x128x256xbf16>
    %93 = vector.shape_cast %92 : vector<1x128x256xbf16> to vector<128x256xbf16>
    %cst_41 = arith.constant dense<0.000000e+00> : vector<24x256xf32>
    %94 = tpu.matmul %88, %93, %cst_41 {dimension_numbers = #tpu.dot_dimension_numbers<[1], [0], [0], [1], [0, 0, 1, 1], [], []>} : vector<24x128xbf16>, vector<128x256xbf16>, vector<24x256xf32> -> vector<24x256xf32>
    %95 = arith.negf %91 : vector<24x256xf32>
    %96 = math.exp %95 : vector<24x256xf32>
    %cst_42 = arith.constant 1.000000e+00 : f32
    %97 = vector.broadcast %cst_42 : f32 to vector<24x256xf32>
    %98 = arith.addf %97, %96 : vector<24x256xf32>
    %99 = arith.divf %97, %98 : vector<24x256xf32>
    %100 = arith.mulf %91, %99 : vector<24x256xf32>
    %101 = arith.mulf %100, %94 : vector<24x256xf32>
    %102 = arith.truncf %101 : vector<24x256xf32> to vector<24x256xbf16>
    %c0_43 = arith.constant 0 : index
    %c0_44 = arith.constant 0 : index
    %c0_45 = arith.constant 0 : index
    %103 = vector.load %arg12[%c0_43, %c0_44, %c0_45] : memref<1x256x128xbf16, #tpu.memory_space<vmem>>, vector<1x256x128xbf16>
    %104 = vector.shape_cast %103 : vector<1x256x128xbf16> to vector<256x128xbf16>
    %cst_46 = arith.constant dense<0.000000e+00> : vector<24x128xf32>
    %105 = tpu.matmul %102, %104, %cst_46 {dimension_numbers = #tpu.dot_dimension_numbers<[1], [0], [0], [1], [0, 0, 1, 1], [], []>} : vector<24x256xbf16>, vector<256x128xbf16>, vector<24x128xf32> -> vector<24x128xf32>
    %106 = arith.addf %73, %105 : vector<24x128xf32>
    %c0_47 = arith.constant 0 : index
    %c0_48 = arith.constant 0 : index
    %107 = vector.load %arg14[%c0_47, %c0_48] : memref<24x128xf32, #tpu.memory_space<vmem>>, vector<24x128xf32>
    tpu.vector_store %arg14[%c0_47, %c0_48], %106 {strides = array<i32>} : memref<24x128xf32, #tpu.memory_space<vmem>>, vector<24x128xf32>,
    %c1_i32 = arith.constant 1 : i32
    %108 = arith.cmpi eq, %arg1, %c1_i32 : i32
    %109 = arith.extui %108 : i1 to i32
    %c0_i32_49 = arith.constant 0 : i32
    %110 = arith.cmpi ne, %109, %c0_i32_49 : i32
    scf.if %110 {
      %c0_50 = arith.constant 0 : index
      %c0_51 = arith.constant 0 : index
      %c0_52 = arith.constant 0 : index
      %111 = vector.load %arg13[%c0_50, %c0_51, %c0_52] : memref<1x24x128xf32, #tpu.memory_space<vmem>>, vector<1x24x128xf32>
      %112 = vector.shape_cast %111 : vector<1x24x128xf32> to vector<24x128xf32>
      %113 = vector.shape_cast %106 : vector<24x128xf32> to vector<1x24x128xf32>
      tpu.vector_store %arg13[%c0_50, %c0_51, %c0_52], %113 {strides = array<i32>} : memref<1x24x128xf32, #tpu.memory_space<vmem>>, vector<1x24x128xf32>,
    } else {
    }
    return
  }
  func.func @transform_0(%arg0: i32, %arg1: i32) -> (i32, i32, i32) {
    %c0_i32 = arith.constant 0 : i32
    %c0_i32_0 = arith.constant 0 : i32
    %c0_i32_1 = arith.constant 0 : i32
    return %arg0, %c0_i32, %c0_i32_0 : i32, i32, i32
  }
  func.func @transform_1(%arg0: i32, %arg1: i32) -> (i32, i32, i32) {
    %c0_i32 = arith.constant 0 : i32
    %c0_i32_0 = arith.constant 0 : i32
    %c0_i32_1 = arith.constant 0 : i32
    return %arg0, %c0_i32, %c0_i32_0 : i32, i32, i32
  }
  func.func @transform_2(%arg0: i32, %arg1: i32) -> (i32, i32) {
    %c0_i32 = arith.constant 0 : i32
    %c0_i32_0 = arith.constant 0 : i32
    %c0_i32_1 = arith.constant 0 : i32
    return %c0_i32, %c0_i32_0 : i32, i32
  }
  func.func @transform_3(%arg0: i32, %arg1: i32) -> (i32, i32) {
    %c0_i32 = arith.constant 0 : i32
    %c0_i32_0 = arith.constant 0 : i32
    %c0_i32_1 = arith.constant 0 : i32
    return %c0_i32, %c0_i32_0 : i32, i32
  }
  func.func @transform_4(%arg0: i32, %arg1: i32) -> (i32, i32, i32) {
    %c0_i32 = arith.constant 0 : i32
    %c0_i32_0 = arith.constant 0 : i32
    %c0_i32_1 = arith.constant 0 : i32
    return %arg1, %c0_i32, %c0_i32_0 : i32, i32, i32
  }
  func.func @transform_5(%arg0: i32, %arg1: i32) -> (i32, i32, i32, i32) {
    %c0_i32 = arith.constant 0 : i32
    %c0_i32_0 = arith.constant 0 : i32
    %c0_i32_1 = arith.constant 0 : i32
    %c0_i32_2 = arith.constant 0 : i32
    return %arg1, %c0_i32, %c0_i32_0, %c0_i32_1 : i32, i32, i32, i32
  }
  func.func @transform_6(%arg0: i32, %arg1: i32) -> (i32, i32, i32, i32) {
    %c0_i32 = arith.constant 0 : i32
    %c0_i32_0 = arith.constant 0 : i32
    %c0_i32_1 = arith.constant 0 : i32
    %c0_i32_2 = arith.constant 0 : i32
    return %arg1, %c0_i32, %c0_i32_0, %c0_i32_1 : i32, i32, i32, i32
  }
  func.func @transform_7(%arg0: i32, %arg1: i32) -> (i32, i32, i32) {
    %c0_i32 = arith.constant 0 : i32
    %c0_i32_0 = arith.constant 0 : i32
    %c0_i32_1 = arith.constant 0 : i32
    return %arg1, %c0_i32, %c0_i32_0 : i32, i32, i32
  }
  func.func @transform_8(%arg0: i32, %arg1: i32) -> (i32, i32, i32) {
    %c0_i32 = arith.constant 0 : i32
    %c0_i32_0 = arith.constant 0 : i32
    %c0_i32_1 = arith.constant 0 : i32
    return %arg1, %c0_i32, %c0_i32_0 : i32, i32, i32
  }
  func.func @transform_9(%arg0: i32, %arg1: i32) -> (i32, i32, i32) {
    %c0_i32 = arith.constant 0 : i32
    %c0_i32_0 = arith.constant 0 : i32
    %c0_i32_1 = arith.constant 0 : i32
    return %arg1, %c0_i32, %c0_i32_0 : i32, i32, i32
  }
  func.func @transform_10(%arg0: i32, %arg1: i32) -> (i32, i32, i32) {
    %c0_i32 = arith.constant 0 : i32
    %c0_i32_0 = arith.constant 0 : i32
    %c0_i32_1 = arith.constant 0 : i32
    return %arg1, %c0_i32, %c0_i32_0 : i32, i32, i32
  }
  func.func @transform_11(%arg0: i32, %arg1: i32) -> (i32, i32, i32) {
    %c0_i32 = arith.constant 0 : i32
    %c0_i32_0 = arith.constant 0 : i32
    %c0_i32_1 = arith.constant 0 : i32
    return %arg0, %c0_i32, %c0_i32_0 : i32, i32, i32
  }
}

module attributes {stable_mosaic.version = 11 : i64} {
  func.func @_head_ce_kernel(%arg0: memref<48x128xf32, #tpu.memory_space<vmem>>, %arg1: memref<48x1xi32, #tpu.memory_space<vmem>>, %arg2: memref<1x128xf32, #tpu.memory_space<vmem>>, %arg3: memref<128x256xbf16, #tpu.memory_space<vmem>>, %arg4: memref<1x1xf32, #tpu.memory_space<smem>>) attributes {dimension_semantics = [], scalar_prefetch = 0 : i64, scratch_operands = 0 : i64, tpu.core_type = #tpu.core_type<tc>} {
    %c0 = arith.constant 0 : index
    %c0_0 = arith.constant 0 : index
    %0 = vector.load %arg0[%c0, %c0_0] : memref<48x128xf32, #tpu.memory_space<vmem>>, vector<48x128xf32>
    %c0_1 = arith.constant 0 : index
    %c0_2 = arith.constant 0 : index
    %1 = vector.load %arg2[%c0_1, %c0_2] : memref<1x128xf32, #tpu.memory_space<vmem>>, vector<1x128xf32>
    %2 = arith.mulf %0, %0 : vector<48x128xf32>
    %cst = arith.constant dense<0.000000e+00> : vector<48xf32>
    %3 = vector.multi_reduction <add>, %2, %cst [1] : vector<48x128xf32> to vector<48xf32>
    %4 = vector.shape_cast %3 : vector<48xf32> to vector<48x1xf32>
    %cst_3 = arith.constant 1.280000e+02 : f32
    %5 = vector.broadcast %cst_3 : f32 to vector<48x1xf32>
    %6 = arith.divf %4, %5 : vector<48x1xf32>
    %cst_4 = arith.constant 9.99999997E-7 : f32
    %7 = vector.broadcast %cst_4 : f32 to vector<48x1xf32>
    %8 = arith.addf %6, %7 : vector<48x1xf32>
    %9 = math.rsqrt %8 : vector<48x1xf32>
    %10 = vector.broadcast %9 : vector<48x1xf32> to vector<48x128xf32>
    %11 = arith.mulf %0, %10 : vector<48x128xf32>
    %12 = vector.broadcast %1 : vector<1x128xf32> to vector<48x128xf32>
    %13 = arith.mulf %11, %12 : vector<48x128xf32>
    %14 = arith.truncf %13 : vector<48x128xf32> to vector<48x128xbf16>
    %c0_5 = arith.constant 0 : index
    %c0_6 = arith.constant 0 : index
    %15 = vector.load %arg3[%c0_5, %c0_6] : memref<128x256xbf16, #tpu.memory_space<vmem>>, vector<128x256xbf16>
    %cst_7 = arith.constant dense<0.000000e+00> : vector<48x256xf32>
    %16 = tpu.matmul %14, %15, %cst_7 {dimension_numbers = #tpu.dot_dimension_numbers<[1], [0], [0], [1], [0, 0, 1, 1], [], []>} : vector<48x128xbf16>, vector<128x256xbf16>, vector<48x256xf32> -> vector<48x256xf32>
    %c0_8 = arith.constant 0 : index
    %c0_9 = arith.constant 0 : index
    %17 = vector.load %arg1[%c0_8, %c0_9] : memref<48x1xi32, #tpu.memory_space<vmem>>, vector<48x1xi32>
    %cst_10 = arith.constant dense<0xFF800000> : vector<48xf32>
    %18 = vector.multi_reduction <maximumf>, %16, %cst_10 [1] : vector<48x256xf32> to vector<48xf32>
    %19 = vector.shape_cast %18 : vector<48xf32> to vector<48x1xf32>
    %20 = vector.broadcast %19 : vector<48x1xf32> to vector<48x256xf32>
    %21 = arith.subf %16, %20 : vector<48x256xf32>
    %22 = math.exp %21 : vector<48x256xf32>
    %cst_11 = arith.constant dense<0.000000e+00> : vector<48xf32>
    %23 = vector.multi_reduction <add>, %22, %cst_11 [1] : vector<48x256xf32> to vector<48xf32>
    %24 = vector.shape_cast %23 : vector<48xf32> to vector<48x1xf32>
    %25 = math.log %24 : vector<48x1xf32>
    %26 = arith.addf %25, %19 : vector<48x1xf32>
    %27 = tpu.iota {dimensions = array<i32: 1>} : vector<48x256xi32>
    %28 = vector.broadcast %17 : vector<48x1xi32> to vector<48x256xi32>
    %29 = arith.cmpi eq, %27, %28 : vector<48x256xi32>
    %cst_12 = arith.constant 0.000000e+00 : f32
    %30 = vector.broadcast %cst_12 : f32 to vector<48x256xf32>
    %31 = arith.select %29, %16, %30 : vector<48x256xi1>, vector<48x256xf32>
    %cst_13 = arith.constant dense<0.000000e+00> : vector<48xf32>
    %32 = vector.multi_reduction <add>, %31, %cst_13 [1] : vector<48x256xf32> to vector<48xf32>
    %33 = vector.shape_cast %32 : vector<48xf32> to vector<48x1xf32>
    %c-100_i32 = arith.constant -100 : i32
    %34 = vector.broadcast %c-100_i32 : i32 to vector<48x1xi32>
    %35 = arith.cmpi ne, %17, %34 : vector<48x1xi32>
    %36 = arith.extui %35 : vector<48x1xi1> to vector<48x1xi32>
    %37 = arith.sitofp %36 : vector<48x1xi32> to vector<48x1xf32>
    %38 = arith.subf %26, %33 : vector<48x1xf32>
    %39 = arith.mulf %38, %37 : vector<48x1xf32>
    %40 = vector.shape_cast %39 : vector<48x1xf32> to vector<1x48x1xf32>
    %cst_14 = arith.constant dense<0.000000e+00> : vector<1xf32>
    %41 = vector.multi_reduction <add>, %40, %cst_14 [1, 2] : vector<1x48x1xf32> to vector<1xf32>
    %42 = vector.shape_cast %41 : vector<1xf32> to vector<1x1x1xf32>
    %43 = vector.extract %42[0, 0, 0] : f32 from vector<1x1x1xf32>
    %44 = vector.shape_cast %37 : vector<48x1xf32> to vector<1x48x1xf32>
    %cst_15 = arith.constant dense<0.000000e+00> : vector<1xf32>
    %45 = vector.multi_reduction <add>, %44, %cst_15 [1, 2] : vector<1x48x1xf32> to vector<1xf32>
    %46 = vector.shape_cast %45 : vector<1xf32> to vector<1x1x1xf32>
    %47 = vector.extract %46[0, 0, 0] : f32 from vector<1x1x1xf32>
    %cst_16 = arith.constant 1.000000e+00 : f32
    %48 = arith.maximumf %47, %cst_16 : f32
    %49 = arith.divf %43, %48 : f32
    %c0_17 = arith.constant 0 : index
    %c0_18 = arith.constant 0 : index
    %50 = memref.load %arg4[%c0_17, %c0_18] : memref<1x1xf32, #tpu.memory_space<smem>>
    memref.store %49, %arg4[%c0_17, %c0_18] : memref<1x1xf32, #tpu.memory_space<smem>>
    return
  }
}

</mosaic_0001>

<bundles_post_ra>
// kernel: unimodel_moledit_forward.3
= control target key start
LH: loop header
LB: loop body
LE: loop exit
PB: predicated region body
PF: predicated region fallthrough
CT: control target
= control target key end

     0   :  { %s934_s0 = inlined_call_operand.vmem [shape: f32[48,128], index: 0, kind: input, shape index: {}]   ;;  %s935_s1 = inlined_call_operand.vmem [shape: s32[48,1], index: 1, kind: input, shape index: {}]   ;;  %s936_s2 = inlined_call_operand.vmem [shape: f32[1,128], index: 2, kind: input, shape index: {}]   ;;  %s937_s3 = inlined_call_operand.vmem [shape: bf16[128,256], index: 3, kind: input, shape index: {}]   ;;  %s938_s4 = inlined_call_operand.hbm [shape: f32[1,1], index: 4, kind: output, shape index: {}]  }
   0x1   :  { %v662_v0 = vld [vmem:[%s934_s0 + $0x10] sm:$0xff]  ;;  %v667_v1 = vld [vmem:[%s934_s0] sm:$0xff]  ;;  %v672_v2 = vld [vmem:[%s934_s0 + $0x18] sm:$0xff] }
   0x2   :  { %v28_v3 = vmul.f32 %v662_v0, %v662_v0  ;;  %v26_v4 = vmul.f32 %v667_v1, %v667_v1  ;;  %v681_v5 = vld [vmem:[%s934_s0 + $0x8] sm:$0xff]  ;;  %v691_v7 = vld [vmem:[%s934_s0 + $0x20] sm:$0xff]  ;;  %v29_v9 = vmul.f32 %v672_v2, %v672_v2  ;;  %v547_v12 = vld [vmem:[%s937_s3 + $0x14] ss:$8 sps:$4 sm:$0xff]  }
   0x3   :  { %v686_v6 = vld [vmem:[%s934_s0 + $0x28] sm:$0xff]  ;;  %v27_v10 = vmul.f32 %v681_v5, %v681_v5  ;;  %v549_v13 = vld [vmem:[%s937_s3 + $0x10] ss:$8 sps:$4 sm:$0xff]   ;;  %v30_v15 = vmul.f32 %v691_v7, %v691_v7 }
   0x4   :  { %v544_v8 = vld [vmem:[%s937_s3 + $0x4] ss:$8 sps:$4 sm:$0xff]   ;;  %36 = vadd.xlane.f32.xlu1 %v28_v3  ;;  %32 = vadd.xlane.f32.xlu0 %v26_v4  ;;  %v546_v11 = vld [vmem:[%s937_s3] ss:$8 sps:$4 sm:$0xff]   ;;  %v31_v14 = vmul.f32 %v686_v6, %v686_v6 }
   0x5   :  { %180 = vmatprep.subr.bf16.mxu0 %v544_v8  ;;  %516 = vmatprep.subr.bf16.mxu1 %v544_v8 }
   0x6   :  { %181 = vmatpush1.bf16.msra.mxu0 %v546_v11  ;;  %524 = vmatpush1.bf16.msra.mxu1 %v546_v11 }
   0x7   :  { %182 = vmatprep.subr.bf16.mxu0 %v547_v12  ;;  %517 = vmatprep.subr.bf16.mxu1 %v547_v12 }
   0x8   :  { %38 = vadd.xlane.f32.xlu1 %v29_v9  ;;  %34 = vadd.xlane.f32.xlu0 %v27_v10 }
   0x9   :  { %9 = vsyncpa [#allocation3], 0  ;;  %v550_v16 = vld [vmem:[%s937_s3 + $0x24] ss:$8 sps:$4 sm:$0xff]   ;;  %v552_v17 = vld [vmem:[%s937_s3 + $0x20] ss:$8 sps:$4 sm:$0xff]  }
   0xa   :  { %183 = vmatpush1.bf16.msra.mxu0 %v549_v13  ;;  %525 = vmatpush1.bf16.msra.mxu1 %v549_v13  ;;  %v553_v18 = vld [vmem:[%s937_s3 + $0x34] ss:$8 sps:$4 sm:$0xff]   ;;  %v555_v19 = vld [vmem:[%s937_s3 + $0x30] ss:$8 sps:$4 sm:$0xff]   ;;  %v556_v20 = vld [vmem:[%s937_s3 + $0x44] ss:$8 sps:$4 sm:$0xff]  }
   0xb   :  { %184 = vmatprep.subr.bf16.mxu0 %v550_v16  ;;  %518 = vmatprep.subr.bf16.mxu1 %v550_v16  ;;  %v558_v21 = vld [vmem:[%s937_s3 + $0x40] ss:$8 sps:$4 sm:$0xff]   ;;  %v559_v22 = vld [vmem:[%s937_s3 + $0x54] ss:$8 sps:$4 sm:$0xff]   ;;  %v561_v23 = vld [vmem:[%s937_s3 + $0x50] ss:$8 sps:$4 sm:$0xff]  }
   0xc   :  { %42 = vadd.xlane.f32.xlu1 %v31_v14  ;;  %40 = vadd.xlane.f32.xlu0 %v30_v15  ;;  %v562_v24 = vld [vmem:[%s937_s3 + $0x64] ss:$8 sps:$4 sm:$0xff]   ;;  %v564_v25 = vld [vmem:[%s937_s3 + $0x60] ss:$8 sps:$4 sm:$0xff]   ;;  %v565_v26 = vld [vmem:[%s937_s3 + $0x74] ss:$8 sps:$4 sm:$0xff]  }
   0xd   :  { %v630_v27 = vmov 0   ;;  %v567_v28 = vld [vmem:[%s937_s3 + $0x70] ss:$8 sps:$4 sm:$0xff]   ;;  %v493_v51 = vld [vmem:[%s936_s2] ss:$0 sm:$0xff]  ;;  %vm432_vm15 = vcmask 7168  }
   0xe   :  { %185 = vmatpush1.bf16.msra.mxu0 %v552_v17  ;;  %526 = vmatpush1.bf16.msra.mxu1 %v552_v17  ;;  %s632_s18 = smov 1.0   ;;  %s618_s24 = scalar_lea.hbm %s938_s4, 16 }
   0xf   :  { %186 = vmatprep.subr.bf16.mxu0 %v553_v18  ;;  %519 = vmatprep.subr.bf16.mxu1 %v553_v18  ;;  %p619_p0 = scmp.ne.s32.totalorder %s938_s4, %s618_s24  ;;  %p622_p1 = scmp.lt.u32.totalorder %s618_s24, %s938_s4 }
  0x10   :  { %212 = vmatprep.mubr.bf16.mxu0 %v630_v27  ;;  %222 = vmatprep.mubr.bf16.mxu1 %v630_v27 }
  0x11   :  { %543 = vset.pattern.permute.xlu1 %v630_v27  ;;  %542 = vset.pattern.permute.xlu0 %v630_v27  ;;  %p624_p2 = pnand %p622_p1, %p619_p0 }
  0x12   :  { %187 = vmatpush1.bf16.msra.mxu0 %v555_v19  ;;  %527 = vmatpush1.bf16.msra.mxu1 %v555_v19 }
  0x13   :  { %188 = vmatprep.subr.bf16.mxu0 %v556_v20  ;;  %520 = vmatprep.subr.bf16.mxu1 %v556_v20 }
  0x16   :  { %189 = vmatpush1.bf16.msra.mxu0 %v558_v21  ;;  %528 = vmatpush1.bf16.msra.mxu1 %v558_v21 }
  0x17   :  { %190 = vmatprep.subr.bf16.mxu0 %v559_v22  ;;  %521 = vmatprep.subr.bf16.mxu1 %v559_v22 }
  0x1a   :  { %191 = vmatpush1.bf16.msra.mxu0 %v561_v23  ;;  %529 = vmatpush1.bf16.msra.mxu1 %v561_v23  ;;  %v797_v23 = vld [vmem:[%s935_s1 + $0x8] sm:$0xff] }
  0x1b   :  { %192 = vmatprep.subr.bf16.mxu0 %v562_v24  ;;  %522 = vmatprep.subr.bf16.mxu1 %v562_v24  ;;  %v803_v24 = vld [vmem:[%s935_s1 + $0x10] sm:$0xff]  ;;  %vm403_vm13 = vcmp.ne.s32.totalorder %v797_v23, 4294967196 }
  0x1c   :  { %vm404_vm14 = vcmp.ne.s32.totalorder %v803_v24, 4294967196 }
  0x1e   :  { %193 = vmatpush1.bf16.msra.mxu0 %v564_v25  ;;  %530 = vmatpush1.bf16.msra.mxu1 %v564_v25  ;;  %v809_v25 = vld [vmem:[%s935_s1] sm:$0xff] }
  0x1f   :  { %194 = vmatprep.subr.bf16.mxu0 %v565_v26  ;;  %523 = vmatprep.subr.bf16.mxu1 %v565_v26  ;;  %v814_v26 = vld [vmem:[%s935_s1 + $0x18] sm:$0xff]  ;;  %vm402_vm12 = vcmp.ne.s32.totalorder %v809_v25, 4294967196 }
  0x22   :  { %195 = vmatpush1.bf16.msra.mxu0 %v567_v28  ;;  %531 = vmatpush1.bf16.msra.mxu1 %v567_v28  ;;  %v827_v28 = vld [vmem:[%s935_s1 + $0x28] sm:$0xff] }
  0x91   :  { %v37_v29 = vpop.xlane.xlu1 %36  ;;  %v33_v30 = vpop.xlane.xlu0 %32 }
  0x92   :  { %v47_v31 = vmul.f32 0.0078125, %v37_v29  ;;  %v45_v32 = vmul.f32 0.0078125, %v33_v30  ;;  %v339_v29 = vlaneseq }
  0x94   :  { %v53_v33 = vadd.f32 1e-06, %v47_v31  ;;  %v51_v34 = vadd.f32 1e-06, %v45_v32 }
  0x95   :  { %v39_v35 = vpop.xlane.xlu1 %38  ;;  %v35_v36 = vpop.xlane.xlu0 %34 }
  0x96   :  { %568 = vrsqrt.f32 %v53_v33  ;;  %v48_v37 = vmul.f32 0.0078125, %v39_v35  ;;  %v46_v38 = vmul.f32 0.0078125, %v35_v36 }
  0x97   :  { %570 = vrsqrt.f32 %v51_v34  ;;  %v838_v34 = vand.u32 127, %v339_v29 }
  0x98   :  { %v54_v39 = vadd.f32 1e-06, %v48_v37  ;;  %v52_v40 = vadd.f32 1e-06, %v46_v38 }
  0x99   :  { %v43_v41 = vpop.xlane.xlu1 %42  ;;  %v41_v42 = vpop.xlane.xlu0 %40 }
  0x9a   :  { %572 = vrsqrt.f32 %v54_v39  ;;  %v50_v43 = vmul.f32 0.0078125, %v43_v41  ;;  %v49_v44 = vmul.f32 0.0078125, %v41_v42 }
  0x9b   :  { %574 = vrsqrt.f32 %v52_v40 }
  0x9c   :  { %v56_v45 = vadd.f32 1e-06, %v50_v43  ;;  %v55_v46 = vadd.f32 1e-06, %v49_v44 }
  0x9e   :  { %576 = vrsqrt.f32 %v56_v45  ;;  %v853_v45 = vadd.s32 128, %v838_v34 }
  0x9f   :  { %578 = vrsqrt.f32 %v55_v46 }
  0xa0   :  { %v569_v47 = vpop.eup %568 }
  0xa1   :  { %v571_v48 = vpop.eup %570  ;;  %v65_v49 = vmul.f32 %v569_v47, %v662_v0 }
  0xa2   :  { %v63_v52 = vmul.f32 %v571_v48, %v667_v1 }
  0xa3   :  { %v77_v55 = vmul.f32 %v493_v51, %v65_v49 }
  0xa4   :  { %v573_v50 = vpop.eup %572  ;;  %v75_v59 = vmul.f32 %v493_v51, %v63_v52 }
  0xa5   :  { %v575_v53 = vpop.eup %574  ;;  %v66_v54 = vmul.f32 %v573_v50, %v672_v2 }
  0xa6   :  { %v64_v56 = vmul.f32 %v575_v53, %v681_v5 }
  0xa7   :  { %v78_v57 = vmul.f32 %v493_v51, %v66_v54 }
  0xa8   :  { %v577_v58 = vpop.eup %576  ;;  %v76_v60 = vmul.f32 %v493_v51, %v64_v56 }
  0xa9   :  { %v579_v61 = vpop.eup %578  ;;  %v82_v62 = vpack.c.bf16 %v78_v57, %v77_v55  ;;  %v68_v63 = vmul.f32 %v577_v58, %v686_v6 }
  0xaa   :  { %v81_v0 = vpack.c.bf16 %v76_v60, %v75_v59  ;;  %v67_v3 = vmul.f32 %v579_v61, %v691_v7 }
  0xab   :  { %223 = vmatmul.mubr.bf16.vlgmr.msra.gmra.mrb[0].mxu1 %v82_v62  ;;  %v80_v4 = vmul.f32 %v493_v51, %v68_v63 }
  0xac   :  { %213 = vmatmul.mubr.bf16.vlgmr.msra.gmra.mrb[0].mxu0 %v81_v0  ;;  %232 = vmatprep.mubr.bf16.mxu1 %v630_v27  ;;  %v79_v1 = vmul.f32 %v493_v51, %v67_v3  ;;  %v821_v27 = vld [vmem:[%s935_s1 + $0x20] sm:$0xff] }
  0xae   :  { %v83_v2 = vpack.c.bf16 %v80_v4, %v79_v1 }
  0xb3   :  { %233 = vmatmul.mubr.bf16.gmra.mrb[4].mxu1 %v83_v2 }
 0x17e   :  { %v758_v8 = vpop.f32.mrb[0].mxu1 }
 0x17f   :  { %v760_v5 = vpop.f32.mrb[0].mxu0  ;;  %v762_v9 = vpop.f32.mrb[1].mxu1 }
 0x180   :  { %v764_v10 = vpop.f32.mrb[1].mxu0  ;;  %v766_v11 = vpop.f32.mrb[2].mxu1  ;;  %v255_v6 = vmax.f32 %v758_v8, %v762_v9 }
 0x181   :  { %v770_v7 = vpop.f32.mrb[2].mxu0  ;;  %v772_v12 = vpop.f32.mrb[3].mxu1  ;;  %v249_v13 = vmax.f32 %v760_v5, %v764_v10 }
 0x182   :  { %v776_v14 = vpop.f32.mrb[3].mxu0  ;;  %v258_v15 = vmax.f32 %v766_v11, %v772_v12 }
 0x183   :  { %250 = vmax.xlane.f32.xlu0 %v249_v13  ;;  %v252_v16 = vmax.f32 %v770_v7, %v776_v14 }
 0x185   :  { %253 = vmax.xlane.f32.xlu1 %v252_v16 }
 0x186   :  { %v782_v17 = vpop.f32.mrb[4].mxu1 }
 0x187   :  { %256 = vmax.xlane.f32.xlu0 %v255_v6  ;;  %v784_v18 = vpop.f32.mrb[5].mxu1 }
 0x188   :  { %v261_v19 = vmax.f32 %v782_v17, %v784_v18  ;;  %v788_v20 = vpop.f32.mrb[6].mxu1 }
 0x189   :  { %259 = vmax.xlane.f32.xlu1 %v258_v15  ;;  %v790_v21 = vpop.f32.mrb[7].mxu1 }
 0x18a   :  { %v264_v22 = vmax.f32 %v788_v20, %v790_v21 }
 0x18b   :  { %262 = vmax.xlane.f32.xlu0 %v261_v19 }
 0x19a   :  { %346 = vperm.xlu1 %543, %v797_v23  }
 0x19e   :  { %349 = vperm.xlu1 %543, %v803_v24  }
 0x1a1   :  { %343 = vperm.xlu0 %542, %v809_v25  }
 0x1a2   :  { %352 = vperm.xlu1 %543, %v814_v26  }
 0x1a6   :  { %355 = vperm.xlu1 %543, %v821_v27  }
 0x1ca   :  { %265 = vmax.xlane.f32.xlu1 %v264_v22 }
 0x1db   :  { %358 = vperm.xlu1 %543, %v827_v28  }
 0x210   :  { %v830_v30 = vpop.xlane.xlu0 %250 }
 0x211   :  { %v267_v31 = vsub.f32 %v760_v5, %v830_v30  ;;  %v268_v32 = vsub.f32 %v764_v10, %v830_v30 }
 0x212   :  { %v836_v33 = vpop.xlane.xlu1 %253 }
 0x213   :  { %v279_v35 = vmul.f32 1.442695, %v267_v31  ;;  %v281_v36 = vmul.f32 1.442695, %v268_v32  ;;  %v269_v37 = vsub.f32 %v770_v7, %v836_v33  ;;  %v270_v38 = vsub.f32 %v776_v14, %v836_v33 }
 0x214   :  { %v844_v39 = vpop.xlane.xlu0 %256 }
 0x215   :  { %580 = vpow2.f32 %v279_v35  ;;  %v283_v40 = vmul.f32 1.442695, %v269_v37  ;;  %v285_v41 = vmul.f32 1.442695, %v270_v38  ;;  %v271_v42 = vsub.f32 %v758_v8, %v844_v39 }
 0x216   :  { %582 = vpow2.f32 %v281_v36  ;;  %v272_v43 = vsub.f32 %v762_v9, %v844_v39  ;;  %v850_v44 = vpop.xlane.xlu1 %259 }
 0x217   :  { %584 = vpow2.f32 %v283_v40  ;;  %v287_v46 = vmul.f32 1.442695, %v271_v42  ;;  %v273_v47 = vsub.f32 %v766_v11, %v850_v44  ;;  %v274_v48 = vsub.f32 %v772_v12, %v850_v44 }
 0x218   :  { %586 = vpow2.f32 %v285_v41  ;;  %v289_v49 = vmul.f32 1.442695, %v272_v43  ;;  %v859_v50 = vpop.xlane.xlu0 %262 }
 0x219   :  { %588 = vpow2.f32 %v287_v46  ;;  %v291_v51 = vmul.f32 1.442695, %v273_v47  ;;  %v293_v52 = vmul.f32 1.442695, %v274_v48  ;;  %v275_v53 = vsub.f32 %v782_v17, %v859_v50 }
 0x21a   :  { %590 = vpow2.f32 %v289_v49  ;;  %v276_v54 = vsub.f32 %v784_v18, %v859_v50  ;;  %v347_v55 = vpop.permute.xlu1 %346 }
 0x21b   :  { %592 = vpow2.f32 %v291_v51  ;;  %v295_v56 = vmul.f32 1.442695, %v275_v53  ;;  %vm362_vm0 = vcmp.eq.s32.totalorder %v838_v34, %v347_v55  ;;  %vm363_vm1 = vcmp.eq.s32.totalorder %v853_v45, %v347_v55 }
 0x21c   :  { %594 = vpow2.f32 %v293_v52  ;;  %v297_v57 = vmul.f32 1.442695, %v276_v54  ;;  %v374_v58 = vsel %vm362_vm0, %v770_v7, 0.0  ;;  %v375_v59 = vsel %vm363_vm1, %v776_v14, 0.0 }
 0x21d   :  { %596 = vpow2.f32 %v295_v56  ;;  %v869_v60 = vadd.f32 %v375_v59, %v374_v58  ;;  %vm405_vm0 = vcmp.ne.s32.totalorder %v814_v26, 4294967196  ;;  %vm406_vm1 = vcmp.ne.s32.totalorder %v821_v27, 4294967196 }
 0x21e   :  { %598 = vpow2.f32 %v297_v57  ;;  %v350_v61 = vpop.permute.xlu1 %349 }
 0x21f   :  { %v581_v62 = vpop.eup %580  ;;  %vm364_vm2 = vcmp.eq.s32.totalorder %v838_v34, %v350_v61  ;;  %vm365_vm3 = vcmp.eq.s32.totalorder %v853_v45, %v350_v61 }
 0x220   :  { %v583_v63 = vpop.eup %582  ;;  %v344_v0 = vpop.permute.xlu0 %343  ;;  %v376_v3 = vsel %vm364_vm2, %v758_v8, 0.0  ;;  %v377_v4 = vsel %vm365_vm3, %v762_v9, 0.0  ;;  %vm407_vm2 = vcmp.ne.s32.totalorder %v827_v28, 4294967196 }
 0x221   :  { %v585_v1 = vpop.eup %584  ;;  %vm360_vm4 = vcmp.eq.s32.totalorder %v838_v34, %v344_v0  ;;  %vm361_vm5 = vcmp.eq.s32.totalorder %v853_v45, %v344_v0  ;;  %v303_v2 = vadd.f32 %v583_v63, %v581_v62  ;;  %v390_v6 = vadd.f32 %v377_v4, %v376_v3 }
 0x222   :  { %v587_v7 = vpop.eup %586  ;;  %v353_v13 = vpop.permute.xlu1 %352  ;;  %v372_v14 = vsel %vm360_vm4, %v760_v5, 0.0  ;;  %v373_v15 = vsel %vm361_vm5, %v764_v10, 0.0 }
 0x223   :  { %v589_v16 = vpop.eup %588  ;;  %vm366_vm6 = vcmp.eq.s32.totalorder %v838_v34, %v353_v13  ;;  %vm367_vm7 = vcmp.eq.s32.totalorder %v853_v45, %v353_v13  ;;  %304 = vadd.xlane.f32.xlu1 %v303_v2  ;;  %v306_v8 = vadd.f32 %v587_v7, %v585_v1  ;;  %v384_v9 = vadd.f32 %v373_v15, %v372_v14 }
 0x224   :  { %v591_v19 = vpop.eup %590  ;;  %v378_v22 = vsel %vm366_vm6, %v766_v11, 0.0  ;;  %v379_v29 = vsel %vm367_vm7, %v772_v12, 0.0 }
 0x225   :  { %v593_v31 = vpop.eup %592  ;;  %307 = vadd.xlane.f32.xlu0 %v306_v8  ;;  %v309_v32 = vadd.f32 %v591_v19, %v589_v16  ;;  %v393_v35 = vadd.f32 %v379_v29, %v378_v22 }
 0x226   :  { %v595_v5 = vpop.eup %594  ;;  %v356_v36 = vpop.permute.xlu1 %355 }
 0x227   :  { %v597_v10 = vpop.eup %596  ;;  %vm368_vm8 = vcmp.eq.s32.totalorder %v838_v34, %v356_v36  ;;  %vm369_vm9 = vcmp.eq.s32.totalorder %v853_v45, %v356_v36  ;;  %310 = vadd.xlane.f32.xlu1 %v309_v32  ;;  %v312_v37 = vadd.f32 %v595_v5, %v593_v31 }
 0x228   :  { %v599_v38 = vpop.eup %598  ;;  %v380_v40 = vsel %vm368_vm8, %v782_v17, 0.0  ;;  %v381_v11 = vsel %vm369_vm9, %v784_v18, 0.0 }
 0x229   :  { %v315_v41 = vadd.f32 %v599_v38, %v597_v10  ;;  %v396_v12 = vadd.f32 %v381_v11, %v380_v40 }
 0x22b   :  { %313 = vadd.xlane.f32.xlu1 %v312_v37  ;;  %316 = vadd.xlane.f32.xlu0 %v315_v41 }
 0x22f   :  { %385 = vadd.xlane.f32.xlu0 %v384_v9 }
 0x233   :  { %391 = vadd.xlane.f32.xlu0 %v390_v6 }
 0x237   :  { %397 = vadd.xlane.f32.xlu0 %v396_v12 }
 0x257   :  { %v887_v42 = vpop.xlane.xlu1 %265 }
 0x258   :  { %v277_v43 = vsub.f32 %v788_v20, %v887_v42  ;;  %v278_v46 = vsub.f32 %v790_v21, %v887_v42 }
 0x25a   :  { %v299_v47 = vmul.f32 1.442695, %v277_v43  ;;  %v301_v48 = vmul.f32 1.442695, %v278_v46 }
 0x25b   :  { %v359_v17 = vpop.permute.xlu1 %358 }
 0x25c   :  { %600 = vpow2.f32 %v299_v47  ;;  %vm370_vm10 = vcmp.eq.s32.totalorder %v838_v34, %v359_v17  ;;  %vm371_vm11 = vcmp.eq.s32.totalorder %v853_v45, %v359_v17  ;;  %v631_v34 = vmov 0.0  }
 0x25d   :  { %602 = vpow2.f32 %v301_v48  ;;  %v382_v18 = vsel %vm370_vm10, %v788_v20, 0.0  ;;  %v383_v49 = vsel %vm371_vm11, %v790_v21, 0.0  ;;  %v510_v45 = vsel %vm402_vm12, 1.0, %v631_v34 }
 0x25e   :  { %v399_v51 = vadd.f32 %v383_v49, %v382_v18  ;;  %v453_v20 = vsel %vm432_vm15, %v510_v45, 0.0  ;;  %v512_v21 = vsel %vm404_vm14, 1.0, %v631_v34  ;;  %v511_v55 = vsel %vm403_vm13, 1.0, %v631_v34 }
 0x25f   :  { %v456_v56 = vsel %vm432_vm15, %v512_v21, 0.0  ;;  %v454_v57 = vsel %vm432_vm15, %v511_v55, 0.0  ;;  %v513_v25 = vsel %vm405_vm0, 1.0, %v631_v34  ;;  %v514_v59 = vsel %vm406_vm1, 1.0, %v631_v34 }
 0x260   :  { %v455_v58 = vadd.f32 %v454_v57, %v453_v20  ;;  %v458_v24 = vsel %vm432_vm15, %v513_v25, 0.0  ;;  %v460_v61 = vsel %vm432_vm15, %v514_v59, 0.0  ;;  %v515_v62 = vsel %vm407_vm2, 1.0, %v631_v34 }
 0x261   :  { %v462_v26 = vsel %vm432_vm15, %v515_v62, 0.0 }
 0x262   :  { %v457_v23 = vadd.f32 %v456_v56, %v455_v58 }
 0x266   :  { %v601_v52 = vpop.eup %600 }
 0x267   :  { %v603_v53 = vpop.eup %602 }
 0x268   :  { %v318_v54 = vadd.f32 %v603_v53, %v601_v52 }
 0x26a   :  { %319 = vadd.xlane.f32.xlu1 %v318_v54 }
 0x26e   :  { %388 = vadd.xlane.f32.xlu1 %v869_v60  ;;  %v459_v60 = vadd.f32 %v458_v24, %v457_v23 }
 0x270   :  { %v461_v63 = vadd.f32 %v460_v61, %v459_v60 }
 0x272   :  { %394 = vadd.xlane.f32.xlu1 %v393_v35  ;;  %v463_v0 = vadd.f32 %v462_v26, %v461_v63 }
 0x276   :  { %400 = vadd.xlane.f32.xlu1 %v399_v51 }
 0x27a   :  { %464 = vadd.xlane.f32.xlu1 %v463_v0 }
 0x2b0   :  { %v305_v3 = vpop.xlane.xlu1 %304 }
 0x2b1   :  { %604 = vlog2.f32 %v305_v3 }
 0x2b2   :  { %v308_v27 = vpop.xlane.xlu0 %307 }
 0x2b4   :  { %v311_v4 = vpop.xlane.xlu1 %310 }
 0x2b5   :  { %606 = vlog2.f32 %v311_v4 }
 0x2b6   :  { %608 = vlog2.f32 %v308_v27 }
 0x2b8   :  { %v317_v1 = vpop.xlane.xlu0 %316  ;;  %v314_v28 = vpop.xlane.xlu1 %313 }
 0x2b9   :  { %610 = vlog2.f32 %v317_v1 }
 0x2ba   :  { %612 = vlog2.f32 %v314_v28 }
 0x2bb   :  { %v605_v2 = vpop.eup %604 }
 0x2bc   :  { %v322_v7 = vmul.f32 0.6931472, %v605_v2  ;;  %v386_v15 = vpop.xlane.xlu0 %385 }
 0x2be   :  { %v333_v16 = vadd.f32 %v322_v7, %v830_v30 }
 0x2bf   :  { %v607_v6 = vpop.eup %606 }
 0x2c0   :  { %v326_v13 = vmul.f32 0.6931472, %v607_v6  ;;  %v609_v14 = vpop.eup %608  ;;  %v420_v31 = vsub.f32 %v333_v16, %v386_v15  ;;  %v392_v35 = vpop.xlane.xlu0 %391 }
 0x2c1   :  { %v324_v9 = vmul.f32 0.6931472, %v609_v14 }
 0x2c2   :  { %v335_v19 = vadd.f32 %v326_v13, %v844_v39  ;;  %v426_v38 = vmul.f32 %v510_v45, %v420_v31 }
 0x2c3   :  { %v611_v8 = vpop.eup %610  ;;  %v334_v10 = vadd.f32 %v324_v9, %v836_v33 }
 0x2c4   :  { %v613_v22 = vpop.eup %612  ;;  %v330_v32 = vmul.f32 0.6931472, %v611_v8  ;;  %v422_v36 = vsub.f32 %v335_v19, %v392_v35  ;;  %v433_v43 = vsel %vm432_vm15, %v426_v38, 0.0  ;;  %v398_v46 = vpop.xlane.xlu0 %397 }
 0x2c5   :  { %v328_v5 = vmul.f32 0.6931472, %v613_v22 }
 0x2c6   :  { %v337_v11 = vadd.f32 %v330_v32, %v859_v50  ;;  %v428_v30 = vmul.f32 %v512_v21, %v422_v36 }
 0x2c7   :  { %v336_v12 = vadd.f32 %v328_v5, %v850_v44 }
 0x2c8   :  { %v424_v17 = vsub.f32 %v337_v11, %v398_v46  ;;  %v436_v33 = vsel %vm432_vm15, %v428_v30, 0.0 }
 0x2ca   :  { %v430_v54 = vmul.f32 %v514_v59, %v424_v17 }
 0x2f7   :  { %v320_v29 = vpop.xlane.xlu1 %319 }
 0x2f8   :  { %614 = vlog2.f32 %v320_v29 }
 0x2fb   :  { %v389_v37 = vpop.xlane.xlu1 %388 }
 0x2fc   :  { %v421_v40 = vsub.f32 %v334_v10, %v389_v37 }
 0x2fe   :  { %v427_v41 = vmul.f32 %v511_v55, %v421_v40  ;;  %v440_v55 = vsel %vm432_vm15, %v430_v54, 0.0 }
 0x2ff   :  { %v395_v39 = vpop.xlane.xlu1 %394 }
 0x300   :  { %v434_v47 = vsel %vm432_vm15, %v427_v41, 0.0  ;;  %v423_v48 = vsub.f32 %v336_v12, %v395_v39 }
 0x301   :  { %v435_v18 = vadd.f32 %v434_v47, %v433_v43 }
 0x302   :  { %v615_v49 = vpop.eup %614  ;;  %v429_v51 = vmul.f32 %v513_v25, %v423_v48 }
 0x303   :  { %v332_v52 = vmul.f32 0.6931472, %v615_v49  ;;  %v437_v53 = vadd.f32 %v436_v33, %v435_v18  ;;  %v401_v34 = vpop.xlane.xlu1 %400 }
 0x304   :  { %v438_v50 = vsel %vm432_vm15, %v429_v51, 0.0 }
 0x305   :  { %v338_v44 = vadd.f32 %v332_v52, %v887_v42  ;;  %v439_v45 = vadd.f32 %v438_v50, %v437_v53 }
 0x307   :  { %v425_v20 = vsub.f32 %v338_v44, %v401_v34  ;;  %v441_v56 = vadd.f32 %v440_v55, %v439_v45  ;;  %v465_v23 = vpop.xlane.xlu1 %464 }
 0x308   :  { %v466_v25 = vrot.slane %v465_v23, 4 }
 0x309   :  { %v431_v21 = vmul.f32 %v515_v62, %v425_v20 }
 0x30a   :  { %v467_v24 = vadd.f32 %v466_v25, %v465_v23 }
 0x30b   :  { %v442_v57 = vsel %vm432_vm15, %v431_v21, 0.0 }
 0x30c   :  { %v443_v58 = vadd.f32 %v442_v57, %v441_v56  ;;  %v468_v60 = vrot.slane %v467_v24, 2 }
 0x30e   :  { %444 = vadd.xlane.f32.xlu0 %v443_v58  ;;  %v469_v26 = vadd.f32 %v468_v60, %v467_v24 }
 0x310   :  { %v470_v3 = vrot.slane %v469_v26, 1 }
 0x312   :  { %v471_v27 = vadd.f32 %v470_v3, %v469_v26 }
 0x39b   :  { %v445_v61 = vpop.xlane.xlu0 %444 }
 0x39c   :  { %v446_v63 = vrot.slane %v445_v61, 4 }
 0x39e   :  { %v447_v59 = vadd.f32 %v446_v63, %v445_v61 }
 0x3a0   :  { %v448_v42 = vrot.slane %v447_v59, 2 }
 0x3a2   :  { %v449_v0 = vadd.f32 %v448_v42, %v447_v59 }
 0x3a4   :  { %v450_v4 = vrot.slane %v449_v0, 1 }
 0x3a6   :  { %v451_v62 = vadd.f32 %v450_v4, %v449_v0 }
 0x3a8   :  { %532 = vpush %v451_v62 }
 0x3a9   :  { %534 = vpush %v471_v27 }
 0x3d9   :  { %s533_s1 = spop %532 }
 0x3da   :  { %s535_s17 = spop %534 }
 0x3db   :  { %s473_s19 = smax.f32 %s632_s18, %s535_s17 }
 0x3dc   :  { %v474_v1 = vstv %s473_s19 }
 0x3dd   :  { %616 = vrcp.f32 %v474_v1 }
 0x3e7   :  { %v617_v28 = vpop.eup %616 }
 0x3e8   :  { %536 = vpush %v617_v28 }
 0x419   :  { %s537_s20 = spop %536 }
 0x41a   :  { %s477_s21 = smul.f32 %s537_s20, %s533_s1 }
 0x41c   :  { %479 = sst [smem:[#allocation2]] %s477_s21 }
 0x41d   :  { %627 = shalt.err (!%p624_p2)
}
 0x41e   :  { %s633_s29 = smov [#allocation2]  }
 0x41f   :  { %487 = dma.smem_to_hbm %s633_s29, 16, %s938_s4, [#allocation3]  }
 0x420   :  { %628 = dma.done.wait [#allocation3], 16  }
 0x421   :  { %629 = vsyncadd [#allocation3], 4294967280 }
 0x422   :  { %491 = sfence }
 0x423   :  { %492 = vsyncpa [#allocation3], 1 }

// kernel: unimodel_moledit_forward.2
= control target key start
LH: loop header
LB: loop body
LE: loop exit
PB: predicated region body
PF: predicated region fallthrough
CT: control target
= control target key end

     0   :  { %s5049_s17 = smov 0   ;;  %s5051_s18 = smov 0   ;;  %s5798_s0 = inlined_call_operand.vmem [shape: f32[2,24,128], index: 0, kind: input, shape index: {}]   ;;  %s5799_s1 = inlined_call_operand.vmem [shape: s32[2,1,24], index: 1, kind: input, shape index: {}]   ;;  %s5800_s2 = inlined_call_operand.vmem [shape: f32[24,32], index: 2, kind: input, shape index: {}]   ;;  %s5801_s3 = inlined_call_operand.vmem [shape: f32[24,32], index: 3, kind: input, shape index: {}]   ;;  %s5802_s4 = inlined_call_operand.vmem [shape: f32[2,1,128], index: 4, kind: input, shape index: {}]   ;;  %s5803_s5 = inlined_call_operand.vmem [shape: bf16[2,12,128,32], index: 5, kind: input, shape index: {}]   ;;  %s5804_s6 = inlined_call_operand.vmem [shape: bf16[2,4,32,128], index: 6, kind: input, shape index: {}]   ;;  %s5805_s7 = inlined_call_operand.vmem [shape: f32[2,1,128], index: 7, kind: input, shape index: {}]   ;;  %s5806_s8 = inlined_call_operand.vmem [shape: bf16[2,128,256], index: 8, kind: input, shape index: {}]   ;;  %s5807_s9 = inlined_call_operand.vmem [shape: bf16[2,128,256], index: 9, kind: input, shape index: {}]   ;;  %s5808_s10 = inlined_call_operand.vmem [shape: bf16[2,256,128], index: 10, kind: input, shape index: {}]   ;;  %s5809_s11 = inlined_call_operand.vmem [shape: f32[2,24,128], index: 11, kind: output, shape index: {}]  }
   0x1   :  { %5814 = sst [smem:[#allocation9_spill]] %s5798_s0  ;;  %s5053_s19 = smov 0  }
   0x2   :  { %5815 = sst [smem:[#allocation10_spill]] %s5799_s1  ;;  %s5055_s20 = smov 0  }
   0x3   :  { %5816 = sst [smem:[#allocation11_spill]] %s5801_s3  ;;  %s5057_s21 = smov 0  }
   0x4 LB: > { %5817 = sst [smem:[#allocation4_spill]] %s4974_s19  ;;  %s30_s22 = sadd.s32 1, %s4974_s19  ;;  %s4982_s21 = sphi %s5057_s21, %s21_s21   ;;  %s4978_s20 = sphi %s5055_s20, %s5830_s20   ;;  %s4974_s19 = sphi %s5053_s19, %s5829_s19   ;;  %s4970_s18 = sphi %s5051_s18, %s5828_s18   ;;  %s4966_s17 = sphi %s5049_s17, %s5827_s17  }
   0x5   : > { %5818 = sst [smem:[#allocation5_spill]] %s4978_s20  ;;  %s33_s23 = sadd.s32 1, %s4978_s20 }
   0x6   : > { %5819 = sst [smem:[#allocation6_spill]] %s4982_s21  ;;  %p31_p0 = scmp.ge.s32.totalorder %s30_s22, 2 }
   0x7   : > { %p3894_p1 = scmp.ge.s32.totalorder %s4982_s21, 1  ;;  %p423_p2 = scmp.lt.s32.totalorder %s4982_s21, 5 }
   0x8   : > { %s5832_s22 = smov (%p31_p0, %s30_s22), 0  ;;  %s5834_s23 = smov (!%p31_p0, %s33_s23), %s4978_s20 }
   0x9   : > { %5820 = sst [smem:[#allocation7_spill]] %s5832_s22  ;;  %p424_p3 = pnand %p3894_p1, %p423_p2 }
   0xa   : > { %p35_p4 = scmp.ge.s32.totalorder %s5834_s23, 2  ;;  %p497_p5 = scmp.lt.s32.totalorder (!%p424_p3), %s4970_s18, 1 }
   0xb   : > { %427 = sbr.rel (%p424_p3) target bundleno = 2135 (0x857), region = 64  ;;  %p505_p6 = scmp.lt.s32.totalorder (!%p424_p3), %s4966_s17, 1 }
   0xc   : > { %s5836_s23 = smov (%p35_p4, %s5834_s23), 0  ;;  %s5822_s1 = sld [smem:[#allocation10_spill]] (!%p424_p3) }
   0xd   : > { %5821 = sst [smem:[#allocation8_spill]] %s5836_s23  ;;  %s5823_s0 = sld [smem:[#allocation9_spill]] (!%p424_p3) }
   0xe   : > { %p3906_p7 = scmp.ne.s32.totalorder (!%p424_p3), %s4966_s17, 0 }
  0x12   : > { %s5838_s18 = smov (!%p497_p5, %s4970_s18), 1  ;;  %v552_v3 = vlaneseq (!%p3906_p7)  ;;  %v4984_v7 = vmov (!%p3906_p7), 0   ;;  %vm575_vm4 = vcmask (!%p3906_p7), 195584   ;;  %v4985_v13 = vmov (!%p3906_p7), -1e+09  }
  0x13   : > { %s5083_s24 = scalar_select %p505_p6, %s4966_s17, 1 }
  0x14   : > { %s4642_s25 = smul.u32 24, %s5838_s18  ;;  %s504_s28 = scalar_lea.vmem %s5822_s1, %s5838_s18  ;;  %v553_v5 = vshrl.u32 (!%p3906_p7), %v552_v3, 7  ;;  %v557_v6 = vand.u32 (!%p3906_p7), 127, %v552_v3 }
  0x15   : > { %s4643_s13 = smul.u32 768, %s5083_s24  ;;  %s4094_s23 = sshll.u32 %s5083_s24, 6  ;;  %v558_v4 = vld [vmem:[%s504_s28] sm:$0x1] (!%p3906_p7) }
  0x16   : > { %s501_s16 = scalar_lea.vmem %s5823_s0, %s4642_s25  ;;  %s5105_s26 = scalar_lea.vmem %s5804_s6, %s4094_s23  ;;  %vm559_vm0 = vcmp.gt.s32.totalorder (!%p3906_p7), %v558_v4, 0  ;;  %v566_v9 = vsub.s32 (!%p3906_p7), 0, %v553_v5  ;;  %v554_v10 = vadd.s32 (!%p3906_p7), 8, %v553_v5  ;;  %v555_v11 = vadd.s32 (!%p3906_p7), 16, %v553_v5 }
  0x17   : > { %s5100_s19 = scalar_lea.vmem %s5803_s5, %s4643_s13  ;;  %s520_s29 = scalar_lea.vmem %s5805_s7, %s5083_s24  ;;  %v546_v0 = vld [vmem:[%s501_s16] sm:$0xff] (!%p3906_p7)  ;;  %v547_v1 = vld [vmem:[%s501_s16 + $0x8] sm:$0xff] (!%p3906_p7)  ;;  %v548_v2 = vld [vmem:[%s501_s16 + $0x10] sm:$0xff] (!%p3906_p7)  ;;  %v563_v8 = vsel (!%p3906_p7), %vm559_vm0, 1, %v4984_v7  ;;  %vm560_vm1 = vcmp.ge.s32.totalorder (!%p3906_p7), %v553_v5, %v557_v6 }
  0x18   : > { %s4095_s30 = sshll.u32 %s5083_s24, 7  ;;  %s5130_s18 = scalar_lea.vmem %s5809_s11, %s4642_s25  ;;  %549 = vst [vmem:[#allocation2] sm:$0xff] (!%p3906_p7), %v546_v0  ;;  %550 = vst [vmem:[#allocation2 + $0x8] sm:$0xff] (!%p3906_p7), %v547_v1  ;;  %v567_v12 = vrot.slane (!%p3906_p7), %v563_v8, %v566_v9  ;;  %vm561_vm2 = vcmp.ge.s32.totalorder (!%p3906_p7), %v554_v10, %v557_v6  ;;  %vm562_vm5 = vcmp.ge.s32.totalorder (!%p3906_p7), %v555_v11, %v557_v6 }
  0x19   : > { %s5115_s14 = scalar_lea.vmem %s5806_s8, %s4095_s30  ;;  %s5120_s20 = scalar_lea.vmem %s5807_s9, %s4095_s30  ;;  %551 = vst [vmem:[#allocation2 + $0x10] sm:$0xff] (!%p3906_p7), %v548_v2 }
  0x1a   : > { %s5125_s3 = scalar_lea.vmem %s5808_s10, %s4095_s30  ;;  %545 = sbr.rel (%p3906_p7) target bundleno = 33 (0x21), region = 68  ;;  %vm568_vm3 = vcmp.eq.s32.totalorder (!%p3906_p7), %v567_v12, 1 }
  0x1b   : > { %vm569_vm6 = vmand (!%p3906_p7), %vm560_vm1, %vm568_vm3 }
  0x1c   : > { %v572_v14 = vsel (!%p3906_p7), %vm569_vm6, 0.0, %v4985_v13  ;;  %vm570_vm7 = vmand (!%p3906_p7), %vm561_vm2, %vm568_vm3 }
  0x1d   : > { %576 = vst.msk [vmem:[#allocation3] sm:$0xff] (!%p3906_p7), %vm575_vm4, %v572_v14  ;;  %v573_v15 = vsel (!%p3906_p7), %vm570_vm7, 0.0, %v4985_v13  ;;  %vm571_vm8 = vmand (!%p3906_p7), %vm562_vm5, %vm568_vm3 }
  0x1e   : > { %577 = vst.msk [vmem:[#allocation3 + $0x8] sm:$0xff] (!%p3906_p7), %vm575_vm4, %v573_v15  ;;  %v574_v16 = vsel (!%p3906_p7), %vm571_vm8, 0.0, %v4985_v13 }
  0x1f   : > { %578 = vst.msk [vmem:[#allocation3 + $0x10] sm:$0xff] (!%p3906_p7), %vm575_vm4, %v574_v16 }
  0x21 PF: > { %v5133_v17 = vld [vmem:[#allocation2] sm:$0xff]  ;;  %v5135_v18 = vld [vmem:[#allocation2 + $0x8] sm:$0xff]  ;;  %v5137_v19 = vld [vmem:[#allocation2 + $0x10] sm:$0xff]  ;;  %s5824_s25 = scalar_lea.vmem %s5802_s4, %s5083_s24  ;;  %s4986_s28 = smov 16   ;;  %vm2053_vm9 = vcmask 130048   ;;  %vm2250_vm10 = vcmask 261120  }
  0x22   : > { %v592_v20 = vmul.f32 %v5133_v17, %v5133_v17  ;;  %v594_v21 = vmul.f32 %v5137_v19, %v5137_v19  ;;  %v4689_v22 = vld [vmem:[%s5100_s19] sm:$0xff]   ;;  %v593_v24 = vmul.f32 %v5135_v18, %v5135_v18  ;;  %v4691_v25 = vld [vmem:[%s5100_s19 + $0x8] sm:$0xff]   ;;  %v4693_v27 = vld [vmem:[%s5100_s19 + $0x10] sm:$0xff]   ;;  %s5825_s15 = sld [smem:[#allocation11_spill]]  ;;  %vm2622_vm11 = vcmask 1043456   ;;  %p4091_p8 = scmp.ne.s32.totalorder %s4966_s17, 1 }
  0x23   : > { %v4690_v23 = vld [vmem:[%s5100_s19 + $0x40] sm:$0xff]   ;;  %4294 = vmatprep.subr.bf16.mxu0 %v4689_v22  ;;  %v4692_v26 = vld [vmem:[%s5100_s19 + $0x48] sm:$0xff]   ;;  %v4694_v28 = vld [vmem:[%s5100_s19 + $0x50] sm:$0xff]   ;;  %vm2491_vm12 = vcmask 195584  }
  0x24   : > { %595 = vadd.xlane.f32.xlu0 %v592_v20  ;;  %599 = vadd.xlane.f32.xlu1 %v594_v21  ;;  %v4695_v29 = vld [vmem:[%s5100_s19 + $0x18] sm:$0xff]   ;;  %v4697_v31 = vld [vmem:[%s5100_s19 + $0x20] sm:$0xff]   ;;  %v4699_v33 = vld [vmem:[%s5100_s19 + $0x28] sm:$0xff]  }
  0x25   : > { %4314 = vmatprep.subr.bf16.mxu1 %v4690_v23  ;;  %4295 = vmatpush3.bf16.msra.mxu0 %v4689_v22  ;;  %v4696_v30 = vld [vmem:[%s5100_s19 + $0x58] sm:$0xff]   ;;  %v4698_v32 = vld [vmem:[%s5100_s19 + $0x60] sm:$0xff]   ;;  %v4700_v34 = vld [vmem:[%s5100_s19 + $0x68] sm:$0xff]  }
  0x26   : > { %4315 = vmatpush3.bf16.msra.mxu1 %v4690_v23  ;;  %4296 = vmatprep.subr.bf16.mxu0 %v4691_v25  ;;  %v4701_v35 = vld [vmem:[%s5100_s19 + $0x30] sm:$0xff]   ;;  %v4703_v37 = vld [vmem:[%s5100_s19 + $0x38] sm:$0xff]   ;;  %v4705_v39 = vld [vmem:[%s5100_s19 + $0x80] sm:$0xff]  }
  0x27   : > { %4316 = vmatprep.subr.bf16.mxu1 %v4692_v26  ;;  %v4702_v36 = vld [vmem:[%s5100_s19 + $0x70] sm:$0xff]   ;;  %v4704_v38 = vld [vmem:[%s5100_s19 + $0x78] sm:$0xff]   ;;  %v4706_v40 = vld [vmem:[%s5100_s19 + $0xc0] sm:$0xff]  }
  0x28   : > { %597 = vadd.xlane.f32.xlu0 %v593_v24  ;;  %v3907_v53 = vld [vmem:[%s5824_s25] ss:$0 sm:$0xff]  ;;  %v4707_v62 = vld [vmem:[%s5100_s19 + $0x88] sm:$0xff]   ;;  %v4709_v0 = vld [vmem:[%s5100_s19 + $0x90] sm:$0xff]  }
  0x29   : > { %4297 = vmatpush3.bf16.msra.mxu0 %v4691_v25  ;;  %v4708_v63 = vld [vmem:[%s5100_s19 + $0xc8] sm:$0xff]   ;;  %v4710_v1 = vld [vmem:[%s5100_s19 + $0xd0] sm:$0xff]   ;;  %v4711_v2 = vld [vmem:[%s5100_s19 + $0x98] sm:$0xff]  }
  0x2a   : > { %4317 = vmatpush3.bf16.msra.mxu1 %v4692_v26  ;;  %4298 = vmatprep.subr.bf16.mxu0 %v4693_v27  ;;  %v4712_v3 = vld [vmem:[%s5100_s19 + $0xd8] sm:$0xff]   ;;  %v4713_v4 = vld [vmem:[%s5100_s19 + $0xa0] sm:$0xff]   ;;  %v4715_v6 = vld [vmem:[%s5100_s19 + $0xa8] sm:$0xff]  }
  0x2b   : > { %4318 = vmatprep.subr.bf16.mxu1 %v4694_v28  ;;  %v4714_v5 = vld [vmem:[%s5100_s19 + $0xe0] sm:$0xff]   ;;  %v4716_v7 = vld [vmem:[%s5100_s19 + $0xe8] sm:$0xff]   ;;  %v4717_v8 = vld [vmem:[%s5100_s19 + $0xb0] sm:$0xff]  }
  0x2c   : > { %v4718_v9 = vld [vmem:[%s5100_s19 + $0xf0] sm:$0xff]   ;;  %v4719_v10 = vld [vmem:[%s5100_s19 + $0xb8] sm:$0xff]   ;;  %v4721_v12 = vld [vmem:[%s5100_s19 + $0x100] sm:$0xff]  }
  0x2d   : > { %4299 = vmatpush3.bf16.msra.mxu0 %v4693_v27  ;;  %v4720_v11 = vld [vmem:[%s5100_s19 + $0xf8] sm:$0xff]   ;;  %v4722_v13 = vld [vmem:[%s5100_s19 + $0x140] sm:$0xff]   ;;  %v4723_v14 = vld [vmem:[%s5100_s19 + $0x108] sm:$0xff]  }
  0x2e   : > { %4319 = vmatpush3.bf16.msra.mxu1 %v4694_v28  ;;  %4300 = vmatprep.subr.bf16.mxu0 %v4695_v29  ;;  %v4724_v15 = vld [vmem:[%s5100_s19 + $0x148] sm:$0xff]   ;;  %v4725_v16 = vld [vmem:[%s5100_s19 + $0x110] sm:$0xff]   ;;  %v4729_v20 = vld [vmem:[%s5100_s19 + $0x120] sm:$0xff]  }
  0x2f   : > { %4320 = vmatprep.subr.bf16.mxu1 %v4696_v30  ;;  %v4730_v21 = vld [vmem:[%s5100_s19 + $0x160] sm:$0xff]   ;;  %v4731_v22 = vld [vmem:[%s5100_s19 + $0x128] sm:$0xff]   ;;  %v4733_v24 = vld [vmem:[%s5100_s19 + $0x130] sm:$0xff]  }
  0x30   : > { %v4732_v23 = vld [vmem:[%s5100_s19 + $0x168] sm:$0xff]   ;;  %v4734_v25 = vld [vmem:[%s5100_s19 + $0x170] sm:$0xff]   ;;  %v4735_v26 = vld [vmem:[%s5100_s19 + $0x138] sm:$0xff]  }
  0x31   : > { %4301 = vmatpush3.bf16.msra.mxu0 %v4695_v29  ;;  %v4736_v27 = vld [vmem:[%s5100_s19 + $0x178] sm:$0xff]   ;;  %v4737_v28 = vld [vmem:[%s5100_s19 + $0x180] sm:$0xff]  }
  0x32   : > { %4321 = vmatpush3.bf16.msra.mxu1 %v4696_v30  ;;  %4302 = vmatprep.subr.bf16.mxu0 %v4697_v31  ;;  %v4738_v29 = vld [vmem:[%s5100_s19 + $0x1c0] sm:$0xff]   ;;  %v4739_v30 = vld [vmem:[%s5100_s19 + $0x188] sm:$0xff]  }
  0x33   : > { %4322 = vmatprep.subr.bf16.mxu1 %v4698_v32 }
  0x35   : > { %4303 = vmatpush3.bf16.msra.mxu0 %v4697_v31  ;;  %v4740_v31 = vld [vmem:[%s5100_s19 + $0x1c8] sm:$0xff]  }
  0x36   : > { %4323 = vmatpush3.bf16.msra.mxu1 %v4698_v32  ;;  %4304 = vmatprep.subr.bf16.mxu0 %v4699_v33  ;;  %v4741_v32 = vld [vmem:[%s5100_s19 + $0x190] sm:$0xff]  }
  0x37   : > { %4324 = vmatprep.subr.bf16.mxu1 %v4700_v34 }
  0x39   : > { %4305 = vmatpush3.bf16.msra.mxu0 %v4699_v33  ;;  %v4742_v33 = vld [vmem:[%s5100_s19 + $0x1d0] sm:$0xff]  }
  0x3a   : > { %4325 = vmatpush3.bf16.msra.mxu1 %v4700_v34  ;;  %4306 = vmatprep.subr.bf16.mxu0 %v4701_v35  ;;  %v4743_v34 = vld [vmem:[%s5100_s19 + $0x198] sm:$0xff]  }
  0x3b   : > { %4326 = vmatprep.subr.bf16.mxu1 %v4702_v36 }
  0x3d   : > { %4307 = vmatpush3.bf16.msra.mxu0 %v4701_v35  ;;  %v4744_v35 = vld [vmem:[%s5100_s19 + $0x1d8] sm:$0xff]  }
  0x3e   : > { %4327 = vmatpush3.bf16.msra.mxu1 %v4702_v36  ;;  %4308 = vmatprep.subr.bf16.mxu0 %v4703_v37  ;;  %v4745_v36 = vld [vmem:[%s5100_s19 + $0x1a0] sm:$0xff]  }
  0x3f   : > { %4328 = vmatprep.subr.bf16.mxu1 %v4704_v38 }
  0x41   : > { %4309 = vmatpush3.bf16.msra.mxu0 %v4703_v37  ;;  %v4746_v37 = vld [vmem:[%s5100_s19 + $0x1e0] sm:$0xff]  }
  0x42   : > { %4329 = vmatpush3.bf16.msra.mxu1 %v4704_v38  ;;  %4334 = vmatprep.subr.bf16.mxu0 %v4705_v39  ;;  %v4747_v38 = vld [vmem:[%s5100_s19 + $0x1a8] sm:$0xff]  }
  0x43   : > { %4354 = vmatprep.subr.bf16.mxu1 %v4706_v40 }
  0xb1   : > { %v596_v41 = vpop.xlane.xlu0 %595  ;;  %v600_v42 = vpop.xlane.xlu1 %599 }
  0xb2   : > { %v602_v43 = vmul.f32 0.0078125, %v596_v41  ;;  %v604_v44 = vmul.f32 0.0078125, %v600_v42  ;;  %v4750_v41 = vld [vmem:[%s5100_s19 + $0x1f0] sm:$0xff]   ;;  %v4751_v42 = vld [vmem:[%s5100_s19 + $0x1b8] sm:$0xff]  }
  0xb4   : > { %v605_v45 = vadd.f32 1e-06, %v602_v43  ;;  %v607_v46 = vadd.f32 1e-06, %v604_v44  ;;  %v4752_v43 = vld [vmem:[%s5100_s19 + $0x1f8] sm:$0xff]   ;;  %v4753_v44 = vld [vmem:[%s5100_s19 + $0x200] sm:$0xff]  }
  0xb5   : > { %v598_v47 = vpop.xlane.xlu0 %597 }
  0xb6   : > { %4857 = vrsqrt.f32 %v605_v45  ;;  %v603_v48 = vmul.f32 0.0078125, %v598_v47  ;;  %v4754_v45 = vld [vmem:[%s5100_s19 + $0x240] sm:$0xff]   ;;  %v4756_v47 = vld [vmem:[%s5100_s19 + $0x248] sm:$0xff]  }
  0xb7   : > { %4859 = vrsqrt.f32 %v607_v46  ;;  %v4755_v46 = vld [vmem:[%s5100_s19 + $0x208] sm:$0xff]  }
  0xb8   : > { %v606_v49 = vadd.f32 1e-06, %v603_v48  ;;  %v4757_v48 = vld [vmem:[%s5100_s19 + $0x210] sm:$0xff]  }
  0xba   : > { %4861 = vrsqrt.f32 %v606_v49  ;;  %v4758_v49 = vld [vmem:[%s5100_s19 + $0x250] sm:$0xff]  }
  0xc0   : > { %v4858_v50 = vpop.eup %4857 }
  0xc1   : > { %v4860_v51 = vpop.eup %4859  ;;  %v611_v54 = vmul.f32 %v4858_v50, %v5133_v17  ;;  %v4726_v17 = vld [vmem:[%s5100_s19 + $0x150] sm:$0xff]   ;;  %v4759_v50 = vld [vmem:[%s5100_s19 + $0x218] sm:$0xff]  }
  0xc2   : > { %v613_v52 = vmul.f32 %v4860_v51, %v5137_v19  ;;  %v4728_v19 = vld [vmem:[%s5100_s19 + $0x158] sm:$0xff]  }
  0xc3   : > { %v620_v58 = vmul.f32 %v3907_v53, %v611_v54  ;;  %v4760_v51 = vld [vmem:[%s5100_s19 + $0x258] sm:$0xff]   ;;  %v4763_v54 = vld [vmem:[%s5100_s19 + $0x228] sm:$0xff]  }
  0xc4   : > { %v4862_v55 = vpop.eup %4861  ;;  %v622_v56 = vmul.f32 %v3907_v53, %v613_v52  ;;  %v4761_v52 = vld [vmem:[%s5100_s19 + $0x220] sm:$0xff]  }
  0xc5   : > { %v612_v57 = vmul.f32 %v4862_v55, %v5135_v18  ;;  %v4727_v18 = vld [vmem:[%s5100_s19 + $0x118] sm:$0xff]   ;;  %v4764_v55 = vld [vmem:[%s5100_s19 + $0x268] sm:$0xff]  }
  0xc6   : > { %v5171_v60 = vpack.c.bf16 %v622_v56, %v622_v56  ;;  %v4765_v56 = vld [vmem:[%s5100_s19 + $0x230] sm:$0xff]  }
  0xc7   : > { %v621_v59 = vmul.f32 %v3907_v53, %v612_v57  ;;  %v4762_v53 = vld [vmem:[%s5100_s19 + $0x260] sm:$0xff]   ;;  %v4766_v57 = vld [vmem:[%s5100_s19 + $0x270] sm:$0xff]  }
  0xc9   : > { %v5173_v61 = vpack.c.bf16 %v621_v59, %v620_v58  ;;  %v4767_v58 = vld [vmem:[%s5100_s19 + $0x238] sm:$0xff]  }
  0xca   : > { %v4768_v59 = vld [vmem:[%s5100_s19 + $0x278] sm:$0xff]  }
  0xcb   : > { %4310 = vmatprep.mubr.bf16.mxu0 %v5173_v61  ;;  %4330 = vmatprep.mubr.bf16.mxu1 %v5173_v61 }
  0xcc   : > { %4311 = vmatmul.mubr.bf16.vlgmr.msra.gmra.mrb[0].mxu0 %v5171_v60  ;;  %4331 = vmatmul.mubr.bf16.vlgmr.msra.gmra.mrb[0].mxu1 %v5171_v60 }
  0xcd   : > { %4335 = vmatpush3.bf16.msra.mxu0 %v4705_v39  ;;  %4355 = vmatpush3.bf16.msra.mxu1 %v4706_v40  ;;  %v4748_v39 = vld [vmem:[%s5100_s19 + $0x1e8] sm:$0xff]   ;;  %v4749_v40 = vld [vmem:[%s5100_s19 + $0x1b0] sm:$0xff]  }
  0xce   : > { %4350 = vmatprep.mubr.bf16.mxu0 %v5173_v61  ;;  %4370 = vmatprep.mubr.bf16.mxu1 %v5173_v61 }
  0xcf   : > { %4336 = vmatprep.subr.bf16.mxu0 %v4707_v62  ;;  %4356 = vmatprep.subr.bf16.mxu1 %v4708_v63 }
  0xd1   : > { %4337 = vmatpush3.bf16.msra.mxu0 %v4707_v62  ;;  %4357 = vmatpush3.bf16.msra.mxu1 %v4708_v63  ;;  %v4769_v62 = vld [vmem:[%s5100_s19 + $0x280] sm:$0xff]  }
  0xd2   : > { %4338 = vmatprep.subr.bf16.mxu0 %v4709_v0  ;;  %4358 = vmatprep.subr.bf16.mxu1 %v4710_v1  ;;  %v4770_v63 = vld [vmem:[%s5100_s19 + $0x2c0] sm:$0xff]  }
  0xd5   : > { %4339 = vmatpush3.bf16.msra.mxu0 %v4709_v0  ;;  %4359 = vmatpush3.bf16.msra.mxu1 %v4710_v1  ;;  %v4771_v0 = vld [vmem:[%s5100_s19 + $0x288] sm:$0xff]  }
  0xd6   : > { %4340 = vmatprep.subr.bf16.mxu0 %v4711_v2  ;;  %4360 = vmatprep.subr.bf16.mxu1 %v4712_v3  ;;  %v4772_v1 = vld [vmem:[%s5100_s19 + $0x2c8] sm:$0xff]  }
  0xd9   : > { %4341 = vmatpush3.bf16.msra.mxu0 %v4711_v2  ;;  %4361 = vmatpush3.bf16.msra.mxu1 %v4712_v3  ;;  %v4773_v2 = vld [vmem:[%s5100_s19 + $0x290] sm:$0xff]  }
  0xda   : > { %4342 = vmatprep.subr.bf16.mxu0 %v4713_v4  ;;  %4362 = vmatprep.subr.bf16.mxu1 %v4714_v5  ;;  %v4774_v3 = vld [vmem:[%s5100_s19 + $0x2d0] sm:$0xff]  }
  0xdd   : > { %4343 = vmatpush3.bf16.msra.mxu0 %v4713_v4  ;;  %4363 = vmatpush3.bf16.msra.mxu1 %v4714_v5  ;;  %v4775_v4 = vld [vmem:[%s5100_s19 + $0x298] sm:$0xff]  }
  0xde   : > { %4344 = vmatprep.subr.bf16.mxu0 %v4715_v6  ;;  %4364 = vmatprep.subr.bf16.mxu1 %v4716_v7  ;;  %v4776_v5 = vld [vmem:[%s5100_s19 + $0x2d8] sm:$0xff]  }
  0xe1   : > { %4345 = vmatpush3.bf16.msra.mxu0 %v4715_v6  ;;  %4365 = vmatpush3.bf16.msra.mxu1 %v4716_v7  ;;  %v4777_v6 = vld [vmem:[%s5100_s19 + $0x2a0] sm:$0xff]  }
  0xe2   : > { %4346 = vmatprep.subr.bf16.mxu0 %v4717_v8  ;;  %4366 = vmatprep.subr.bf16.mxu1 %v4718_v9  ;;  %v4778_v7 = vld [vmem:[%s5100_s19 + $0x2e0] sm:$0xff]  }
  0xe5   : > { %4347 = vmatpush3.bf16.msra.mxu0 %v4717_v8  ;;  %4367 = vmatpush3.bf16.msra.mxu1 %v4718_v9  ;;  %v4780_v8 = vld [vmem:[%s5100_s19 + $0x2e8] sm:$0xff]   ;;  %v4781_v9 = vld [vmem:[%s5100_s19 + $0x2b0] sm:$0xff]  }
  0xe6   : > { %4348 = vmatprep.subr.bf16.mxu0 %v4719_v10  ;;  %4368 = vmatprep.subr.bf16.mxu1 %v4720_v11 }
  0xe9   : > { %4349 = vmatpush3.bf16.msra.mxu0 %v4719_v10  ;;  %4369 = vmatpush3.bf16.msra.mxu1 %v4720_v11  ;;  %v4782_v10 = vld [vmem:[%s5100_s19 + $0x2f0] sm:$0xff]   ;;  %v4783_v11 = vld [vmem:[%s5100_s19 + $0x2b8] sm:$0xff]  }
  0xea   : > { %4374 = vmatprep.subr.bf16.mxu0 %v4721_v12  ;;  %4394 = vmatprep.subr.bf16.mxu1 %v4722_v13 }
  0xec   : > { %4351 = vmatmul.mubr.bf16.vlgmr.msra.gmra.mrb[4].mxu0 %v5171_v60  ;;  %4371 = vmatmul.mubr.bf16.vlgmr.msra.gmra.mrb[4].mxu1 %v5171_v60 }
  0xed   : > { %4375 = vmatpush3.bf16.msra.mxu0 %v4721_v12  ;;  %4390 = vmatprep.mubr.bf16.mxu0 %v5173_v61  ;;  %v4784_v12 = vld [vmem:[%s5100_s19 + $0x2f8] sm:$0xff]  }
  0xee   : > { %4395 = vmatpush3.bf16.msra.mxu1 %v4722_v13  ;;  %4410 = vmatprep.mubr.bf16.mxu1 %v5173_v61 }
  0xef   : > { %4376 = vmatprep.subr.bf16.mxu0 %v4723_v14  ;;  %4396 = vmatprep.subr.bf16.mxu1 %v4724_v15 }
  0xf1   : > { %4377 = vmatpush3.bf16.msra.mxu0 %v4723_v14 }
  0xf2   : > { %4397 = vmatpush3.bf16.msra.mxu1 %v4724_v15  ;;  %4378 = vmatprep.subr.bf16.mxu0 %v4725_v16 }
  0xf3   : > { %4398 = vmatprep.subr.bf16.mxu1 %v4726_v17 }
  0xf5   : > { %4379 = vmatpush3.bf16.msra.mxu0 %v4725_v16 }
  0xf6   : > { %4399 = vmatpush3.bf16.msra.mxu1 %v4726_v17  ;;  %4380 = vmatprep.subr.bf16.mxu0 %v4727_v18 }
  0xf7   : > { %4400 = vmatprep.subr.bf16.mxu1 %v4728_v19 }
  0xf9   : > { %4381 = vmatpush3.bf16.msra.mxu0 %v4727_v18 }
  0xfa   : > { %4401 = vmatpush3.bf16.msra.mxu1 %v4728_v19  ;;  %4382 = vmatprep.subr.bf16.mxu0 %v4729_v20 }
  0xfb   : > { %4402 = vmatprep.subr.bf16.mxu1 %v4730_v21 }
  0xfd   : > { %4383 = vmatpush3.bf16.msra.mxu0 %v4729_v20 }
  0xfe   : > { %4403 = vmatpush3.bf16.msra.mxu1 %v4730_v21  ;;  %4384 = vmatprep.subr.bf16.mxu0 %v4731_v22 }
  0xff   : > { %4404 = vmatprep.subr.bf16.mxu1 %v4732_v23 }
 0x101   : > { %4385 = vmatpush3.bf16.msra.mxu0 %v4731_v22 }
 0x102   : > { %4405 = vmatpush3.bf16.msra.mxu1 %v4732_v23  ;;  %4386 = vmatprep.subr.bf16.mxu0 %v4733_v24 }
 0x103   : > { %4406 = vmatprep.subr.bf16.mxu1 %v4734_v25 }
 0x105   : > { %4387 = vmatpush3.bf16.msra.mxu0 %v4733_v24 }
 0x106   : > { %4407 = vmatpush3.bf16.msra.mxu1 %v4734_v25  ;;  %4388 = vmatprep.subr.bf16.mxu0 %v4735_v26 }
 0x107   : > { %4408 = vmatprep.subr.bf16.mxu1 %v4736_v27 }
 0x109   : > { %4389 = vmatpush3.bf16.msra.mxu0 %v4735_v26 }
 0x10a   : > { %4409 = vmatpush3.bf16.msra.mxu1 %v4736_v27  ;;  %4414 = vmatprep.subr.bf16.mxu0 %v4737_v28 }
 0x10b   : > { %4434 = vmatprep.subr.bf16.mxu1 %v4738_v29 }
 0x10c   : > { %4391 = vmatmul.mubr.bf16.vlgmr.msra.gmra.mrb[8].mxu0 %v5171_v60 }
 0x10d   : > { %4411 = vmatmul.mubr.bf16.vlgmr.msra.gmra.mrb[8].mxu1 %v5171_v60  ;;  %4415 = vmatpush3.bf16.msra.mxu0 %v4737_v28 }
 0x10e   : > { %4430 = vmatprep.mubr.bf16.mxu0 %v5173_v61  ;;  %4435 = vmatpush3.bf16.msra.mxu1 %v4738_v29 }
 0x10f   : > { %4450 = vmatprep.mubr.bf16.mxu1 %v5173_v61  ;;  %4416 = vmatprep.subr.bf16.mxu0 %v4739_v30 }
 0x110   : > { %4436 = vmatprep.subr.bf16.mxu1 %v4740_v31 }
 0x111   : > { %4417 = vmatpush3.bf16.msra.mxu0 %v4739_v30 }
 0x112   : > { %4437 = vmatpush3.bf16.msra.mxu1 %v4740_v31  ;;  %4418 = vmatprep.subr.bf16.mxu0 %v4741_v32 }
 0x113   : > { %4438 = vmatprep.subr.bf16.mxu1 %v4742_v33 }
 0x115   : > { %4419 = vmatpush3.bf16.msra.mxu0 %v4741_v32 }
 0x116   : > { %4439 = vmatpush3.bf16.msra.mxu1 %v4742_v33  ;;  %4420 = vmatprep.subr.bf16.mxu0 %v4743_v34 }
 0x117   : > { %4440 = vmatprep.subr.bf16.mxu1 %v4744_v35 }
 0x119   : > { %4421 = vmatpush3.bf16.msra.mxu0 %v4743_v34 }
 0x11a   : > { %4441 = vmatpush3.bf16.msra.mxu1 %v4744_v35  ;;  %4422 = vmatprep.subr.bf16.mxu0 %v4745_v36 }
 0x11b   : > { %4442 = vmatprep.subr.bf16.mxu1 %v4746_v37 }
 0x11d   : > { %4423 = vmatpush3.bf16.msra.mxu0 %v4745_v36 }
 0x11e   : > { %4443 = vmatpush3.bf16.msra.mxu1 %v4746_v37  ;;  %4424 = vmatprep.subr.bf16.mxu0 %v4747_v38 }
 0x11f   : > { %4444 = vmatprep.subr.bf16.mxu1 %v4748_v39 }
 0x121   : > { %4425 = vmatpush3.bf16.msra.mxu0 %v4747_v38 }
 0x122   : > { %4445 = vmatpush3.bf16.msra.mxu1 %v4748_v39  ;;  %4426 = vmatprep.subr.bf16.mxu0 %v4749_v40 }
 0x123   : > { %4446 = vmatprep.subr.bf16.mxu1 %v4750_v41 }
 0x125   : > { %4427 = vmatpush3.bf16.msra.mxu0 %v4749_v40 }
 0x126   : > { %4447 = vmatpush3.bf16.msra.mxu1 %v4750_v41  ;;  %4428 = vmatprep.subr.bf16.mxu0 %v4751_v42 }
 0x127   : > { %4448 = vmatprep.subr.bf16.mxu1 %v4752_v43 }
 0x129   : > { %4429 = vmatpush3.bf16.msra.mxu0 %v4751_v42 }
 0x12a   : > { %4449 = vmatpush3.bf16.msra.mxu1 %v4752_v43  ;;  %4454 = vmatprep.subr.bf16.mxu0 %v4753_v44 }
 0x12b   : > { %4474 = vmatprep.subr.bf16.mxu1 %v4754_v45 }
 0x12c   : > { %4431 = vmatmul.mubr.bf16.vlgmr.msra.gmra.mrb[12].mxu0 %v5171_v60 }
 0x12d   : > { %4451 = vmatmul.mubr.bf16.vlgmr.msra.gmra.mrb[12].mxu1 %v5171_v60  ;;  %4455 = vmatpush3.bf16.msra.mxu0 %v4753_v44  ;;  %v5402_v44 = vld [vmem:[%s5800_s2 + $0x10] sm:$0xff] }
 0x12e   : > { %4470 = vmatprep.mubr.bf16.mxu0 %v5173_v61  ;;  %4475 = vmatpush3.bf16.msra.mxu1 %v4754_v45  ;;  %v5407_v45 = vld [vmem:[%s5825_s15 + $0x10] sm:$0xff] }
 0x12f   : > { %4490 = vmatprep.mubr.bf16.mxu1 %v5173_v61  ;;  %4456 = vmatprep.subr.bf16.mxu0 %v4755_v46 }
 0x130   : > { %4476 = vmatprep.subr.bf16.mxu1 %v4756_v47 }
 0x131   : > { %4457 = vmatpush3.bf16.msra.mxu0 %v4755_v46 }
 0x132   : > { %4477 = vmatpush3.bf16.msra.mxu1 %v4756_v47  ;;  %4458 = vmatprep.subr.bf16.mxu0 %v4757_v48 }
 0x133   : > { %4478 = vmatprep.subr.bf16.mxu1 %v4758_v49 }
 0x135   : > { %4459 = vmatpush3.bf16.msra.mxu0 %v4757_v48 }
 0x136   : > { %4479 = vmatpush3.bf16.msra.mxu1 %v4758_v49  ;;  %4460 = vmatprep.subr.bf16.mxu0 %v4759_v50 }
 0x137   : > { %4480 = vmatprep.subr.bf16.mxu1 %v4760_v51 }
 0x139   : > { %4461 = vmatpush3.bf16.msra.mxu0 %v4759_v50 }
 0x13a   : > { %4481 = vmatpush3.bf16.msra.mxu1 %v4760_v51  ;;  %4462 = vmatprep.subr.bf16.mxu0 %v4761_v52 }
 0x13b   : > { %4482 = vmatprep.subr.bf16.mxu1 %v4762_v53 }
 0x13d   : > { %4463 = vmatpush3.bf16.msra.mxu0 %v4761_v52 }
 0x13e   : > { %4483 = vmatpush3.bf16.msra.mxu1 %v4762_v53  ;;  %4464 = vmatprep.subr.bf16.mxu0 %v4763_v54 }
 0x13f   : > { %4484 = vmatprep.subr.bf16.mxu1 %v4764_v55 }
 0x141   : > { %4465 = vmatpush3.bf16.msra.mxu0 %v4763_v54 }
 0x142   : > { %4485 = vmatpush3.bf16.msra.mxu1 %v4764_v55  ;;  %4466 = vmatprep.subr.bf16.mxu0 %v4765_v56 }
 0x143   : > { %4486 = vmatprep.subr.bf16.mxu1 %v4766_v57 }
 0x145   : > { %4467 = vmatpush3.bf16.msra.mxu0 %v4765_v56 }
 0x146   : > { %4487 = vmatpush3.bf16.msra.mxu1 %v4766_v57  ;;  %4468 = vmatprep.subr.bf16.mxu0 %v4767_v58 }
 0x147   : > { %4488 = vmatprep.subr.bf16.mxu1 %v4768_v59 }
 0x149   : > { %4469 = vmatpush3.bf16.msra.mxu0 %v4767_v58 }
 0x14a   : > { %4489 = vmatpush3.bf16.msra.mxu1 %v4768_v59  ;;  %4494 = vmatprep.subr.bf16.mxu0 %v4769_v62 }
 0x14b   : > { %4514 = vmatprep.subr.bf16.mxu1 %v4770_v63 }
 0x14c   : > { %4471 = vmatmul.mubr.bf16.vlgmr.msra.gmra.mrb[16].mxu0 %v5171_v60 }
 0x14d   : > { %4491 = vmatmul.mubr.bf16.vlgmr.msra.gmra.mrb[16].mxu1 %v5171_v60  ;;  %4495 = vmatpush3.bf16.msra.mxu0 %v4769_v62  ;;  %v5432_v62 = vld [vmem:[%s5800_s2] sm:$0xff] }
 0x14e   : > { %4510 = vmatprep.mubr.bf16.mxu0 %v5173_v61  ;;  %4515 = vmatpush3.bf16.msra.mxu1 %v4770_v63  ;;  %v5441_v63 = vld [vmem:[%s5800_s2 + $0x8] sm:$0xff] }
 0x14f   : > { %4530 = vmatprep.mubr.bf16.mxu1 %v5173_v61  ;;  %4496 = vmatprep.subr.bf16.mxu0 %v4771_v0  ;;  %v4779_v61 = vld [vmem:[%s5100_s19 + $0x2a8] sm:$0xff]   ;;  %s4987_s19 = smov 112  }
 0x150   : > { %4516 = vmatprep.subr.bf16.mxu1 %v4772_v1 }
 0x151   : > { %4497 = vmatpush3.bf16.msra.mxu0 %v4771_v0  ;;  %v5446_v0 = vld [vmem:[%s5825_s15] sm:$0xff] }
 0x152   : > { %4517 = vmatpush3.bf16.msra.mxu1 %v4772_v1  ;;  %4498 = vmatprep.subr.bf16.mxu0 %v4773_v2  ;;  %v5451_v1 = vld [vmem:[%s5825_s15 + $0x8] sm:$0xff] }
 0x153   : > { %4518 = vmatprep.subr.bf16.mxu1 %v4774_v3 }
 0x155   : > { %4499 = vmatpush3.bf16.msra.mxu0 %v4773_v2 }
 0x156   : > { %4519 = vmatpush3.bf16.msra.mxu1 %v4774_v3  ;;  %4500 = vmatprep.subr.bf16.mxu0 %v4775_v4 }
 0x157   : > { %4520 = vmatprep.subr.bf16.mxu1 %v4776_v5 }
 0x159   : > { %4501 = vmatpush3.bf16.msra.mxu0 %v4775_v4 }
 0x15a   : > { %4521 = vmatpush3.bf16.msra.mxu1 %v4776_v5  ;;  %4502 = vmatprep.subr.bf16.mxu0 %v4777_v6 }
 0x15b   : > { %4522 = vmatprep.subr.bf16.mxu1 %v4778_v7 }
 0x15d   : > { %4503 = vmatpush3.bf16.msra.mxu0 %v4777_v6 }
 0x15e   : > { %4523 = vmatpush3.bf16.msra.mxu1 %v4778_v7  ;;  %4504 = vmatprep.subr.bf16.mxu0 %v4779_v61 }
 0x15f   : > { %4524 = vmatprep.subr.bf16.mxu1 %v4780_v8 }
 0x161   : > { %4505 = vmatpush3.bf16.msra.mxu0 %v4779_v61 }
 0x162   : > { %4525 = vmatpush3.bf16.msra.mxu1 %v4780_v8  ;;  %4506 = vmatprep.subr.bf16.mxu0 %v4781_v9 }
 0x163   : > { %4526 = vmatprep.subr.bf16.mxu1 %v4782_v10 }
 0x165   : > { %4507 = vmatpush3.bf16.msra.mxu0 %v4781_v9 }
 0x166   : > { %4527 = vmatpush3.bf16.msra.mxu1 %v4782_v10  ;;  %4508 = vmatprep.subr.bf16.mxu0 %v4783_v11 }
 0x167   : > { %4528 = vmatprep.subr.bf16.mxu1 %v4784_v12 }
 0x169   : > { %4509 = vmatpush3.bf16.msra.mxu0 %v4783_v11 }
 0x16a   : > { %4529 = vmatpush3.bf16.msra.mxu1 %v4784_v12 }
 0x16c   : > { %4511 = vmatmul.mubr.bf16.vlgmr.msra.gmra.mrb[20].mxu0 %v5171_v60 }
 0x16d   : > { %4531 = vmatmul.mubr.bf16.vlgmr.msra.gmra.mrb[20].mxu1 %v5171_v60 }
 0x19f   : > { %v5277_v13 = vpop.f32.mrb[0].mxu0  ;;  %v5279_v14 = vpop.f32.mrb[0].mxu1 }
 0x1a0   : > { %v5281_v15 = vpop.f32.mrb[1].mxu1  ;;  %2021 = vrot.lane.b32.xlu0 %v5277_v13, %s4986_s28  ;;  %1985 = vrot.lane.b32.xlu1 %v5277_v13, %s4987_s19  ;;  %v5287_v16 = vpop.f32.mrb[1].mxu0  ;;  %v2068_v49 = vmul.f32 %v5277_v13, %v5402_v44  ;;  %v2071_v55 = vmul.f32 %v5279_v14, %v5402_v44 }
 0x1a1   : > { %v4313_v17 = vpop.f32.mrb[2].mxu0  ;;  %v4333_v18 = vpop.f32.mrb[2].mxu1  ;;  %v2066_v4 = vmul.f32 %v5287_v16, %v5432_v62 }
 0x1a2   : > { %v5289_v19 = vpop.f32.mrb[3].mxu0  ;;  %v5291_v60 = vpop.f32.mrb[3].mxu1 }
 0x1a3   : > { %v2067_v61 = vmul.f32 %v5289_v19, %v5441_v63 }
 0x1a4   : > { %2027 = vrot.lane.b32.xlu0 %v5279_v14, %s4986_s28  ;;  %1991 = vrot.lane.b32.xlu1 %v5279_v14, %s4987_s19 }
 0x1a8   : > { %1981 = vrot.lane.b32.xlu1 %v5287_v16, %s4987_s19  ;;  %1983 = vrot.lane.b32.xlu0 %v5289_v19, %s4987_s19 }
 0x1ac   : > { %2017 = vrot.lane.b32.xlu1 %v5287_v16, %s4986_s28  ;;  %2019 = vrot.lane.b32.xlu0 %v5289_v19, %s4986_s28 }
 0x1b0   : > { %1987 = vrot.lane.b32.xlu1 %v5281_v15, %s4987_s19  ;;  %1989 = vrot.lane.b32.xlu0 %v5291_v60, %s4987_s19 }
 0x1b4   : > { %2023 = vrot.lane.b32.xlu1 %v5281_v15, %s4986_s28  ;;  %2025 = vrot.lane.b32.xlu0 %v5291_v60, %s4986_s28 }
 0x1bf   : > { %v5313_v20 = vpop.f32.mrb[4].mxu0  ;;  %v5315_v21 = vpop.f32.mrb[4].mxu1 }
 0x1c0   : > { %v5317_v22 = vpop.f32.mrb[5].mxu0  ;;  %v5319_v23 = vpop.f32.mrb[5].mxu1 }
 0x1c1   : > { %v4353_v24 = vpop.f32.mrb[6].mxu0  ;;  %v4373_v25 = vpop.f32.mrb[6].mxu1 }
 0x1c2   : > { %v5321_v26 = vpop.f32.mrb[7].mxu0  ;;  %v5323_v27 = vpop.f32.mrb[7].mxu1 }
 0x1df   : > { %v5325_v28 = vpop.f32.mrb[8].mxu0 }
 0x1e0   : > { %v5327_v29 = vpop.f32.mrb[8].mxu1  ;;  %2162 = vrot.lane.b32.xlu0 %v5325_v28, %s4986_s28  ;;  %2126 = vrot.lane.b32.xlu1 %v5325_v28, %s4987_s19  ;;  %v5333_v30 = vpop.f32.mrb[9].mxu0 }
 0x1e1   : > { %v5335_v31 = vpop.f32.mrb[9].mxu1  ;;  %v4393_v32 = vpop.f32.mrb[10].mxu0 }
 0x1e2   : > { %v4413_v33 = vpop.f32.mrb[10].mxu1  ;;  %v5337_v34 = vpop.f32.mrb[11].mxu0 }
 0x1e3   : > { %v5339_v35 = vpop.f32.mrb[11].mxu1 }
 0x1e4   : > { %2168 = vrot.lane.b32.xlu0 %v5327_v29, %s4986_s28  ;;  %2132 = vrot.lane.b32.xlu1 %v5327_v29, %s4987_s19 }
 0x1e8   : > { %2122 = vrot.lane.b32.xlu1 %v5333_v30, %s4987_s19  ;;  %2124 = vrot.lane.b32.xlu0 %v5337_v34, %s4987_s19 }
 0x1ec   : > { %2158 = vrot.lane.b32.xlu1 %v5333_v30, %s4986_s28  ;;  %1995 = vrot.lane.b32.xlu0 %v5321_v26, %s4987_s19 }
 0x1f0   : > { %2128 = vrot.lane.b32.xlu1 %v5335_v31, %s4987_s19  ;;  %2031 = vrot.lane.b32.xlu0 %v5321_v26, %s4986_s28 }
 0x1f4   : > { %2164 = vrot.lane.b32.xlu1 %v5335_v31, %s4986_s28  ;;  %2130 = vrot.lane.b32.xlu0 %v5339_v35, %s4987_s19 }
 0x1f8   : > { %2160 = vrot.lane.b32.xlu1 %v5337_v34, %s4986_s28  ;;  %2166 = vrot.lane.b32.xlu0 %v5339_v35, %s4986_s28 }
 0x1fc   : > { %1993 = vrot.lane.b32.xlu1 %v5317_v22, %s4987_s19 }
 0x1ff   : > { %v5367_v36 = vpop.f32.mrb[12].mxu0 }
 0x200   : > { %v5369_v37 = vpop.f32.mrb[12].mxu1  ;;  %2029 = vrot.lane.b32.xlu1 %v5317_v22, %s4986_s28  ;;  %2174 = vrot.lane.b32.xlu0 %v5367_v36, %s4986_s28  ;;  %v5375_v38 = vpop.f32.mrb[13].mxu0 }
 0x201   : > { %v5377_v39 = vpop.f32.mrb[13].mxu1  ;;  %v4433_v40 = vpop.f32.mrb[14].mxu0 }
 0x202   : > { %v4453_v41 = vpop.f32.mrb[14].mxu1  ;;  %v5379_v42 = vpop.f32.mrb[15].mxu0 }
 0x203   : > { %v5381_v43 = vpop.f32.mrb[15].mxu1 }
 0x204   : > { %2180 = vrot.lane.b32.xlu0 %v5369_v37, %s4986_s28  ;;  %2138 = vrot.lane.b32.xlu1 %v5367_v36, %s4987_s19 }
 0x208   : > { %2144 = vrot.lane.b32.xlu1 %v5369_v37, %s4987_s19  ;;  %2136 = vrot.lane.b32.xlu0 %v5379_v42, %s4987_s19 }
 0x20c   : > { %2134 = vrot.lane.b32.xlu1 %v5375_v38, %s4987_s19  ;;  %2172 = vrot.lane.b32.xlu0 %v5379_v42, %s4986_s28 }
 0x210   : > { %2170 = vrot.lane.b32.xlu1 %v5375_v38, %s4986_s28  ;;  %2142 = vrot.lane.b32.xlu0 %v5381_v43, %s4987_s19 }
 0x212   : > { %v2022_v46 = vpop.permute.xlu0 %2021  ;;  %v1986_v47 = vpop.permute.xlu1 %1985 }
 0x213   : > { %v2056_v48 = vsel %vm2053_vm9, %v1986_v47, %v2022_v46 }
 0x214   : > { %v2080_v50 = vmul.f32 %v2056_v48, %v5407_v45  ;;  %2140 = vrot.lane.b32.xlu1 %v5377_v39, %s4987_s19  ;;  %2178 = vrot.lane.b32.xlu0 %v5381_v43, %s4986_s28  ;;  %v2069_v48 = vmul.f32 %v5281_v15, %v5432_v62 }
 0x216   : > { %v5417_v51 = vadd.f32 %v2080_v50, %v2068_v49  ;;  %v2028_v52 = vpop.permute.xlu0 %2027  ;;  %v1992_v53 = vpop.permute.xlu1 %1991 }
 0x217   : > { %v2059_v54 = vsel %vm2053_vm9, %v1992_v53, %v2028_v52  ;;  %v2070_v52 = vmul.f32 %v5291_v60, %v5441_v63 }
 0x218   : > { %v2083_v56 = vmul.f32 %v2059_v54, %v5407_v45  ;;  %2176 = vrot.lane.b32.xlu1 %v5377_v39, %s4986_s28  ;;  %2033 = vrot.lane.b32.xlu0 %v5313_v20, %s4986_s28 }
 0x21a   : > { %v5427_v57 = vadd.f32 %v2083_v56, %v2071_v55  ;;  %v1982_v58 = vpop.permute.xlu1 %1981  ;;  %v1984_v59 = vpop.permute.xlu0 %1983 }
 0x21c   : > { %1997 = vrot.lane.b32.xlu1 %v5313_v20, %s4987_s19  ;;  %2001 = vrot.lane.b32.xlu0 %v5323_v27, %s4987_s19 }
 0x21e   : > { %v2018_v2 = vpop.permute.xlu1 %2017  ;;  %v2020_v3 = vpop.permute.xlu0 %2019 }
 0x21f   : > { %v2054_v5 = vsel %vm2053_vm9, %v1982_v58, %v2018_v2  ;;  %v2055_v6 = vsel %vm2053_vm9, %v1984_v59, %v2020_v3  ;;  %v5457_v7 = vpop.f32.mrb[16].mxu0 }
 0x220   : > { %v5461_v8 = vpop.f32.mrb[16].mxu1  ;;  %v2078_v9 = vmul.f32 %v2054_v5, %v5446_v0  ;;  %v2079_v10 = vmul.f32 %v2055_v6, %v5451_v1  ;;  %1999 = vrot.lane.b32.xlu1 %v5319_v23, %s4987_s19  ;;  %2037 = vrot.lane.b32.xlu0 %v5323_v27, %s4986_s28  ;;  %v1667_v11 = vpop.f32.mrb[17].mxu0 }
 0x221   : > { %v1763_v12 = vpop.f32.mrb[17].mxu1  ;;  %v4473_v13 = vpop.f32.mrb[18].mxu0 }
 0x222   : > { %v2090_v14 = vadd.f32 %v2078_v9, %v2066_v4  ;;  %v2091_v16 = vadd.f32 %v2079_v10, %v2067_v61  ;;  %v4493_v17 = vpop.f32.mrb[18].mxu1  ;;  %v1670_v18 = vpop.f32.mrb[19].mxu0 }
 0x223   : > { %v5469_v19 = vpack.c.bf16 %v1670_v18, %v1667_v11  ;;  %v1766_v24 = vpop.f32.mrb[19].mxu1  ;;  %v1988_v25 = vpop.permute.xlu1 %1987 }
 0x224   : > { %v2102_v32 = vpack.c.bf16 %v2091_v16, %v2090_v14  ;;  %v5471_v33 = vpack.c.bf16 %v1766_v24, %v1763_v12  ;;  %v1990_v40 = vpop.permute.xlu0 %1989  ;;  %2035 = vrot.lane.b32.xlu1 %v5319_v23, %s4986_s28  ;;  %2039 = vrot.lane.b32.xlu0 %v5315_v21, %s4986_s28 }
 0x226   : > { %4538 = vmatprep.mubr.msk.bf16.mxu1 %vm2250_vm10, %v2102_v32 }
 0x227   : > { %v2024_v41 = vpop.permute.xlu1 %2023 }
 0x228   : > { %v2057_v46 = vsel %vm2053_vm9, %v1988_v25, %v2024_v41  ;;  %v2026_v47 = vpop.permute.xlu0 %2025  ;;  %2003 = vrot.lane.b32.xlu1 %v5315_v21, %s4987_s19 }
 0x229   : > { %v2081_v49 = vmul.f32 %v2057_v46, %v5446_v0  ;;  %v2058_v50 = vsel %vm2053_vm9, %v1990_v40, %v2026_v47 }
 0x22a   : > { %v2082_v53 = vmul.f32 %v2058_v50, %v5451_v1 }
 0x22b   : > { %v5488_v54 = vadd.f32 %v2081_v49, %v2069_v48  ;;  %v2208_v48 = vmul.f32 %v5325_v28, %v5402_v44  ;;  %v2210_v28 = vmul.f32 %v5339_v35, %v5441_v63 }
 0x22c   : > { %v5490_v55 = vadd.f32 %v2082_v53, %v2070_v52 }
 0x22e   : > { %v2104_v56 = vpack.c.bf16 %v5490_v55, %v5488_v54 }
 0x23f   : > { %v5494_v58 = vpop.f32.mrb[20].mxu0 }
 0x240   : > { %v5496_v59 = vpop.f32.mrb[20].mxu1  ;;  %v1859_v15 = vpop.f32.mrb[21].mxu0 }
 0x241   : > { %v1955_v2 = vpop.f32.mrb[21].mxu1  ;;  %v4513_v3 = vpop.f32.mrb[22].mxu0 }
 0x242   : > { %v4533_v4 = vpop.f32.mrb[22].mxu1  ;;  %v1862_v5 = vpop.f32.mrb[23].mxu0 }
 0x243   : > { %v5498_v6 = vpack.c.bf16 %v1862_v5, %v1859_v15  ;;  %v1958_v60 = vpop.f32.mrb[23].mxu1  ;;  %v2209_v15 = vmul.f32 %v5335_v31, %v5432_v62  ;;  %v2207_v5 = vmul.f32 %v5337_v34, %v5441_v63 }
 0x244   : > { %v5500_v61 = vpack.c.bf16 %v1958_v60, %v1955_v2  ;;  %v2206_v2 = vmul.f32 %v5333_v30, %v5432_v62 }
 0x252   : > { %v2163_v9 = vpop.permute.xlu0 %2162  ;;  %v2127_v10 = vpop.permute.xlu1 %2126 }
 0x253   : > { %v2196_v25 = vsel %vm2053_vm9, %v2127_v10, %v2163_v9 }
 0x254   : > { %v2220_v47 = vmul.f32 %v2196_v25, %v5407_v45 }
 0x256   : > { %v2169_v11 = vpop.permute.xlu0 %2168  ;;  %v2133_v12 = vpop.permute.xlu1 %2132  ;;  %v2232_v10 = vadd.f32 %v2220_v47, %v2208_v48  ;;  %v2072_v48 = vmul.f32 %v5317_v22, %v5432_v62 }
 0x25a   : > { %v2123_v13 = vpop.permute.xlu1 %2122  ;;  %v2125_v14 = vpop.permute.xlu0 %2124 }
 0x25e   : > { %v2159_v16 = vpop.permute.xlu1 %2158  ;;  %v1996_v17 = vpop.permute.xlu0 %1995 }
 0x25f   : > { %v2194_v41 = vsel %vm2053_vm9, %v2123_v13, %v2159_v16 }
 0x260   : > { %v2218_v49 = vmul.f32 %v2194_v41, %v5446_v0 }
 0x262   : > { %v2129_v18 = vpop.permute.xlu1 %2128  ;;  %v2032_v24 = vpop.permute.xlu0 %2031  ;;  %v2230_v13 = vadd.f32 %v2218_v49, %v2206_v2 }
 0x266   : > { %v2165_v32 = vpop.permute.xlu1 %2164  ;;  %v2131_v40 = vpop.permute.xlu0 %2130 }
 0x267   : > { %v2197_v46 = vsel %vm2053_vm9, %v2129_v18, %v2165_v32 }
 0x268   : > { %v2221_v50 = vmul.f32 %v2197_v46, %v5446_v0 }
 0x26a   : > { %v2161_v52 = vpop.permute.xlu1 %2160  ;;  %v2167_v53 = vpop.permute.xlu0 %2166  ;;  %v2233_v31 = vadd.f32 %v2221_v50, %v2209_v15  ;;  %v2199_v15 = vsel %vm2053_vm9, %v2133_v12, %v2169_v11 }
 0x26b   : > { %v2195_v3 = vsel %vm2053_vm9, %v2125_v14, %v2161_v52  ;;  %v2198_v4 = vsel %vm2053_vm9, %v2131_v40, %v2167_v53  ;;  %v2061_v14 = vsel %vm2053_vm9, %v1996_v17, %v2032_v24  ;;  %v2243_v40 = vpack.c.bf16 %v2232_v10, %v2232_v10 }
 0x26c   : > { %v2219_v60 = vmul.f32 %v2195_v3, %v5451_v1  ;;  %v2222_v9 = vmul.f32 %v2198_v4, %v5451_v1  ;;  %v2085_v34 = vmul.f32 %v2061_v14, %v5451_v1  ;;  %v2073_v17 = vmul.f32 %v5321_v26, %v5441_v63 }
 0x26d   : > { %v2223_v3 = vmul.f32 %v2199_v15, %v5407_v45  ;;  %v2211_v26 = vmul.f32 %v5327_v29, %v5402_v44  ;;  %v2103_v10 = vpack.c.bf16 %v5417_v51, %v5417_v51  ;;  %v2214_v51 = vmul.f32 %v5367_v36, %v5402_v44 }
 0x26e   : > { %v2231_v16 = vadd.f32 %v2219_v60, %v2207_v5  ;;  %v2234_v18 = vadd.f32 %v2222_v9, %v2210_v28  ;;  %v1994_v30 = vpop.permute.xlu1 %1993  ;;  %v2097_v49 = vadd.f32 %v2085_v34, %v2073_v17  ;;  %v2261_v5 = vsel %vm2250_vm10, %v2243_v40, 0 }
 0x26f   : > { %v2235_v28 = vadd.f32 %v2223_v3, %v2211_v26  ;;  %v2216_v15 = vmul.f32 %v5381_v43, %v5441_v63  ;;  %v2074_v43 = vmul.f32 %v5313_v20, %v5402_v44 }
 0x270   : > { %v2242_v25 = vpack.c.bf16 %v2231_v16, %v2230_v13  ;;  %v2244_v32 = vpack.c.bf16 %v2234_v18, %v2233_v31 }
 0x271   : > { %v2245_v13 = vpack.c.bf16 %v2235_v28, %v2235_v28 }
 0x272   : > { %v2030_v41 = vpop.permute.xlu1 %2029  ;;  %4630 = vmatprep.subr.msk.bf16.mxu1 %vm2250_vm10, %v2242_v25  ;;  %v2175_v35 = vpop.permute.xlu0 %2174  ;;  %v2258_v46 = vsel %vm2250_vm10, %v2242_v25, 0  ;;  %v2212_v25 = vmul.f32 %v5375_v38, %v5432_v62 }
 0x273   : > { %v2060_v47 = vsel %vm2053_vm9, %v1994_v30, %v2030_v41  ;;  %4535 = vmatpush3.bf16.xpose.msra.mxu1 %v2258_v46  ;;  %v2318_v30 = vsel %vm2250_vm10, %v2244_v32, 0 }
 0x274   : > { %v2084_v24 = vmul.f32 %v2060_v47, %v5446_v0  ;;  %4631 = vmatprep.subr.msk.bf16.mxu1 %vm2250_vm10, %v2243_v40  ;;  %v2213_v40 = vmul.f32 %v5379_v42, %v5441_v63  ;;  %v2321_v47 = vsel %vm2250_vm10, %v2245_v13, 0 }
 0x276   : > { %v2096_v50 = vadd.f32 %v2084_v24, %v2072_v48  ;;  %v2181_v52 = vpop.permute.xlu0 %2180  ;;  %v2139_v53 = vpop.permute.xlu1 %2138 }
 0x277   : > { %v2202_v11 = vsel %vm2053_vm9, %v2139_v53, %v2175_v35  ;;  %v2215_v53 = vmul.f32 %v5377_v39, %v5432_v62 }
 0x278   : > { %v2106_v2 = vpack.c.bf16 %v2097_v49, %v2096_v50  ;;  %v2226_v31 = vmul.f32 %v2202_v11, %v5407_v45 }
 0x27a   : > { %4554 = vmatprep.mubr.msk.bf16.mxu0 %vm2250_vm10, %v2106_v2  ;;  %v2145_v4 = vpop.permute.xlu1 %2144  ;;  %v2137_v22 = vpop.permute.xlu0 %2136 }
 0x27b   : > { %4537 = vmatpush3.bf16.xpose.msra.mxu1 %v2261_v5  ;;  %v2205_v55 = vsel %vm2053_vm9, %v2145_v4, %v2181_v52  ;;  %v2217_v52 = vmul.f32 %v5369_v37, %v5402_v44  ;;  %v2105_v37 = vpack.c.bf16 %v5427_v57, %v5427_v57 }
 0x27c   : > { %4632 = vmatprep.subr.msk.bf16.mxu1 %vm2250_vm10, %v2244_v32  ;;  %v2238_v32 = vadd.f32 %v2226_v31, %v2214_v51  ;;  %v2229_v48 = vmul.f32 %v2205_v55, %v5407_v45 }
 0x27e   : > { %v2135_v60 = vpop.permute.xlu1 %2134  ;;  %v2173_v9 = vpop.permute.xlu0 %2172  ;;  %v2247_v38 = vpack.c.bf16 %v2238_v32, %v2238_v32  ;;  %v2241_v3 = vadd.f32 %v2229_v48, %v2217_v52 }
 0x27f   : > { %v2201_v12 = vsel %vm2053_vm9, %v2137_v22, %v2173_v9 }
 0x280   : > { %v2225_v16 = vmul.f32 %v2201_v12, %v5451_v1  ;;  %v2249_v9 = vpack.c.bf16 %v2241_v3, %v2241_v3 }
 0x282   : > { %4539 = vmatmul.mubr.msk.bf16.vlgmr.msra.gmra.mrb[24].mxu1 %vm2250_vm10, %v2103_v10  ;;  %v2171_v29 = vpop.permute.xlu1 %2170  ;;  %v2143_v18 = vpop.permute.xlu0 %2142  ;;  %v2237_v41 = vadd.f32 %v2225_v16, %v2213_v40  ;;  %v2381_v10 = vsel %vm2250_vm10, %v2247_v38, 0 }
 0x283   : > { %v2200_v14 = vsel %vm2053_vm9, %v2135_v60, %v2171_v29  ;;  %4543 = vmatpush3.bf16.xpose.msra.mxu1 %v2318_v30  ;;  %4546 = vmatprep.mubr.msk.bf16.mxu1 %vm2250_vm10, %v2104_v56  ;;  %v2076_v30 = vmul.f32 %v5323_v27, %v5441_v63  ;;  %v2077_v27 = vmul.f32 %v5315_v21, %v5402_v44  ;;  %v590_v44 = vld [vmem:[#allocation3 + $0x10] sm:$0xff] }
 0x284   : > { %v2224_v34 = vmul.f32 %v2200_v14, %v5446_v0  ;;  %4633 = vmatprep.subr.msk.bf16.mxu1 %vm2250_vm10, %v2245_v13 }
 0x286   : > { %v2236_v35 = vadd.f32 %v2224_v34, %v2212_v25  ;;  %v2141_v46 = vpop.permute.xlu1 %2140  ;;  %v2179_v54 = vpop.permute.xlu0 %2178  ;;  %v2609_v25 = vpack.c.bf16 %v5457_v7, %v5457_v7 }
 0x287   : > { %v2204_v56 = vsel %vm2053_vm9, %v2143_v18, %v2179_v54  ;;  %v2075_v18 = vmul.f32 %v5319_v23, %v5432_v62 }
 0x288   : > { %v2246_v36 = vpack.c.bf16 %v2237_v41, %v2236_v35  ;;  %v2228_v42 = vmul.f32 %v2204_v56, %v5451_v1  ;;  %v589_v56 = vld [vmem:[#allocation3 + $0x8] sm:$0xff] }
 0x28a   : > { %v2177_v17 = vpop.permute.xlu1 %2176  ;;  %v2034_v24 = vpop.permute.xlu0 %2033  ;;  %4634 = vmatprep.subr.msk.bf16.mxu0 %vm2250_vm10, %v2246_v36  ;;  %v2378_v49 = vsel %vm2250_vm10, %v2246_v36, 0  ;;  %v2240_v4 = vadd.f32 %v2228_v42, %v2216_v15 }
 0x28b   : > { %v2203_v50 = vsel %vm2053_vm9, %v2141_v46, %v2177_v17  ;;  %4545 = vmatpush3.bf16.xpose.msra.mxu1 %v2321_v47  ;;  %4551 = vmatpush3.bf16.xpose.msra.mxu0 %v2378_v49 }
 0x28c   : > { %v2227_v2 = vmul.f32 %v2203_v50, %v5446_v0  ;;  %4635 = vmatprep.subr.msk.bf16.mxu0 %vm2250_vm10, %v2247_v38 }
 0x28e   : > { %v2239_v22 = vadd.f32 %v2227_v2, %v2215_v53  ;;  %v1998_v5 = vpop.permute.xlu1 %1997  ;;  %v2002_v26 = vpop.permute.xlu0 %2001 }
 0x28f   : > { %v2062_v28 = vsel %vm2053_vm9, %v1998_v5, %v2034_v24 }
 0x290   : > { %v2248_v60 = vpack.c.bf16 %v2240_v4, %v2239_v22  ;;  %v2086_v39 = vmul.f32 %v2062_v28, %v5407_v45 }
 0x292   : > { %4547 = vmatmul.mubr.msk.bf16.vlgmr.msra.gmra.mrb[28].mxu1 %vm2250_vm10, %v2105_v37  ;;  %v2000_v11 = vpop.permute.xlu1 %1999  ;;  %4636 = vmatprep.subr.msk.bf16.mxu1 %vm2250_vm10, %v2248_v60  ;;  %v2038_v12 = vpop.permute.xlu0 %2037  ;;  %v2438_v13 = vsel %vm2250_vm10, %v2248_v60, 0  ;;  %v2098_v57 = vadd.f32 %v2086_v39, %v2074_v43 }
 0x293   : > { %v2064_v31 = vsel %vm2053_vm9, %v2002_v26, %v2038_v12  ;;  %4553 = vmatpush3.bf16.xpose.msra.mxu0 %v2381_v10  ;;  %4559 = vmatpush3.bf16.xpose.msra.mxu1 %v2438_v13 }
 0x294   : > { %4637 = vmatprep.subr.msk.bf16.mxu1 %vm2250_vm10, %v2249_v9  ;;  %4566 = vmatprep.subr.bf16.mxu0 %v5469_v19  ;;  %v2088_v20 = vmul.f32 %v2064_v31, %v5451_v1  ;;  %v2107_v14 = vpack.c.bf16 %v2098_v57, %v2098_v57  ;;  %v2441_v1 = vsel %vm2250_vm10, %v2249_v9, 0 }
 0x296   : > { %v2036_v16 = vpop.permute.xlu1 %2035  ;;  %v2100_v40 = vadd.f32 %v2088_v20, %v2076_v30  ;;  %v2040_v32 = vpop.permute.xlu0 %2039 }
 0x297   : > { %v2063_v29 = vsel %vm2053_vm9, %v2000_v11, %v2036_v16 }
 0x298   : > { %v2087_v51 = vmul.f32 %v2063_v29, %v5446_v0  ;;  %v2624_v0 = vsel %vm2622_vm11, %v2609_v25, 0 }
 0x29a   : > { %v2099_v34 = vadd.f32 %v2087_v51, %v2075_v18  ;;  %v2004_v41 = vpop.permute.xlu1 %2003  ;;  %4555 = vmatmul.mubr.msk.bf16.vlgmr.msra.gmra.mrb[24].mxu0 %vm2250_vm10, %v2107_v14 }
 0x29b   : > { %v2065_v23 = vsel %vm2053_vm9, %v2004_v41, %v2040_v32  ;;  %4561 = vmatpush3.bf16.xpose.msra.mxu1 %v2441_v1  ;;  %4567 = vmatpush3.bf16.msra.mxu0 %v5469_v19  ;;  %v2611_v19 = vpack.c.bf16 %v5461_v8, %v5461_v8 }
 0x29c   : > { %v2108_v62 = vpack.c.bf16 %v2100_v40, %v2099_v34  ;;  %v2089_v63 = vmul.f32 %v2065_v23, %v5407_v45  ;;  %4638 = vmatprep.subr.msk.bf16.mxu0 %vm2622_vm11, %v2609_v25  ;;  %4574 = vmatprep.subr.bf16.mxu1 %v5471_v33  ;;  %v588_v45 = vld [vmem:[#allocation3] sm:$0xff] }
 0x29d   : > { %v2681_v21 = vsel %vm2622_vm11, %v2611_v19, 0 }
 0x29e   : > { %v2101_v7 = vadd.f32 %v2089_v63, %v2077_v27  ;;  %4562 = vmatprep.mubr.msk.bf16.mxu1 %vm2250_vm10, %v2108_v62 }
 0x29f   : > { %4569 = vmatpush3.bf16.msra.mxu0 %v2624_v0 }
 0x2a0   : > { %v2109_v35 = vpack.c.bf16 %v2101_v7, %v2101_v7  ;;  %4582 = vmatprep.subr.bf16.mxu0 %v5498_v6 }
 0x2a2   : > { %4563 = vmatmul.mubr.msk.bf16.vlgmr.msra.gmra.mrb[32].mxu1 %vm2250_vm10, %v2109_v35 }
 0x2a3   : > { %4575 = vmatpush3.bf16.msra.mxu1 %v5471_v33 }
 0x2a4   : > { %4639 = vmatprep.subr.msk.bf16.mxu1 %vm2622_vm11, %v2611_v19 }
 0x2a7   : > { %4577 = vmatpush3.bf16.msra.mxu1 %v2681_v21 }
 0x2a8   : > { %4590 = vmatprep.subr.bf16.mxu1 %v5500_v61 }
 0x355   : > { %v4540_v46 = vpop.f32.mrb[24].mxu1 }
 0x356   : > { %v2306_v54 = vadd.f32 %v4540_v46, %v590_v44  ;;  %v2297_v55 = vpop.f32.mrb[25].mxu1 }
 0x357   : > { %v2298_v36 = vadd.f32 %v2297_v55, %v588_v45  ;;  %v4541_v8 = vpop.f32.mrb[26].mxu1 }
 0x358   : > { %v2300_v47 = vpop.f32.mrb[27].mxu1  ;;  %v2498_v38 = vsel %vm2491_vm12, %v2306_v54, -inf }
 0x359   : > { %v2301_v33 = vadd.f32 %v2300_v47, %v589_v56  ;;  %2499 = vmax.xlane.f32.xlu0 %v2498_v38  ;;  %v2492_v48 = vsel %vm2491_vm12, %v2298_v36, -inf  ;;  %v2613_v47 = vpack.c.bf16 %v5494_v58, %v5494_v58 }
 0x35a   : > { %2493 = vmax.xlane.f32.xlu1 %v2492_v48 }
 0x35b   : > { %v2495_v42 = vsel %vm2491_vm12, %v2301_v33, -inf }
 0x35d   : > { %2496 = vmax.xlane.f32.xlu0 %v2495_v42  ;;  %v2738_v42 = vsel %vm2622_vm11, %v2613_v47, 0 }
 0x365   : > { %v4548_v17 = vpop.f32.mrb[28].mxu1 }
 0x366   : > { %v2366_v24 = vadd.f32 %v4548_v17, %v590_v44  ;;  %v2357_v49 = vpop.f32.mrb[29].mxu1 }
 0x367   : > { %v4549_v50 = vpop.f32.mrb[30].mxu1  ;;  %v5621_v52 = vadd.f32 %v2357_v49, %v588_v45 }
 0x368   : > { %v2360_v53 = vpop.f32.mrb[31].mxu1  ;;  %v2507_v15 = vsel %vm2491_vm12, %v2366_v24, -inf }
 0x369   : > { %v5624_v2 = vadd.f32 %v2360_v53, %v589_v56  ;;  %2508 = vmax.xlane.f32.xlu0 %v2507_v15  ;;  %v2501_v4 = vsel %vm2491_vm12, %v5621_v52, -inf }
 0x36b   : > { %v2504_v3 = vsel %vm2491_vm12, %v5624_v2, -inf }
 0x36c   : > { %2505 = vmax.xlane.f32.xlu1 %v2504_v3 }
 0x36d   : > { %2502 = vmax.xlane.f32.xlu0 %v2501_v4  ;;  %v4556_v22 = vpop.f32.mrb[24].mxu0 }
 0x36e   : > { %v5630_v5 = vadd.f32 %v4556_v22, %v590_v44  ;;  %v2417_v26 = vpop.f32.mrb[25].mxu0 }
 0x36f   : > { %v4557_v28 = vpop.f32.mrb[26].mxu0  ;;  %v5632_v37 = vadd.f32 %v2417_v26, %v588_v45 }
 0x370   : > { %v2420_v60 = vpop.f32.mrb[27].mxu0  ;;  %v2516_v39 = vsel %vm2491_vm12, %v5630_v5, -inf }
 0x371   : > { %2517 = vmax.xlane.f32.xlu1 %v2516_v39  ;;  %v2510_v43 = vsel %vm2491_vm12, %v5632_v37, -inf  ;;  %v5640_v31 = vadd.f32 %v2420_v60, %v589_v56 }
 0x373   : > { %v2513_v18 = vsel %vm2491_vm12, %v5640_v31, -inf }
 0x375   : > { %v4564_v9 = vpop.f32.mrb[32].mxu1  ;;  %2511 = vmax.xlane.f32.xlu1 %v2510_v43 }
 0x376   : > { %v2477_v11 = vpop.f32.mrb[33].mxu1  ;;  %v5648_v29 = vadd.f32 %v4564_v9, %v590_v44 }
 0x377   : > { %v5638_v12 = vadd.f32 %v2477_v11, %v588_v45  ;;  %v4565_v10 = vpop.f32.mrb[34].mxu1  ;;  %v2615_v11 = vpack.c.bf16 %v5496_v59, %v5496_v59 }
 0x378   : > { %v2480_v13 = vpop.f32.mrb[35].mxu1  ;;  %v2525_v30 = vsel %vm2491_vm12, %v5648_v29, -inf }
 0x379   : > { %v5642_v57 = vadd.f32 %v2480_v13, %v589_v56  ;;  %v2519_v20 = vsel %vm2491_vm12, %v5638_v12, -inf }
 0x37a   : > { %2520 = vmax.xlane.f32.xlu0 %v2519_v20  ;;  %v2795_v20 = vsel %vm2622_vm11, %v2615_v11, 0 }
 0x37b   : > { %v2522_v16 = vsel %vm2491_vm12, %v5642_v57, -inf }
 0x37c   : > { %2523 = vmax.xlane.f32.xlu1 %v2522_v16 }
 0x37e   : > { %2514 = vmax.xlane.f32.xlu0 %v2513_v18 }
 0x382   : > { %2526 = vmax.xlane.f32.xlu0 %v2525_v30 }
 0x3e6   : > { %v2500_v14 = vpop.xlane.xlu0 %2499 }
 0x3e7   : > { %v2530_v51 = vsub.f32 %v2306_v54, %v2500_v14  ;;  %v2494_v25 = vpop.xlane.xlu1 %2493 }
 0x3e8   : > { %v2528_v40 = vsub.f32 %v2298_v36, %v2494_v25 }
 0x3e9   : > { %v2544_v34 = vmul.f32 1.442695, %v2530_v51 }
 0x3ea   : > { %v2540_v32 = vmul.f32 1.442695, %v2528_v40  ;;  %v2497_v41 = vpop.xlane.xlu0 %2496 }
 0x3eb   : > { %4863 = vpow2.f32 %v2544_v34  ;;  %v2529_v1 = vsub.f32 %v2301_v33, %v2497_v41 }
 0x3ec   : > { %4865 = vpow2.f32 %v2540_v32 }
 0x3ed   : > { %v2542_v23 = vmul.f32 1.442695, %v2529_v1 }
 0x3ef   : > { %4867 = vpow2.f32 %v2542_v23  ;;  %v4785_v23 = vld [vmem:[%s5105_s26] sm:$0xff]  }
 0x3f5   : > { %v4864_v27 = vpop.eup %4863 }
 0x3f6   : > { %v2509_v62 = vpop.xlane.xlu0 %2508  ;;  %v2570_v63 = vsel %vm2491_vm12, %v4864_v27, 0.0  ;;  %v4866_v0 = vpop.eup %4865  ;;  %v2601_v36 = vpack.c.bf16 %v4864_v27, %v4864_v27  ;;  %v4786_v27 = vld [vmem:[%s5105_s26 + $0x8] sm:$0xff]  }
 0x3f7   : > { %v2533_v7 = vsub.f32 %v2366_v24, %v2509_v62  ;;  %2571 = vadd.xlane.f32.xlu1 %v2570_v63  ;;  %v2564_v54 = vsel %vm2491_vm12, %v4866_v0, 0.0  ;;  %v4787_v62 = vld [vmem:[%s5105_s26 + $0x10] sm:$0xff]   ;;  %v4788_v63 = vld [vmem:[%s5105_s26 + $0x18] sm:$0xff]  }
 0x3f9   : > { %v4868_v35 = vpop.eup %4867  ;;  %v2550_v19 = vmul.f32 1.442695, %v2533_v7  ;;  %v2506_v21 = vpop.xlane.xlu1 %2505  ;;  %v4790_v7 = vld [vmem:[%s5105_s26 + $0x30] sm:$0xff]  }
 0x3fa   : > { %v2532_v44 = vsub.f32 %v5624_v2, %v2506_v21  ;;  %v2503_v45 = vpop.xlane.xlu0 %2502  ;;  %v2567_v46 = vsel %vm2491_vm12, %v4868_v35, 0.0  ;;  %v2600_v55 = vpack.c.bf16 %v4868_v35, %v4866_v0  ;;  %v4789_v0 = vld [vmem:[%s5105_s26 + $0x20] sm:$0xff]  }
 0x3fb   : > { %4869 = vpow2.f32 %v2550_v19  ;;  %v2531_v56 = vsub.f32 %v5621_v52, %v2503_v45  ;;  %2568 = vadd.xlane.f32.xlu0 %v2567_v46  ;;  %2565 = vadd.xlane.f32.xlu1 %v2564_v54 }
 0x3fc   : > { %v2548_v8 = vmul.f32 1.442695, %v2532_v44  ;;  %4570 = vmatprep.mubr.msk.bf16.mxu0 %vm2491_vm12, %v2600_v55 }
 0x3fd   : > { %v2546_v38 = vmul.f32 1.442695, %v2531_v56  ;;  %4571 = vmatmul.mubr.msk.bf16.vlgmr.msra.gmra.mrb[28].mxu0 %vm2491_vm12, %v2601_v36 }
 0x3fe   : > { %4871 = vpow2.f32 %v2548_v8  ;;  %4583 = vmatpush3.bf16.msra.mxu0 %v5498_v6  ;;  %v2518_v33 = vpop.xlane.xlu1 %2517 }
 0x3ff   : > { %4873 = vpow2.f32 %v2546_v38  ;;  %4640 = vmatprep.subr.msk.bf16.mxu0 %vm2622_vm11, %v2613_v47  ;;  %v2536_v48 = vsub.f32 %v5630_v5, %v2518_v33 }
 0x401   : > { %v2556_v17 = vmul.f32 1.442695, %v2536_v48 }
 0x402   : > { %4585 = vmatpush3.bf16.msra.mxu0 %v2738_v42  ;;  %v2512_v24 = vpop.xlane.xlu1 %2511 }
 0x403   : > { %4875 = vpow2.f32 %v2556_v17  ;;  %v2534_v58 = vsub.f32 %v5632_v37, %v2512_v24  ;;  %4598 = vmatprep.subr.bf16.mxu0 %v4785_v23 }
 0x405   : > { %v4870_v49 = vpop.eup %4869  ;;  %v2552_v50 = vmul.f32 1.442695, %v2534_v58  ;;  %v4791_v58 = vld [vmem:[%s5105_s26 + $0x28] sm:$0xff]  }
 0x406   : > { %v2579_v52 = vsel %vm2491_vm12, %v4870_v49, 0.0  ;;  %v2603_v60 = vpack.c.bf16 %v4870_v49, %v4870_v49 }
 0x407   : > { %4877 = vpow2.f32 %v2552_v50  ;;  %v2521_v6 = vpop.xlane.xlu0 %2520  ;;  %2580 = vadd.xlane.f32.xlu0 %v2579_v52 }
 0x408   : > { %v4872_v53 = vpop.eup %4871  ;;  %v2537_v15 = vsub.f32 %v5638_v12, %v2521_v6 }
 0x409   : > { %v4874_v2 = vpop.eup %4873  ;;  %v2524_v3 = vpop.xlane.xlu1 %2523  ;;  %v2576_v4 = vsel %vm2491_vm12, %v4872_v53, 0.0 }
 0x40a   : > { %v2558_v22 = vmul.f32 1.442695, %v2537_v15  ;;  %v2538_v5 = vsub.f32 %v5642_v57, %v2524_v3  ;;  %2577 = vadd.xlane.f32.xlu1 %v2576_v4  ;;  %v2573_v26 = vsel %vm2491_vm12, %v4874_v2, 0.0  ;;  %v2602_v28 = vpack.c.bf16 %v4872_v53, %v4874_v2 }
 0x40b   : > { %2574 = vadd.xlane.f32.xlu0 %v2573_v26  ;;  %v2515_v37 = vpop.xlane.xlu0 %2514 }
 0x40c   : > { %4879 = vpow2.f32 %v2558_v22  ;;  %v2560_v39 = vmul.f32 1.442695, %v2538_v5  ;;  %v2535_v43 = vsub.f32 %v5640_v31, %v2515_v37  ;;  %4578 = vmatprep.mubr.msk.bf16.mxu1 %vm2491_vm12, %v2602_v28 }
 0x40d   : > { %v4876_v9 = vpop.eup %4875  ;;  %4579 = vmatmul.mubr.msk.bf16.vlgmr.msra.gmra.mrb[36].mxu1 %vm2491_vm12, %v2603_v60 }
 0x40e   : > { %4881 = vpow2.f32 %v2560_v39  ;;  %v2554_v12 = vmul.f32 1.442695, %v2535_v43  ;;  %4591 = vmatpush3.bf16.msra.mxu1 %v5500_v61  ;;  %v2588_v10 = vsel %vm2491_vm12, %v4876_v9, 0.0  ;;  %v2605_v34 = vpack.c.bf16 %v4876_v9, %v4876_v9  ;;  %v4792_v43 = vld [vmem:[%s5105_s26 + $0x38] sm:$0xff]  }
 0x40f   : > { %4641 = vmatprep.subr.msk.bf16.mxu1 %vm2622_vm11, %v2615_v11  ;;  %v2527_v13 = vpop.xlane.xlu0 %2526  ;;  %2589 = vadd.xlane.f32.xlu1 %v2588_v10 }
 0x410   : > { %4883 = vpow2.f32 %v2554_v12  ;;  %v2539_v31 = vsub.f32 %v5648_v29, %v2527_v13 }
 0x411   : > { %v4878_v57 = vpop.eup %4877 }
 0x412   : > { %v2562_v16 = vmul.f32 1.442695, %v2539_v31  ;;  %4593 = vmatpush3.bf16.msra.mxu1 %v2795_v20  ;;  %v2582_v59 = vsel %vm2491_vm12, %v4878_v57, 0.0 }
 0x413   : > { %2583 = vadd.xlane.f32.xlu1 %v2582_v59  ;;  %4606 = vmatprep.subr.bf16.mxu1 %v4787_v62 }
 0x414   : > { %4885 = vpow2.f32 %v2562_v16 }
 0x416   : > { %v4880_v18 = vpop.eup %4879 }
 0x417   : > { %v2591_v61 = vsel %vm2491_vm12, %v4880_v18, 0.0 }
 0x418   : > { %v4882_v30 = vpop.eup %4881  ;;  %2592 = vadd.xlane.f32.xlu0 %v2591_v61 }
 0x419   : > { %v2594_v14 = vsel %vm2491_vm12, %v4882_v30, 0.0  ;;  %v2606_v51 = vpack.c.bf16 %v4882_v30, %v4880_v18 }
 0x41a   : > { %v4884_v25 = vpop.eup %4883  ;;  %2595 = vadd.xlane.f32.xlu1 %v2594_v14 }
 0x41b   : > { %4594 = vmatprep.mubr.msk.bf16.mxu1 %vm2491_vm12, %v2606_v51  ;;  %v2585_v29 = vsel %vm2491_vm12, %v4884_v25, 0.0  ;;  %v2604_v40 = vpack.c.bf16 %v4884_v25, %v4878_v57 }
 0x41c   : > { %2586 = vadd.xlane.f32.xlu0 %v2585_v29 }
 0x41d   : > { %4586 = vmatprep.mubr.msk.bf16.mxu0 %vm2491_vm12, %v2604_v40 }
 0x41e   : > { %v4886_v32 = vpop.eup %4885  ;;  %4587 = vmatmul.mubr.msk.bf16.vlgmr.msra.gmra.mrb[32].mxu0 %vm2491_vm12, %v2605_v34 }
 0x41f   : > { %v2597_v41 = vsel %vm2491_vm12, %v4886_v32, 0.0  ;;  %v2607_v1 = vpack.c.bf16 %v4886_v32, %v4886_v32  ;;  %4599 = vmatpush3.bf16.msra.mxu0 %v4785_v23 }
 0x420   : > { %2598 = vadd.xlane.f32.xlu0 %v2597_v41  ;;  %4600 = vmatprep.subr.bf16.mxu0 %v4786_v27 }
 0x421   : > { %4595 = vmatmul.mubr.msk.bf16.vlgmr.msra.gmra.mrb[40].mxu1 %vm2491_vm12, %v2607_v1 }
 0x422   : > { %4607 = vmatpush3.bf16.msra.mxu1 %v4787_v62 }
 0x423   : > { %4601 = vmatpush3.bf16.msra.mxu0 %v4786_v27  ;;  %4608 = vmatprep.subr.bf16.mxu1 %v4788_v63 }
 0x424   : > { %4614 = vmatprep.subr.bf16.mxu0 %v4789_v0 }
 0x426   : > { %4609 = vmatpush3.bf16.msra.mxu1 %v4788_v63 }
 0x427   : > { %4622 = vmatprep.subr.bf16.mxu1 %v4790_v7 }
 0x484   : > { %v2572_v35 = vpop.xlane.xlu1 %2571 }
 0x485   : > { %4887 = vrcp.f32 %v2572_v35  ;;  %v4796_v35 = vld [vmem:[%s5120_s20] ss:$8 sps:$4 sm:$0xff]  }
 0x488   : > { %v2569_v19 = vpop.xlane.xlu0 %2568  ;;  %v2566_v21 = vpop.xlane.xlu1 %2565 }
 0x489   : > { %4889 = vrcp.f32 %v2569_v19  ;;  %v4798_v19 = vld [vmem:[%s5120_s20 + $0x4] ss:$8 sps:$4 sm:$0xff]  }
 0x48a   : > { %4891 = vrcp.f32 %v2566_v21  ;;  %v4801_v21 = vld [vmem:[%s5115_s14 + $0x14] ss:$8 sps:$4 sm:$0xff]  }
 0x48f   : > { %v4888_v46 = vpop.eup %4887 }
 0x493   : > { %v4890_v55 = vpop.eup %4889 }
 0x494   : > { %v2581_v44 = vpop.xlane.xlu0 %2580  ;;  %v4892_v36 = vpop.eup %4891 }
 0x495   : > { %4893 = vrcp.f32 %v2581_v44  ;;  %v4804_v44 = vld [vmem:[%s5120_s20 + $0x14] ss:$8 sps:$4 sm:$0xff]  }
 0x497   : > { %v2578_v48 = vpop.xlane.xlu1 %2577 }
 0x498   : > { %v2575_v42 = vpop.xlane.xlu0 %2574  ;;  %4895 = vrcp.f32 %v2578_v48 }
 0x499   : > { %4897 = vrcp.f32 %v2575_v42 }
 0x49c   : > { %v2590_v50 = vpop.xlane.xlu1 %2589 }
 0x49d   : > { %4899 = vrcp.f32 %v2590_v50 }
 0x49f   : > { %v4894_v6 = vpop.eup %4893 }
 0x4a0   : > { %v2584_v37 = vpop.xlane.xlu1 %2583 }
 0x4a1   : > { %4901 = vrcp.f32 %v2584_v37 }
 0x4a2   : > { %v4896_v15 = vpop.eup %4895 }
 0x4a3   : > { %v4898_v3 = vpop.eup %4897 }
 0x4a5   : > { %v2593_v49 = vpop.xlane.xlu0 %2592 }
 0x4a7   : > { %v2596_v11 = vpop.xlane.xlu1 %2595  ;;  %v4900_v10 = vpop.eup %4899 }
 0x4a9   : > { %v2587_v4 = vpop.xlane.xlu0 %2586 }
 0x4aa   : > { %4903 = vrcp.f32 %v2587_v4 }
 0x4ab   : > { %4905 = vrcp.f32 %v2593_v49  ;;  %v4902_v31 = vpop.eup %4901 }
 0x4ad   : > { %v2599_v9 = vpop.xlane.xlu0 %2598 }
 0x4ae   : > { %4907 = vrcp.f32 %v2599_v9 }
 0x4af   : > { %4909 = vrcp.f32 %v2596_v11  ;;  %v4942_v11 = vld [vmem:[#allocation2 + $0x10] sm:$0xff] }
 0x4b4   : > { %v4904_v20 = vpop.eup %4903 }
 0x4b5   : > { %v4906_v61 = vpop.eup %4905 }
 0x4b8   : > { %v4908_v25 = vpop.eup %4907 }
 0x4b9   : > { %v4910_v40 = vpop.eup %4909 }
 0x4d0   : > { %v4572_v45 = vpop.f32.mrb[28].mxu0 }
 0x4d1   : > { %v2660_v54 = vpop.f32.mrb[29].mxu0  ;;  %v2859_v8 = vmul.f32 %v4888_v46, %v4572_v45  ;;  %v4799_v45 = vld [vmem:[%s5115_s14 + $0x10] ss:$8 sps:$4 sm:$0xff]  }
 0x4d2   : > { %v4573_v56 = vpop.f32.mrb[30].mxu0  ;;  %v2857_v38 = vmul.f32 %v4892_v36, %v2660_v54  ;;  %v4802_v46 = vld [vmem:[%s5120_s20 + $0x10] ss:$8 sps:$4 sm:$0xff]   ;;  %v4807_v54 = vld [vmem:[%s5115_s14 + $0x24] ss:$8 sps:$4 sm:$0xff]  }
 0x4d3   : > { %v2663_v47 = vpop.f32.mrb[31].mxu0  ;;  %v2870_v24 = vpack.c.bf16 %v2859_v8, %v2859_v8  ;;  %v4805_v56 = vld [vmem:[%s5115_s14 + $0x20] ss:$8 sps:$4 sm:$0xff]  }
 0x4d4   : > { %v2858_v33 = vmul.f32 %v4890_v55, %v2663_v47  ;;  %v4810_v55 = vld [vmem:[%s5120_s20 + $0x24] ss:$8 sps:$4 sm:$0xff]   ;;  %v4808_v36 = vld [vmem:[%s5120_s20 + $0x20] ss:$8 sps:$4 sm:$0xff]  }
 0x4d6   : > { %v2869_v17 = vpack.c.bf16 %v2858_v33, %v2857_v38 }
 0x4d8   : > { %4602 = vmatprep.mubr.msk.bf16.mxu0 %vm2250_vm10, %v2869_v17 }
 0x4d9   : > { %4603 = vmatmul.mubr.msk.bf16.vlgmr.msra.gmra.mrb[36].mxu0 %vm2250_vm10, %v2870_v24 }
 0x4da   : > { %4615 = vmatpush3.bf16.msra.mxu0 %v4789_v0  ;;  %v4793_v0 = vld [vmem:[%s5115_s14] ss:$8 sps:$4 sm:$0xff]  }
 0x4db   : > { %4616 = vmatprep.subr.bf16.mxu0 %v4791_v58 }
 0x4de   : > { %4617 = vmatpush3.bf16.msra.mxu0 %v4791_v58 }
 0x4e0   : > { %v4580_v52 = vpop.f32.mrb[36].mxu1 }
 0x4e1   : > { %v2717_v53 = vpop.f32.mrb[37].mxu1  ;;  %v2862_v22 = vmul.f32 %v4894_v6, %v4580_v52 }
 0x4e2   : > { %v4581_v2 = vpop.f32.mrb[38].mxu1  ;;  %v2860_v26 = vmul.f32 %v4898_v3, %v2717_v53 }
 0x4e3   : > { %v2720_v5 = vpop.f32.mrb[39].mxu1  ;;  %v2872_v39 = vpack.c.bf16 %v2862_v22, %v2862_v22 }
 0x4e4   : > { %v2861_v28 = vmul.f32 %v4896_v15, %v2720_v5 }
 0x4e6   : > { %v2871_v60 = vpack.c.bf16 %v2861_v28, %v2860_v26 }
 0x4e8   : > { %4610 = vmatprep.mubr.msk.bf16.mxu1 %vm2250_vm10, %v2871_v60 }
 0x4e9   : > { %4611 = vmatmul.mubr.msk.bf16.vlgmr.msra.gmra.mrb[44].mxu1 %vm2250_vm10, %v2872_v39  ;;  %v4941_v39 = vld [vmem:[#allocation2] sm:$0xff] }
 0x4ea   : > { %4623 = vmatpush3.bf16.msra.mxu1 %v4790_v7  ;;  %v4795_v7 = vld [vmem:[%s5115_s14 + $0x4] ss:$8 sps:$4 sm:$0xff]  }
 0x4eb   : > { %4624 = vmatprep.subr.bf16.mxu1 %v4792_v43  ;;  %3298 = vmatprep.subr.bf16.mxu0 %v4795_v7  ;;  %v4835_v7 = vld [vmem:[%s5115_s14 + $0x70] ss:$8 sps:$4 sm:$0xff]  }
 0x4ee   : > { %4625 = vmatpush3.bf16.msra.mxu1 %v4792_v43 }
 0x4ef   : > { %3445 = vmatprep.subr.bf16.mxu1 %v4798_v19 }
 0x4f1   : > { %v4588_v12 = vpop.f32.mrb[32].mxu0 }
 0x4f2   : > { %v2774_v13 = vpop.f32.mrb[33].mxu0  ;;  %v2865_v16 = vmul.f32 %v4900_v10, %v4588_v12  ;;  %v4943_v10 = vld [vmem:[#allocation2 + $0x8] sm:$0xff] }
 0x4f3   : > { %v4589_v57 = vpop.f32.mrb[34].mxu0  ;;  %v2863_v30 = vmul.f32 %v4902_v31, %v2774_v13 }
 0x4f4   : > { %v2777_v59 = vpop.f32.mrb[35].mxu0  ;;  %v4596_v18 = vpop.f32.mrb[40].mxu1  ;;  %v2874_v1 = vpack.c.bf16 %v2865_v16, %v2865_v16  ;;  %v4813_v16 = vld [vmem:[%s5115_s14 + $0x34] ss:$8 sps:$4 sm:$0xff]  }
 0x4f5   : > { %v2864_v14 = vmul.f32 %v4904_v20, %v2777_v59  ;;  %v2831_v51 = vpop.f32.mrb[41].mxu1  ;;  %v2868_v32 = vmul.f32 %v4908_v25, %v4596_v18  ;;  %v4816_v59 = vld [vmem:[%s5120_s20 + $0x34] ss:$8 sps:$4 sm:$0xff]   ;;  %v4811_v18 = vld [vmem:[%s5115_s14 + $0x30] ss:$8 sps:$4 sm:$0xff]  }
 0x4f6   : > { %v4597_v29 = vpop.f32.mrb[42].mxu1  ;;  %v2866_v23 = vmul.f32 %v4906_v61, %v2831_v51  ;;  %v4814_v61 = vld [vmem:[%s5120_s20 + $0x30] ss:$8 sps:$4 sm:$0xff]   ;;  %v4817_v51 = vld [vmem:[%s5115_s14 + $0x40] ss:$8 sps:$4 sm:$0xff]  }
 0x4f7   : > { %v2873_v34 = vpack.c.bf16 %v2864_v14, %v2863_v30  ;;  %v2834_v41 = vpop.f32.mrb[43].mxu1  ;;  %v2876_v63 = vpack.c.bf16 %v2868_v32, %v2868_v32  ;;  %v4819_v30 = vld [vmem:[%s5115_s14 + $0x44] ss:$8 sps:$4 sm:$0xff]   ;;  %v4820_v25 = vld [vmem:[%s5120_s20 + $0x40] ss:$8 sps:$4 sm:$0xff]  }
 0x4f8   : > { %v2867_v27 = vmul.f32 %v4910_v40, %v2834_v41  ;;  %v4822_v14 = vld [vmem:[%s5120_s20 + $0x44] ss:$8 sps:$4 sm:$0xff]   ;;  %v4825_v29 = vld [vmem:[%s5115_s14 + $0x54] ss:$8 sps:$4 sm:$0xff]   ;;  %v4826_v32 = vld [vmem:[%s5120_s20 + $0x50] ss:$8 sps:$4 sm:$0xff]  }
 0x4f9   : > { %4618 = vmatprep.mubr.msk.bf16.mxu0 %vm2250_vm10, %v2873_v34  ;;  %v4828_v40 = vld [vmem:[%s5120_s20 + $0x54] ss:$8 sps:$4 sm:$0xff]   ;;  %v4823_v34 = vld [vmem:[%s5115_s14 + $0x50] ss:$8 sps:$4 sm:$0xff]   ;;  %v4831_v41 = vld [vmem:[%s5115_s14 + $0x64] ss:$8 sps:$4 sm:$0xff]  }
 0x4fa   : > { %v2875_v62 = vpack.c.bf16 %v2867_v27, %v2866_v23  ;;  %4619 = vmatmul.mubr.msk.bf16.vlgmr.msra.gmra.mrb[40].mxu0 %vm2250_vm10, %v2874_v1  ;;  %v4834_v1 = vld [vmem:[%s5120_s20 + $0x64] ss:$8 sps:$4 sm:$0xff]   ;;  %v4988_v23 = vmov 0   ;;  %v4829_v27 = vld [vmem:[%s5115_s14 + $0x60] ss:$8 sps:$4 sm:$0xff]  }
 0x4fb   : > { %3299 = vmatpush1.bf16.msra.mxu0 %v4793_v0  ;;  %3330 = vmatprep.mubr.bf16.mxu0 %v4988_v23  ;;  %v4840_v0 = vld [vmem:[%s5120_s20 + $0x74] ss:$8 sps:$4 sm:$0xff]  }
 0x4fc   : > { %4626 = vmatprep.mubr.msk.bf16.mxu1 %vm2250_vm10, %v2875_v62  ;;  %3300 = vmatprep.subr.bf16.mxu0 %v4801_v21  ;;  %v4832_v62 = vld [vmem:[%s5120_s20 + $0x60] ss:$8 sps:$4 sm:$0xff]  }
 0x4fd   : > { %4627 = vmatmul.mubr.msk.bf16.vlgmr.msra.gmra.mrb[48].mxu1 %vm2250_vm10, %v2876_v63  ;;  %v4837_v63 = vld [vmem:[%s5115_s14 + $0x74] ss:$8 sps:$4 sm:$0xff]  }
 0x4fe   : > { %3446 = vmatpush1.bf16.msra.mxu1 %v4796_v35  ;;  %3477 = vmatprep.mubr.bf16.mxu1 %v4988_v23  ;;  %v4838_v35 = vld [vmem:[%s5120_s20 + $0x70] ss:$8 sps:$4 sm:$0xff]  }
 0x4ff   : > { %3447 = vmatprep.subr.bf16.mxu1 %v4804_v44  ;;  %3301 = vmatpush1.bf16.msra.mxu0 %v4799_v45 }
 0x500   : > { %3302 = vmatprep.subr.bf16.mxu0 %v4807_v54 }
 0x502   : > { %3448 = vmatpush1.bf16.msra.mxu1 %v4802_v46 }
 0x503   : > { %3449 = vmatprep.subr.bf16.mxu1 %v4810_v55  ;;  %3303 = vmatpush1.bf16.msra.mxu0 %v4805_v56 }
 0x504   : > { %3304 = vmatprep.subr.bf16.mxu0 %v4813_v16 }
 0x506   : > { %3450 = vmatpush1.bf16.msra.mxu1 %v4808_v36 }
 0x507   : > { %3451 = vmatprep.subr.bf16.mxu1 %v4816_v59  ;;  %3305 = vmatpush1.bf16.msra.mxu0 %v4811_v18 }
 0x508   : > { %3306 = vmatprep.subr.bf16.mxu0 %v4819_v30 }
 0x50a   : > { %3452 = vmatpush1.bf16.msra.mxu1 %v4814_v61 }
 0x50b   : > { %3453 = vmatprep.subr.bf16.mxu1 %v4822_v14  ;;  %3307 = vmatpush1.bf16.msra.mxu0 %v4817_v51 }
 0x50c   : > { %3308 = vmatprep.subr.bf16.mxu0 %v4825_v29 }
 0x50e   : > { %3454 = vmatpush1.bf16.msra.mxu1 %v4820_v25 }
 0x50f   : > { %3455 = vmatprep.subr.bf16.mxu1 %v4828_v40  ;;  %3309 = vmatpush1.bf16.msra.mxu0 %v4823_v34 }
 0x510   : > { %3310 = vmatprep.subr.bf16.mxu0 %v4831_v41 }
 0x512   : > { %3456 = vmatpush1.bf16.msra.mxu1 %v4826_v32 }
 0x513   : > { %3457 = vmatprep.subr.bf16.mxu1 %v4834_v1  ;;  %3311 = vmatpush1.bf16.msra.mxu0 %v4829_v27 }
 0x514   : > { %3312 = vmatprep.subr.bf16.mxu0 %v4837_v63 }
 0x516   : > { %3458 = vmatpush1.bf16.msra.mxu1 %v4832_v62 }
 0x517   : > { %3459 = vmatprep.subr.bf16.mxu1 %v4840_v0  ;;  %3313 = vmatpush1.bf16.msra.mxu0 %v4835_v7 }
 0x51a   : > { %3460 = vmatpush1.bf16.msra.mxu1 %v4838_v35 }
 0x5ac   : > { %v4604_v8 = vpop.f32.mrb[36].mxu0 }
 0x5ad   : > { %v2945_v47 = vpop.f32.mrb[37].mxu0 }
 0x5ae   : > { %v4605_v38 = vpop.f32.mrb[38].mxu0 }
 0x5af   : > { %v2948_v33 = vpop.f32.mrb[39].mxu0 }
 0x5bc   : > { %v4612_v48 = vpop.f32.mrb[44].mxu1 }
 0x5bd   : > { %v3163_v42 = vadd.f32 %v4612_v48, %v4604_v8  ;;  %v3011_v17 = vpop.f32.mrb[45].mxu1 }
 0x5be   : > { %v3157_v24 = vadd.f32 %v3011_v17, %v2945_v47  ;;  %v4613_v58 = vpop.f32.mrb[46].mxu1 }
 0x5bf   : > { %v3014_v49 = vpop.f32.mrb[47].mxu1 }
 0x5c0   : > { %v3160_v50 = vadd.f32 %v3014_v49, %v2948_v33  ;;  %v4036_v33 = vld [vmem:[%s520_s29] ss:$0 sm:$0xff] }
 0x5cd   : > { %v4620_v52 = vpop.f32.mrb[40].mxu0 }
 0x5ce   : > { %v3164_v6 = vadd.f32 %v4620_v52, %v3163_v42  ;;  %v3077_v53 = vpop.f32.mrb[41].mxu0 }
 0x5cf   : > { %v3158_v15 = vadd.f32 %v3157_v24, %v3077_v53  ;;  %v4621_v2 = vpop.f32.mrb[42].mxu0  ;;  %v4842_v53 = vld [vmem:[%s5125_s3] sm:$0xff]  }
 0x5d0   : > { %v3080_v3 = vpop.f32.mrb[43].mxu0  ;;  %v4628_v4 = vpop.f32.mrb[48].mxu1  ;;  %v4844_v2 = vld [vmem:[%s5125_s3 + $0x8] sm:$0xff]  }
 0x5d1   : > { %v3161_v22 = vadd.f32 %v3160_v50, %v3080_v3  ;;  %v3165_v5 = vadd.f32 %v4628_v4, %v3164_v6  ;;  %v3143_v26 = vpop.f32.mrb[49].mxu1  ;;  %v4841_v6 = vld [vmem:[%s5125_s3 + $0x40] sm:$0xff]   ;;  %v4845_v3 = vld [vmem:[%s5125_s3 + $0x50] sm:$0xff]  }
 0x5d2   : > { %v3159_v28 = vadd.f32 %v3158_v15, %v3143_v26  ;;  %v4629_v37 = vpop.f32.mrb[50].mxu1  ;;  %4266 = vmatprep.subr.bf16.mxu0 %v4841_v6  ;;  %v4843_v15 = vld [vmem:[%s5125_s3 + $0x48] sm:$0xff]   ;;  %v4846_v4 = vld [vmem:[%s5125_s3 + $0x10] sm:$0xff]   ;;  %v4849_v26 = vld [vmem:[%s5125_s3 + $0x60] sm:$0xff]  }
 0x5d3   : > { %v3146_v60 = vpop.f32.mrb[51].mxu1  ;;  %v5722_v12 = vadd.f32 %v4942_v11, %v3165_v5  ;;  %v4848_v5 = vld [vmem:[%s5125_s3 + $0x18] sm:$0xff]   ;;  %v4851_v37 = vld [vmem:[%s5125_s3 + $0x68] sm:$0xff]  }
 0x5d4   : > { %v5720_v43 = vadd.f32 %v4941_v39, %v3159_v28  ;;  %v3162_v9 = vadd.f32 %v3161_v22, %v3146_v60  ;;  %v4847_v22 = vld [vmem:[%s5125_s3 + $0x58] sm:$0xff]   ;;  %v4850_v28 = vld [vmem:[%s5125_s3 + $0x20] sm:$0xff]   ;;  %v4852_v60 = vld [vmem:[%s5125_s3 + $0x28] sm:$0xff]  }
 0x5d5   : > { %v3172_v20 = vmul.f32 %v5722_v12, %v5722_v12  ;;  %v4853_v39 = vld [vmem:[%s5125_s3 + $0x70] sm:$0xff]   ;;  %v4855_v11 = vld [vmem:[%s5125_s3 + $0x78] sm:$0xff]  }
 0x5d6   : > { %v5724_v13 = vadd.f32 %v4943_v10, %v3162_v9  ;;  %v3170_v31 = vmul.f32 %v5720_v43, %v5720_v43  ;;  %v4854_v9 = vld [vmem:[%s5125_s3 + $0x30] sm:$0xff]   ;;  %v4856_v10 = vld [vmem:[%s5125_s3 + $0x38] sm:$0xff]  }
 0x5d8   : > { %3173 = vadd.xlane.f32.xlu1 %v3170_v31  ;;  %v3171_v57 = vmul.f32 %v5724_v13, %v5724_v13 }
 0x5da   : > { %3175 = vadd.xlane.f32.xlu0 %v3171_v57 }
 0x5dc   : > { %3177 = vadd.xlane.f32.xlu1 %v3172_v20 }
 0x665   : > { %v3174_v19 = vpop.xlane.xlu1 %3173 }
 0x666   : > { %v3179_v21 = vmul.f32 0.0078125, %v3174_v19 }
 0x667   : > { %v3176_v44 = vpop.xlane.xlu0 %3175 }
 0x668   : > { %v3182_v45 = vadd.f32 1e-06, %v3179_v21  ;;  %v3180_v46 = vmul.f32 0.0078125, %v3176_v44 }
 0x669   : > { %v3178_v54 = vpop.xlane.xlu1 %3177 }
 0x66a   : > { %4911 = vrsqrt.f32 %v3182_v45  ;;  %v3183_v55 = vadd.f32 1e-06, %v3180_v46  ;;  %v3181_v56 = vmul.f32 0.0078125, %v3178_v54 }
 0x66c   : > { %4913 = vrsqrt.f32 %v3183_v55  ;;  %v3184_v36 = vadd.f32 1e-06, %v3181_v56 }
 0x66e   : > { %4915 = vrsqrt.f32 %v3184_v36 }
 0x674   : > { %v4912_v8 = vpop.eup %4911 }
 0x675   : > { %v3188_v47 = vmul.f32 %v4912_v8, %v5720_v43 }
 0x676   : > { %v4914_v38 = vpop.eup %4913 }
 0x677   : > { %v3189_v48 = vmul.f32 %v4914_v38, %v5724_v13  ;;  %v3197_v17 = vmul.f32 %v4036_v33, %v3188_v47 }
 0x678   : > { %v4916_v42 = vpop.eup %4915 }
 0x679   : > { %v3198_v24 = vmul.f32 %v4036_v33, %v3189_v48  ;;  %v3190_v49 = vmul.f32 %v4916_v42, %v5722_v12 }
 0x67b   : > { %v3200_v58 = vpack.c.bf16 %v3198_v24, %v3197_v17  ;;  %v3199_v50 = vmul.f32 %v4036_v33, %v3190_v49 }
 0x67d   : > { %3331 = vmatmul.mubr.bf16.vlgmr.msra.gmra.mrb[44].mxu0 %v3200_v58  ;;  %3478 = vmatmul.mubr.bf16.vlgmr.msra.gmra.mrb[52].mxu1 %v3200_v58  ;;  %v3201_v52 = vpack.c.bf16 %v3199_v50, %v3199_v50 }
 0x67e   : > { %3340 = vmatprep.mubr.bf16.mxu0 %v4988_v23  ;;  %3487 = vmatprep.mubr.bf16.mxu1 %v4988_v23 }
 0x67f   : > { %4267 = vmatpush3.bf16.msra.mxu0 %v4842_v53 }
 0x680   : > { %4268 = vmatprep.subr.bf16.mxu0 %v4843_v15 }
 0x683   : > { %4269 = vmatpush3.bf16.msra.mxu0 %v4844_v2 }
 0x684   : > { %4270 = vmatprep.subr.bf16.mxu0 %v4845_v3 }
 0x685   : > { %3341 = vmatmul.mubr.bf16.gmra.mrb[48].mxu0 %v3201_v52  ;;  %3488 = vmatmul.mubr.bf16.gmra.mrb[56].mxu1 %v3201_v52 }
 0x687   : > { %4271 = vmatpush3.bf16.msra.mxu0 %v4846_v4 }
 0x688   : > { %4272 = vmatprep.subr.bf16.mxu0 %v4847_v22 }
 0x68b   : > { %4273 = vmatpush3.bf16.msra.mxu0 %v4848_v5 }
 0x68c   : > { %4274 = vmatprep.subr.bf16.mxu0 %v4849_v26 }
 0x68f   : > { %4275 = vmatpush3.bf16.msra.mxu0 %v4850_v28 }
 0x690   : > { %4276 = vmatprep.subr.bf16.mxu0 %v4851_v37 }
 0x693   : > { %4277 = vmatpush3.bf16.msra.mxu0 %v4852_v60 }
 0x694   : > { %4278 = vmatprep.subr.bf16.mxu0 %v4853_v39 }
 0x697   : > { %4279 = vmatpush3.bf16.msra.mxu0 %v4854_v9 }
 0x698   : > { %4280 = vmatprep.subr.bf16.mxu0 %v4855_v11 }
 0x69b   : > { %4281 = vmatpush3.bf16.msra.mxu0 %v4856_v10 }
 0x750   : > { %v3332_v31 = vpop.f32.mrb[44].mxu0  ;;  %v3479_v57 = vpop.f32.mrb[52].mxu1 }
 0x751   : > { %v4069_v20 = vmul.f32 -1.442695, %v3332_v31  ;;  %v3334_v16 = vpop.f32.mrb[45].mxu0  ;;  %v3481_v59 = vpop.f32.mrb[53].mxu1 }
 0x752   : > { %v4070_v18 = vmul.f32 -1.442695, %v3334_v16  ;;  %v3336_v61 = vpop.f32.mrb[46].mxu0  ;;  %v3483_v30 = vpop.f32.mrb[54].mxu1 }
 0x753   : > { %4917 = vpow2.f32 %v4069_v20  ;;  %v4071_v14 = vmul.f32 -1.442695, %v3336_v61  ;;  %v3338_v51 = vpop.f32.mrb[47].mxu0  ;;  %v3485_v25 = vpop.f32.mrb[55].mxu1 }
 0x754   : > { %4919 = vpow2.f32 %v4070_v18  ;;  %v4072_v29 = vmul.f32 -1.442695, %v3338_v51 }
 0x755   : > { %4921 = vpow2.f32 %v4071_v14 }
 0x756   : > { %4923 = vpow2.f32 %v4072_v29 }
 0x758   : > { %v3342_v40 = vpop.f32.mrb[48].mxu0  ;;  %v3489_v34 = vpop.f32.mrb[56].mxu1 }
 0x759   : > { %v4073_v32 = vmul.f32 -1.442695, %v3342_v40  ;;  %v3344_v41 = vpop.f32.mrb[49].mxu0  ;;  %v3491_v1 = vpop.f32.mrb[57].mxu1 }
 0x75a   : > { %v4074_v23 = vmul.f32 -1.442695, %v3344_v41  ;;  %v3346_v27 = vpop.f32.mrb[50].mxu0  ;;  %v3493_v62 = vpop.f32.mrb[58].mxu1 }
 0x75b   : > { %4925 = vpow2.f32 %v4073_v32  ;;  %v3347_v63 = vpop.f32.mrb[51].mxu0  ;;  %v3494_v0 = vpop.f32.mrb[59].mxu1 }
 0x75c   : > { %4927 = vpow2.f32 %v4074_v23 }
 0x75d   : > { %v4918_v7 = vpop.eup %4917 }
 0x75e   : > { %v4920_v35 = vpop.eup %4919  ;;  %v3514_v19 = vadd.f32 1.0, %v4918_v7 }
 0x75f   : > { %v4922_v21 = vpop.eup %4921  ;;  %v3515_v44 = vadd.f32 1.0, %v4920_v35 }
 0x760   : > { %v4924_v45 = vpop.eup %4923  ;;  %4929 = vrcp.f32 %v3514_v19  ;;  %v3516_v46 = vadd.f32 1.0, %v4922_v21 }
 0x761   : > { %4931 = vrcp.f32 %v3515_v44  ;;  %v3517_v54 = vadd.f32 1.0, %v4924_v45 }
 0x762   : > { %4933 = vrcp.f32 %v3516_v46 }
 0x763   : > { %4935 = vrcp.f32 %v3517_v54 }
 0x765   : > { %v4926_v55 = vpop.eup %4925 }
 0x766   : > { %v4928_v56 = vpop.eup %4927  ;;  %v3518_v36 = vadd.f32 1.0, %v4926_v55 }
 0x767   : > { %v3519_v8 = vadd.f32 1.0, %v4928_v56 }
 0x768   : > { %4937 = vrcp.f32 %v3518_v36 }
 0x769   : > { %4939 = vrcp.f32 %v3519_v8 }
 0x76a   : > { %v4930_v47 = vpop.eup %4929 }
 0x76b   : > { %v4932_v38 = vpop.eup %4931  ;;  %v3532_v33 = vmul.f32 %v4930_v47, %v3332_v31 }
 0x76c   : > { %v4934_v48 = vpop.eup %4933  ;;  %v3533_v42 = vmul.f32 %v4932_v38, %v3334_v16 }
 0x76d   : > { %v4936_v17 = vpop.eup %4935  ;;  %v3538_v24 = vmul.f32 %v3532_v33, %v3479_v57  ;;  %v3534_v58 = vmul.f32 %v4934_v48, %v3336_v61 }
 0x76e   : > { %v3539_v49 = vmul.f32 %v3533_v42, %v3481_v59  ;;  %v3535_v50 = vmul.f32 %v4936_v17, %v3338_v51 }
 0x76f   : > { %v3540_v52 = vmul.f32 %v3534_v58, %v3483_v30 }
 0x770   : > { %v3541_v6 = vmul.f32 %v3535_v50, %v3485_v25 }
 0x771   : > { %v3544_v53 = vpack.c.bf16 %v3540_v52, %v3538_v24 }
 0x772   : > { %v4938_v15 = vpop.eup %4937  ;;  %v3545_v2 = vpack.c.bf16 %v3541_v6, %v3539_v49 }
 0x773   : > { %v4940_v3 = vpop.eup %4939  ;;  %v3536_v4 = vmul.f32 %v4938_v15, %v3342_v40 }
 0x774   : > { %v3537_v22 = vmul.f32 %v4940_v3, %v3344_v41  ;;  %3708 = vmatprep.mubr.bf16.mxu0 %v3545_v2 }
 0x775   : > { %v3542_v5 = vmul.f32 %v3536_v4, %v3489_v34  ;;  %3709 = vmatmul.mubr.bf16.vlgmr.msra.gmra.mrb[52].mxu0 %v3544_v53 }
 0x776   : > { %v3543_v26 = vmul.f32 %v3537_v22, %v3491_v1 }
 0x777   : > { %v3546_v37 = vpack.c.bf16 %v3542_v5, %v3542_v5 }
 0x778   : > { %v3547_v28 = vpack.c.bf16 %v3543_v26, %v3543_v26 }
 0x77a   : > { %3716 = vmatprep.mubr.bf16.mxu0 %v3547_v28 }
 0x77d   : > { %3717 = vmatmul.mubr.bf16.gmra.mrb[56].mxu0 %v3546_v37 }
 0x848   : > { %v4282_v60 = vpop.f32.mrb[52].mxu0 }
 0x849   : > { %v4283_v39 = vpop.f32.mrb[53].mxu0 }
 0x84a   : > { %v4284_v9 = vadd.f32 %v4283_v39, %v4282_v60  ;;  %v4285_v11 = vpop.f32.mrb[54].mxu0 }
 0x84b   : > { %v4286_v10 = vpop.f32.mrb[55].mxu0 }
 0x84c   : > { %v3724_v31 = vadd.f32 %v4284_v9, %v5720_v43  ;;  %v4287_v57 = vadd.f32 %v4286_v10, %v4285_v11 }
 0x84e   : > { %3727 = vst [vmem:[#allocation2] sm:$0xff] %v3724_v31  ;;  %v3725_v20 = vadd.f32 %v4287_v57, %v5724_v13  ;;  %3734 = vst [vmem:[%s5130_s18] sm:$0xff] (!%p4091_p8), %v3724_v31 }
 0x850   : > { %3728 = vst [vmem:[#allocation2 + $0x8] sm:$0xff] %v3725_v20  ;;  %v4288_v16 = vpop.f32.mrb[56].mxu0  ;;  %3733 = sbr.rel (%p4091_p8) target bundleno = 2135 (0x857), region = 72  ;;  %3735 = vst [vmem:[%s5130_s18 + $0x8] sm:$0xff] (!%p4091_p8), %v3725_v20 }
 0x851   : > { %v4289_v59 = vpop.f32.mrb[57].mxu0 }
 0x852   : > { %v4290_v18 = vadd.f32 %v4289_v59, %v4288_v16  ;;  %v4291_v61 = vpop.f32.mrb[58].mxu0 }
 0x853   : > { %v4292_v30 = vpop.f32.mrb[59].mxu0 }
 0x854   : > { %v3726_v14 = vadd.f32 %v4290_v18, %v5722_v12 }
 0x856   : > { %3729 = vst [vmem:[#allocation2 + $0x10] sm:$0xff] %v3726_v14  ;;  %3736 = vst [vmem:[%s5130_s18 + $0x10] sm:$0xff] (!%p4091_p8), %v3726_v14 }
 0x857 PF: > { %s5826_s24 = sld [smem:[#allocation6_spill]]  ;;  %s5827_s17 = sld [smem:[#allocation4_spill]] }
 0x858   : > { %s5828_s18 = sld [smem:[#allocation5_spill]]  ;;  %s5829_s19 = sld [smem:[#allocation7_spill]] }
 0x859   : > { %s5830_s20 = sld [smem:[#allocation8_spill]] }
 0x85d   : > { %s21_s21 = sadd.s32 1, %s5826_s24  }
 0x85e   : > { %p18_p9 = scmp.ge.s32.totalorder %s21_s21, 6  }
 0x860   :  { %20 = sbr.rel (!%p18_p9) target bundleno = 4 (0x4), region = 126 }

</bundles_post_ra>
